<compile_context>
chip_gen: v6e
topology: v6e:2x2x1
jax: 0.10.0
libtpu: 0.0.40
codegen_flags: <defaults>
</compile_context>

<pallas_src>
import functools

import jax
import jax.numpy as jnp
from jax.experimental import pallas as pl
from jax.experimental.pallas import tpu as pltpu


def _round_up(v, m):
    return (v + m - 1) // m * m


def _conv_taps_kernel(x_ref, w_ref, b_ref, o_ref, *, kh_taps, kw_taps, row_stride):
    """Per-image TF-'same' conv, in-kernel im2col via shifted flat windows.

    o[0, co, m] = b[co] + sum_{kh,kw,c} w[co, (kh*KW+kw)*Cin + c]
                                       * x[0, c, kh*row_stride + kw + m]

    x_ref : (1, Cin, Lf)        row-flattened zero-padded image (row stride Wpp)
    w_ref : (Cout, KH*KW*Cin)   taps ordered (kh, kw, c)
    b_ref : (Cout, 1)
    o_ref : (1, Cout, Mout)     Mout = round_up(H*Wpp, 128); the "wide" junk
                                columns (w >= W) are sliced off by the wrapper.
    """
    cin = x_ref.shape[1]
    cout = o_ref.shape[1]
    mout = o_ref.shape[2]

    # Bias folded into the accumulator init (one broadcast per grid step).
    acc = jnp.broadcast_to(b_ref[...], (cout, mout)).astype(jnp.float32)

    # In-kernel im2col: every tap is a contiguous, statically-offset window of
    # the flat padded row buffer; the 25-tap reduction is accumulated MXU dots
    # (contraction = Cin; Mosaic pads the MXU contraction internally).
    for kh in range(kh_taps):
        for kw in range(kw_taps):
            t = kh * kw_taps + kw
            off = kh * row_stride + kw
            x_win = x_ref[0, :, off:off + mout]              # (Cin, Mout)
            w_tap = w_ref[:, t * cin:(t + 1) * cin]          # (Cout, Cin)
            acc = acc + jnp.dot(w_tap, x_win,
                                preferred_element_type=jnp.float32)

    o_ref[0, :, :] = acc.astype(o_ref.dtype)


def conv2d_tf_same(x_nchw, w_oihw, bias, *, compute_dtype=jnp.float32):
    """TensorFlow-style 'same' conv, stride 1, dilation 1 (ConvTensorFlow)."""
    N, Cin, H, W = x_nchw.shape
    Cout, cin_w, KH, KW = w_oihw.shape
    assert cin_w == Cin

    # TF 'same' for stride 1: total pad = K-1, smaller half on top/left.
    ph, pw = KH - 1, KW - 1
    ph_l, pw_l = ph // 2, pw // 2
    ph_r, pw_r = ph - ph_l, pw - pw_l

    Hp = H + ph                      # padded rows referenced by the taps
    Wpp = W + pw                     # padded row length == kernel row stride
    m_img = H * Wpp                  # "wide" output columns per image
    m_out = _round_up(m_img, 128)    # lane-dense output block width
    # Flat length so every shifted window (off + m_out) stays in bounds.
    lf = _round_up(ph * Wpp + pw + m_out, 128)

    # Compact padded input (~1-2x of x) -- this is the only HBM-side prep.
    x_pad = jnp.pad(x_nchw.astype(compute_dtype),
                    ((0, 0), (0, 0), (ph_l, ph_r), (pw_l, pw_r)))
    x_flat = x_pad.reshape(N, Cin, Hp * Wpp)
    x_flat = jnp.pad(x_flat, ((0, 0), (0, 0), (0, lf - Hp * Wpp)))

    # Weights OIHW -> (Cout, KH, KW, Cin) -> (Cout, KH*KW*Cin), taps (kh,kw,c).
    w_mat = jnp.transpose(w_oihw, (0, 2, 3, 1)).reshape(Cout, KH * KW * Cin)
    w_mat = w_mat.astype(compute_dtype)
    b2d = bias.reshape(Cout, 1).astype(jnp.float32)

    kernel = functools.partial(_conv_taps_kernel, kh_taps=KH, kw_taps=KW,
                               row_stride=Wpp)

    cost = pl.CostEstimate(
        flops=2 * N * m_out * KH * KW * Cin * Cout,
        transcendentals=0,
        bytes_accessed=(x_flat.size * x_flat.dtype.itemsize
                        + w_mat.size * w_mat.dtype.itemsize
                        + b2d.size * 4
                        + N * Cout * m_out * 4),
    )

    out_wide = pl.pallas_call(
        kernel,
        out_shape=jax.ShapeDtypeStruct((N, Cout, m_out), jnp.float32),
        grid=(N,),
        in_specs=[
            pl.BlockSpec((1, Cin, lf), lambda n: (n, 0, 0)),           # image
            pl.BlockSpec((Cout, KH * KW * Cin), lambda n: (0, 0)),     # weights
            pl.BlockSpec((Cout, 1), lambda n: (0, 0)),                 # bias
        ],
        out_specs=pl.BlockSpec((1, Cout, m_out), lambda n: (n, 0, 0)),
        compiler_params=pltpu.CompilerParams(
            dimension_semantics=("parallel",)),
        cost_estimate=cost,
    )(x_flat, w_mat, b2d)

    # Valid columns of the wide slab reshape directly to NCHW -- no transpose.
    out = out_wide[:, :, :m_img].reshape(N, Cout, H, Wpp)[:, :, :, :W]
    return out


class SingleConv:
    """JAX/Pallas port of the PyTorch SingleConv module (Conv2d 3->32, 5x5, 'same')."""

    def __init__(self, key):
        kw_, kb = jax.random.split(key)
        in_ch, out_ch, k = 3, 32, 5
        fan_in = in_ch * k * k
        bound = 1.0 / (fan_in ** 0.5)
        # Deterministic synthetic init (shapes match nn.Conv2d(3, 32, 5)).
        self.weight = jax.random.uniform(
            kw_, (out_ch, in_ch, k, k), jnp.float32, -bound, bound)
        self.bias = jax.random.uniform(
            kb, (out_ch,), jnp.float32, -bound, bound)

    def __call__(self, x_nchw):
        return conv2d_tf_same(x_nchw, self.weight, self.bias)


if __name__ == "__main__":
    key = jax.random.PRNGKey(0)
    k_x, k_p = jax.random.split(key)

    x = jax.random.normal(k_x, (2, 3, 16, 16), jnp.float32)   # NCHW like torch
    model = SingleConv(k_p)

    out = jax.block_until_ready(model(x))
    assert out.shape == (2, 32, 16, 16), out.shape

    # Reference: XLA conv with the same semantics as the torch module
    # (stride 1, 'same' => symmetric pad of 2 for a 5x5 kernel).
    ref = jax.lax.conv_general_dilated(
        x, model.weight, window_strides=(1, 1), padding=((2, 2), (2, 2)),
        dimension_numbers=("NCHW", "OIHW", "NCHW"),
    ) + model.bias[None, :, None, None]
    assert jnp.allclose(out, ref, atol=1e-4, rtol=1e-4), (
        float(jnp.max(jnp.abs(out - ref))))

    print("KERNEL_OK")
</pallas_src>

<mosaic_0001>
module attributes {stable_mosaic.version = 11 : i64} {
  func.func @_conv_taps_kernel(%arg0: i32, %arg1: memref<1x3x512xf32, #tpu.memory_space<vmem>>, %arg2: memref<32x75xf32, #tpu.memory_space<vmem>>, %arg3: memref<32x1xf32, #tpu.memory_space<vmem>>, %arg4: memref<1x32x384xf32, #tpu.memory_space<vmem>>) attributes {dimension_semantics = [#tpu.dimension_semantics<parallel>], iteration_bounds = array<i64: 2>, scalar_prefetch = 0 : i64, scratch_operands = 0 : i64, tpu.core_type = #tpu.core_type<tc>, window_params = [{transform_indices = @transform_0, window_bounds = array<i64: 1, 3, 512>}, {pipeline_mode = #tpu.pipeline_mode<synchronous>, transform_indices = @transform_1, window_bounds = array<i64: 32, 75>}, {pipeline_mode = #tpu.pipeline_mode<synchronous>, transform_indices = @transform_2, window_bounds = array<i64: 32, 1>}, {transform_indices = @transform_3, window_bounds = array<i64: 1, 32, 384>}]} {
    %c0 = arith.constant 0 : index
    %c0_0 = arith.constant 0 : index
    %0 = vector.load %arg3[%c0, %c0_0] : memref<32x1xf32, #tpu.memory_space<vmem>>, vector<32x1xf32>
    %1 = vector.shape_cast %0 : vector<32x1xf32> to vector<32x1xf32>
    %2 = vector.broadcast %1 : vector<32x1xf32> to vector<32x384xf32>
    %c0_1 = arith.constant 0 : index
    %c0_2 = arith.constant 0 : index
    %c0_3 = arith.constant 0 : index
    %3 = vector.load %arg1[%c0_1, %c0_2, %c0_3] : memref<1x3x512xf32, #tpu.memory_space<vmem>>, vector<1x3x384xf32>
    %4 = vector.shape_cast %3 : vector<1x3x384xf32> to vector<3x384xf32>
    %c0_4 = arith.constant 0 : index
    %c0_5 = arith.constant 0 : index
    %5 = vector.load %arg2[%c0_4, %c0_5] : memref<32x75xf32, #tpu.memory_space<vmem>>, vector<32x3xf32>
    %cst = arith.constant dense<0.000000e+00> : vector<32x384xf32>
    %6 = tpu.matmul %5, %4, %cst {dimension_numbers = #tpu.dot_dimension_numbers<[1], [0], [0], [1], [0, 0, 1, 1], [], []>} : vector<32x3xf32>, vector<3x384xf32>, vector<32x384xf32> -> vector<32x384xf32>
    %7 = arith.addf %2, %6 : vector<32x384xf32>
    %c0_6 = arith.constant 0 : index
    %c0_7 = arith.constant 0 : index
    %c1 = arith.constant 1 : index
    %8 = vector.load %arg1[%c0_6, %c0_7, %c1] : memref<1x3x512xf32, #tpu.memory_space<vmem>>, vector<1x3x384xf32>
    %9 = vector.shape_cast %8 : vector<1x3x384xf32> to vector<3x384xf32>
    %c0_8 = arith.constant 0 : index
    %c3 = arith.constant 3 : index
    %10 = vector.load %arg2[%c0_8, %c3] : memref<32x75xf32, #tpu.memory_space<vmem>>, vector<32x3xf32>
    %cst_9 = arith.constant dense<0.000000e+00> : vector<32x384xf32>
    %11 = tpu.matmul %10, %9, %cst_9 {dimension_numbers = #tpu.dot_dimension_numbers<[1], [0], [0], [1], [0, 0, 1, 1], [], []>} : vector<32x3xf32>, vector<3x384xf32>, vector<32x384xf32> -> vector<32x384xf32>
    %12 = arith.addf %7, %11 : vector<32x384xf32>
    %c0_10 = arith.constant 0 : index
    %c0_11 = arith.constant 0 : index
    %c2 = arith.constant 2 : index
    %13 = vector.load %arg1[%c0_10, %c0_11, %c2] : memref<1x3x512xf32, #tpu.memory_space<vmem>>, vector<1x3x384xf32>
    %14 = vector.shape_cast %13 : vector<1x3x384xf32> to vector<3x384xf32>
    %c0_12 = arith.constant 0 : index
    %c6 = arith.constant 6 : index
    %15 = vector.load %arg2[%c0_12, %c6] : memref<32x75xf32, #tpu.memory_space<vmem>>, vector<32x3xf32>
    %cst_13 = arith.constant dense<0.000000e+00> : vector<32x384xf32>
    %16 = tpu.matmul %15, %14, %cst_13 {dimension_numbers = #tpu.dot_dimension_numbers<[1], [0], [0], [1], [0, 0, 1, 1], [], []>} : vector<32x3xf32>, vector<3x384xf32>, vector<32x384xf32> -> vector<32x384xf32>
    %17 = arith.addf %12, %16 : vector<32x384xf32>
    %c0_14 = arith.constant 0 : index
    %c0_15 = arith.constant 0 : index
    %c3_16 = arith.constant 3 : index
    %18 = vector.load %arg1[%c0_14, %c0_15, %c3_16] : memref<1x3x512xf32, #tpu.memory_space<vmem>>, vector<1x3x384xf32>
    %19 = vector.shape_cast %18 : vector<1x3x384xf32> to vector<3x384xf32>
    %c0_17 = arith.constant 0 : index
    %c9 = arith.constant 9 : index
    %20 = vector.load %arg2[%c0_17, %c9] : memref<32x75xf32, #tpu.memory_space<vmem>>, vector<32x3xf32>
    %cst_18 = arith.constant dense<0.000000e+00> : vector<32x384xf32>
    %21 = tpu.matmul %20, %19, %cst_18 {dimension_numbers = #tpu.dot_dimension_numbers<[1], [0], [0], [1], [0, 0, 1, 1], [], []>} : vector<32x3xf32>, vector<3x384xf32>, vector<32x384xf32> -> vector<32x384xf32>
    %22 = arith.addf %17, %21 : vector<32x384xf32>
    %c0_19 = arith.constant 0 : index
    %c0_20 = arith.constant 0 : index
    %c4 = arith.constant 4 : index
    %23 = vector.load %arg1[%c0_19, %c0_20, %c4] : memref<1x3x512xf32, #tpu.memory_space<vmem>>, vector<1x3x384xf32>
    %24 = vector.shape_cast %23 : vector<1x3x384xf32> to vector<3x384xf32>
    %c0_21 = arith.constant 0 : index
    %c12 = arith.constant 12 : index
    %25 = vector.load %arg2[%c0_21, %c12] : memref<32x75xf32, #tpu.memory_space<vmem>>, vector<32x3xf32>
    %cst_22 = arith.constant dense<0.000000e+00> : vector<32x384xf32>
    %26 = tpu.matmul %25, %24, %cst_22 {dimension_numbers = #tpu.dot_dimension_numbers<[1], [0], [0], [1], [0, 0, 1, 1], [], []>} : vector<32x3xf32>, vector<3x384xf32>, vector<32x384xf32> -> vector<32x384xf32>
    %27 = arith.addf %22, %26 : vector<32x384xf32>
    %c0_23 = arith.constant 0 : index
    %c0_24 = arith.constant 0 : index
    %c20 = arith.constant 20 : index
    %28 = vector.load %arg1[%c0_23, %c0_24, %c20] : memref<1x3x512xf32, #tpu.memory_space<vmem>>, vector<1x3x384xf32>
    %29 = vector.shape_cast %28 : vector<1x3x384xf32> to vector<3x384xf32>
    %c0_25 = arith.constant 0 : index
    %c15 = arith.constant 15 : index
    %30 = vector.load %arg2[%c0_25, %c15] : memref<32x75xf32, #tpu.memory_space<vmem>>, vector<32x3xf32>
    %cst_26 = arith.constant dense<0.000000e+00> : vector<32x384xf32>
    %31 = tpu.matmul %30, %29, %cst_26 {dimension_numbers = #tpu.dot_dimension_numbers<[1], [0], [0], [1], [0, 0, 1, 1], [], []>} : vector<32x3xf32>, vector<3x384xf32>, vector<32x384xf32> -> vector<32x384xf32>
    %32 = arith.addf %27, %31 : vector<32x384xf32>
    %c0_27 = arith.constant 0 : index
    %c0_28 = arith.constant 0 : index
    %c21 = arith.constant 21 : index
    %33 = vector.load %arg1[%c0_27, %c0_28, %c21] : memref<1x3x512xf32, #tpu.memory_space<vmem>>, vector<1x3x384xf32>
    %34 = vector.shape_cast %33 : vector<1x3x384xf32> to vector<3x384xf32>
    %c0_29 = arith.constant 0 : index
    %c18 = arith.constant 18 : index
    %35 = vector.load %arg2[%c0_29, %c18] : memref<32x75xf32, #tpu.memory_space<vmem>>, vector<32x3xf32>
    %cst_30 = arith.constant dense<0.000000e+00> : vector<32x384xf32>
    %36 = tpu.matmul %35, %34, %cst_30 {dimension_numbers = #tpu.dot_dimension_numbers<[1], [0], [0], [1], [0, 0, 1, 1], [], []>} : vector<32x3xf32>, vector<3x384xf32>, vector<32x384xf32> -> vector<32x384xf32>
    %37 = arith.addf %32, %36 : vector<32x384xf32>
    %c0_31 = arith.constant 0 : index
    %c0_32 = arith.constant 0 : index
    %c22 = arith.constant 22 : index
    %38 = vector.load %arg1[%c0_31, %c0_32, %c22] : memref<1x3x512xf32, #tpu.memory_space<vmem>>, vector<1x3x384xf32>
    %39 = vector.shape_cast %38 : vector<1x3x384xf32> to vector<3x384xf32>
    %c0_33 = arith.constant 0 : index
    %c21_34 = arith.constant 21 : index
    %40 = vector.load %arg2[%c0_33, %c21_34] : memref<32x75xf32, #tpu.memory_space<vmem>>, vector<32x3xf32>
    %cst_35 = arith.constant dense<0.000000e+00> : vector<32x384xf32>
    %41 = tpu.matmul %40, %39, %cst_35 {dimension_numbers = #tpu.dot_dimension_numbers<[1], [0], [0], [1], [0, 0, 1, 1], [], []>} : vector<32x3xf32>, vector<3x384xf32>, vector<32x384xf32> -> vector<32x384xf32>
    %42 = arith.addf %37, %41 : vector<32x384xf32>
    %c0_36 = arith.constant 0 : index
    %c0_37 = arith.constant 0 : index
    %c23 = arith.constant 23 : index
    %43 = vector.load %arg1[%c0_36, %c0_37, %c23] : memref<1x3x512xf32, #tpu.memory_space<vmem>>, vector<1x3x384xf32>
    %44 = vector.shape_cast %43 : vector<1x3x384xf32> to vector<3x384xf32>
    %c0_38 = arith.constant 0 : index
    %c24 = arith.constant 24 : index
    %45 = vector.load %arg2[%c0_38, %c24] : memref<32x75xf32, #tpu.memory_space<vmem>>, vector<32x3xf32>
    %cst_39 = arith.constant dense<0.000000e+00> : vector<32x384xf32>
    %46 = tpu.matmul %45, %44, %cst_39 {dimension_numbers = #tpu.dot_dimension_numbers<[1], [0], [0], [1], [0, 0, 1, 1], [], []>} : vector<32x3xf32>, vector<3x384xf32>, vector<32x384xf32> -> vector<32x384xf32>
    %47 = arith.addf %42, %46 : vector<32x384xf32>
    %c0_40 = arith.constant 0 : index
    %c0_41 = arith.constant 0 : index
    %c24_42 = arith.constant 24 : index
    %48 = vector.load %arg1[%c0_40, %c0_41, %c24_42] : memref<1x3x512xf32, #tpu.memory_space<vmem>>, vector<1x3x384xf32>
    %49 = vector.shape_cast %48 : vector<1x3x384xf32> to vector<3x384xf32>
    %c0_43 = arith.constant 0 : index
    %c27 = arith.constant 27 : index
    %50 = vector.load %arg2[%c0_43, %c27] : memref<32x75xf32, #tpu.memory_space<vmem>>, vector<32x3xf32>
    %cst_44 = arith.constant dense<0.000000e+00> : vector<32x384xf32>
    %51 = tpu.matmul %50, %49, %cst_44 {dimension_numbers = #tpu.dot_dimension_numbers<[1], [0], [0], [1], [0, 0, 1, 1], [], []>} : vector<32x3xf32>, vector<3x384xf32>, vector<32x384xf32> -> vector<32x384xf32>
    %52 = arith.addf %47, %51 : vector<32x384xf32>
    %c0_45 = arith.constant 0 : index
    %c0_46 = arith.constant 0 : index
    %c40 = arith.constant 40 : index
    %53 = vector.load %arg1[%c0_45, %c0_46, %c40] : memref<1x3x512xf32, #tpu.memory_space<vmem>>, vector<1x3x384xf32>
    %54 = vector.shape_cast %53 : vector<1x3x384xf32> to vector<3x384xf32>
    %c0_47 = arith.constant 0 : index
    %c30 = arith.constant 30 : index
    %55 = vector.load %arg2[%c0_47, %c30] : memref<32x75xf32, #tpu.memory_space<vmem>>, vector<32x3xf32>
    %cst_48 = arith.constant dense<0.000000e+00> : vector<32x384xf32>
    %56 = tpu.matmul %55, %54, %cst_48 {dimension_numbers = #tpu.dot_dimension_numbers<[1], [0], [0], [1], [0, 0, 1, 1], [], []>} : vector<32x3xf32>, vector<3x384xf32>, vector<32x384xf32> -> vector<32x384xf32>
    %57 = arith.addf %52, %56 : vector<32x384xf32>
    %c0_49 = arith.constant 0 : index
    %c0_50 = arith.constant 0 : index
    %c41 = arith.constant 41 : index
    %58 = vector.load %arg1[%c0_49, %c0_50, %c41] : memref<1x3x512xf32, #tpu.memory_space<vmem>>, vector<1x3x384xf32>
    %59 = vector.shape_cast %58 : vector<1x3x384xf32> to vector<3x384xf32>
    %c0_51 = arith.constant 0 : index
    %c33 = arith.constant 33 : index
    %60 = vector.load %arg2[%c0_51, %c33] : memref<32x75xf32, #tpu.memory_space<vmem>>, vector<32x3xf32>
    %cst_52 = arith.constant dense<0.000000e+00> : vector<32x384xf32>
    %61 = tpu.matmul %60, %59, %cst_52 {dimension_numbers = #tpu.dot_dimension_numbers<[1], [0], [0], [1], [0, 0, 1, 1], [], []>} : vector<32x3xf32>, vector<3x384xf32>, vector<32x384xf32> -> vector<32x384xf32>
    %62 = arith.addf %57, %61 : vector<32x384xf32>
    %c0_53 = arith.constant 0 : index
    %c0_54 = arith.constant 0 : index
    %c42 = arith.constant 42 : index
    %63 = vector.load %arg1[%c0_53, %c0_54, %c42] : memref<1x3x512xf32, #tpu.memory_space<vmem>>, vector<1x3x384xf32>
    %64 = vector.shape_cast %63 : vector<1x3x384xf32> to vector<3x384xf32>
    %c0_55 = arith.constant 0 : index
    %c36 = arith.constant 36 : index
    %65 = vector.load %arg2[%c0_55, %c36] : memref<32x75xf32, #tpu.memory_space<vmem>>, vector<32x3xf32>
    %cst_56 = arith.constant dense<0.000000e+00> : vector<32x384xf32>
    %66 = tpu.matmul %65, %64, %cst_56 {dimension_numbers = #tpu.dot_dimension_numbers<[1], [0], [0], [1], [0, 0, 1, 1], [], []>} : vector<32x3xf32>, vector<3x384xf32>, vector<32x384xf32> -> vector<32x384xf32>
    %67 = arith.addf %62, %66 : vector<32x384xf32>
    %c0_57 = arith.constant 0 : index
    %c0_58 = arith.constant 0 : index
    %c43 = arith.constant 43 : index
    %68 = vector.load %arg1[%c0_57, %c0_58, %c43] : memref<1x3x512xf32, #tpu.memory_space<vmem>>, vector<1x3x384xf32>
    %69 = vector.shape_cast %68 : vector<1x3x384xf32> to vector<3x384xf32>
    %c0_59 = arith.constant 0 : index
    %c39 = arith.constant 39 : index
    %70 = vector.load %arg2[%c0_59, %c39] : memref<32x75xf32, #tpu.memory_space<vmem>>, vector<32x3xf32>
    %cst_60 = arith.constant dense<0.000000e+00> : vector<32x384xf32>
    %71 = tpu.matmul %70, %69, %cst_60 {dimension_numbers = #tpu.dot_dimension_numbers<[1], [0], [0], [1], [0, 0, 1, 1], [], []>} : vector<32x3xf32>, vector<3x384xf32>, vector<32x384xf32> -> vector<32x384xf32>
    %72 = arith.addf %67, %71 : vector<32x384xf32>
    %c0_61 = arith.constant 0 : index
    %c0_62 = arith.constant 0 : index
    %c44 = arith.constant 44 : index
    %73 = vector.load %arg1[%c0_61, %c0_62, %c44] : memref<1x3x512xf32, #tpu.memory_space<vmem>>, vector<1x3x384xf32>
    %74 = vector.shape_cast %73 : vector<1x3x384xf32> to vector<3x384xf32>
    %c0_63 = arith.constant 0 : index
    %c42_64 = arith.constant 42 : index
    %75 = vector.load %arg2[%c0_63, %c42_64] : memref<32x75xf32, #tpu.memory_space<vmem>>, vector<32x3xf32>
    %cst_65 = arith.constant dense<0.000000e+00> : vector<32x384xf32>
    %76 = tpu.matmul %75, %74, %cst_65 {dimension_numbers = #tpu.dot_dimension_numbers<[1], [0], [0], [1], [0, 0, 1, 1], [], []>} : vector<32x3xf32>, vector<3x384xf32>, vector<32x384xf32> -> vector<32x384xf32>
    %77 = arith.addf %72, %76 : vector<32x384xf32>
    %c0_66 = arith.constant 0 : index
    %c0_67 = arith.constant 0 : index
    %c60 = arith.constant 60 : index
    %78 = vector.load %arg1[%c0_66, %c0_67, %c60] : memref<1x3x512xf32, #tpu.memory_space<vmem>>, vector<1x3x384xf32>
    %79 = vector.shape_cast %78 : vector<1x3x384xf32> to vector<3x384xf32>
    %c0_68 = arith.constant 0 : index
    %c45 = arith.constant 45 : index
    %80 = vector.load %arg2[%c0_68, %c45] : memref<32x75xf32, #tpu.memory_space<vmem>>, vector<32x3xf32>
    %cst_69 = arith.constant dense<0.000000e+00> : vector<32x384xf32>
    %81 = tpu.matmul %80, %79, %cst_69 {dimension_numbers = #tpu.dot_dimension_numbers<[1], [0], [0], [1], [0, 0, 1, 1], [], []>} : vector<32x3xf32>, vector<3x384xf32>, vector<32x384xf32> -> vector<32x384xf32>
    %82 = arith.addf %77, %81 : vector<32x384xf32>
    %c0_70 = arith.constant 0 : index
    %c0_71 = arith.constant 0 : index
    %c61 = arith.constant 61 : index
    %83 = vector.load %arg1[%c0_70, %c0_71, %c61] : memref<1x3x512xf32, #tpu.memory_space<vmem>>, vector<1x3x384xf32>
    %84 = vector.shape_cast %83 : vector<1x3x384xf32> to vector<3x384xf32>
    %c0_72 = arith.constant 0 : index
    %c48 = arith.constant 48 : index
    %85 = vector.load %arg2[%c0_72, %c48] : memref<32x75xf32, #tpu.memory_space<vmem>>, vector<32x3xf32>
    %cst_73 = arith.constant dense<0.000000e+00> : vector<32x384xf32>
    %86 = tpu.matmul %85, %84, %cst_73 {dimension_numbers = #tpu.dot_dimension_numbers<[1], [0], [0], [1], [0, 0, 1, 1], [], []>} : vector<32x3xf32>, vector<3x384xf32>, vector<32x384xf32> -> vector<32x384xf32>
    %87 = arith.addf %82, %86 : vector<32x384xf32>
    %c0_74 = arith.constant 0 : index
    %c0_75 = arith.constant 0 : index
    %c62 = arith.constant 62 : index
    %88 = vector.load %arg1[%c0_74, %c0_75, %c62] : memref<1x3x512xf32, #tpu.memory_space<vmem>>, vector<1x3x384xf32>
    %89 = vector.shape_cast %88 : vector<1x3x384xf32> to vector<3x384xf32>
    %c0_76 = arith.constant 0 : index
    %c51 = arith.constant 51 : index
    %90 = vector.load %arg2[%c0_76, %c51] : memref<32x75xf32, #tpu.memory_space<vmem>>, vector<32x3xf32>
    %cst_77 = arith.constant dense<0.000000e+00> : vector<32x384xf32>
    %91 = tpu.matmul %90, %89, %cst_77 {dimension_numbers = #tpu.dot_dimension_numbers<[1], [0], [0], [1], [0, 0, 1, 1], [], []>} : vector<32x3xf32>, vector<3x384xf32>, vector<32x384xf32> -> vector<32x384xf32>
    %92 = arith.addf %87, %91 : vector<32x384xf32>
    %c0_78 = arith.constant 0 : index
    %c0_79 = arith.constant 0 : index
    %c63 = arith.constant 63 : index
    %93 = vector.load %arg1[%c0_78, %c0_79, %c63] : memref<1x3x512xf32, #tpu.memory_space<vmem>>, vector<1x3x384xf32>
    %94 = vector.shape_cast %93 : vector<1x3x384xf32> to vector<3x384xf32>
    %c0_80 = arith.constant 0 : index
    %c54 = arith.constant 54 : index
    %95 = vector.load %arg2[%c0_80, %c54] : memref<32x75xf32, #tpu.memory_space<vmem>>, vector<32x3xf32>
    %cst_81 = arith.constant dense<0.000000e+00> : vector<32x384xf32>
    %96 = tpu.matmul %95, %94, %cst_81 {dimension_numbers = #tpu.dot_dimension_numbers<[1], [0], [0], [1], [0, 0, 1, 1], [], []>} : vector<32x3xf32>, vector<3x384xf32>, vector<32x384xf32> -> vector<32x384xf32>
    %97 = arith.addf %92, %96 : vector<32x384xf32>
    %c0_82 = arith.constant 0 : index
    %c0_83 = arith.constant 0 : index
    %c64 = arith.constant 64 : index
    %98 = vector.load %arg1[%c0_82, %c0_83, %c64] : memref<1x3x512xf32, #tpu.memory_space<vmem>>, vector<1x3x384xf32>
    %99 = vector.shape_cast %98 : vector<1x3x384xf32> to vector<3x384xf32>
    %c0_84 = arith.constant 0 : index
    %c57 = arith.constant 57 : index
    %100 = vector.load %arg2[%c0_84, %c57] : memref<32x75xf32, #tpu.memory_space<vmem>>, vector<32x3xf32>
    %cst_85 = arith.constant dense<0.000000e+00> : vector<32x384xf32>
    %101 = tpu.matmul %100, %99, %cst_85 {dimension_numbers = #tpu.dot_dimension_numbers<[1], [0], [0], [1], [0, 0, 1, 1], [], []>} : vector<32x3xf32>, vector<3x384xf32>, vector<32x384xf32> -> vector<32x384xf32>
    %102 = arith.addf %97, %101 : vector<32x384xf32>
    %c0_86 = arith.constant 0 : index
    %c0_87 = arith.constant 0 : index
    %c80 = arith.constant 80 : index
    %103 = vector.load %arg1[%c0_86, %c0_87, %c80] : memref<1x3x512xf32, #tpu.memory_space<vmem>>, vector<1x3x384xf32>
    %104 = vector.shape_cast %103 : vector<1x3x384xf32> to vector<3x384xf32>
    %c0_88 = arith.constant 0 : index
    %c60_89 = arith.constant 60 : index
    %105 = vector.load %arg2[%c0_88, %c60_89] : memref<32x75xf32, #tpu.memory_space<vmem>>, vector<32x3xf32>
    %cst_90 = arith.constant dense<0.000000e+00> : vector<32x384xf32>
    %106 = tpu.matmul %105, %104, %cst_90 {dimension_numbers = #tpu.dot_dimension_numbers<[1], [0], [0], [1], [0, 0, 1, 1], [], []>} : vector<32x3xf32>, vector<3x384xf32>, vector<32x384xf32> -> vector<32x384xf32>
    %107 = arith.addf %102, %106 : vector<32x384xf32>
    %c0_91 = arith.constant 0 : index
    %c0_92 = arith.constant 0 : index
    %c81 = arith.constant 81 : index
    %108 = vector.load %arg1[%c0_91, %c0_92, %c81] : memref<1x3x512xf32, #tpu.memory_space<vmem>>, vector<1x3x384xf32>
    %109 = vector.shape_cast %108 : vector<1x3x384xf32> to vector<3x384xf32>
    %c0_93 = arith.constant 0 : index
    %c63_94 = arith.constant 63 : index
    %110 = vector.load %arg2[%c0_93, %c63_94] : memref<32x75xf32, #tpu.memory_space<vmem>>, vector<32x3xf32>
    %cst_95 = arith.constant dense<0.000000e+00> : vector<32x384xf32>
    %111 = tpu.matmul %110, %109, %cst_95 {dimension_numbers = #tpu.dot_dimension_numbers<[1], [0], [0], [1], [0, 0, 1, 1], [], []>} : vector<32x3xf32>, vector<3x384xf32>, vector<32x384xf32> -> vector<32x384xf32>
    %112 = arith.addf %107, %111 : vector<32x384xf32>
    %c0_96 = arith.constant 0 : index
    %c0_97 = arith.constant 0 : index
    %c82 = arith.constant 82 : index
    %113 = vector.load %arg1[%c0_96, %c0_97, %c82] : memref<1x3x512xf32, #tpu.memory_space<vmem>>, vector<1x3x384xf32>
    %114 = vector.shape_cast %113 : vector<1x3x384xf32> to vector<3x384xf32>
    %c0_98 = arith.constant 0 : index
    %c66 = arith.constant 66 : index
    %115 = vector.load %arg2[%c0_98, %c66] : memref<32x75xf32, #tpu.memory_space<vmem>>, vector<32x3xf32>
    %cst_99 = arith.constant dense<0.000000e+00> : vector<32x384xf32>
    %116 = tpu.matmul %115, %114, %cst_99 {dimension_numbers = #tpu.dot_dimension_numbers<[1], [0], [0], [1], [0, 0, 1, 1], [], []>} : vector<32x3xf32>, vector<3x384xf32>, vector<32x384xf32> -> vector<32x384xf32>
    %117 = arith.addf %112, %116 : vector<32x384xf32>
    %c0_100 = arith.constant 0 : index
    %c0_101 = arith.constant 0 : index
    %c83 = arith.constant 83 : index
    %118 = vector.load %arg1[%c0_100, %c0_101, %c83] : memref<1x3x512xf32, #tpu.memory_space<vmem>>, vector<1x3x384xf32>
    %119 = vector.shape_cast %118 : vector<1x3x384xf32> to vector<3x384xf32>
    %c0_102 = arith.constant 0 : index
    %c69 = arith.constant 69 : index
    %120 = vector.load %arg2[%c0_102, %c69] : memref<32x75xf32, #tpu.memory_space<vmem>>, vector<32x3xf32>
    %cst_103 = arith.constant dense<0.000000e+00> : vector<32x384xf32>
    %121 = tpu.matmul %120, %119, %cst_103 {dimension_numbers = #tpu.dot_dimension_numbers<[1], [0], [0], [1], [0, 0, 1, 1], [], []>} : vector<32x3xf32>, vector<3x384xf32>, vector<32x384xf32> -> vector<32x384xf32>
    %122 = arith.addf %117, %121 : vector<32x384xf32>
    %c0_104 = arith.constant 0 : index
    %c0_105 = arith.constant 0 : index
    %c84 = arith.constant 84 : index
    %123 = vector.load %arg1[%c0_104, %c0_105, %c84] : memref<1x3x512xf32, #tpu.memory_space<vmem>>, vector<1x3x384xf32>
    %124 = vector.shape_cast %123 : vector<1x3x384xf32> to vector<3x384xf32>
    %c0_106 = arith.constant 0 : index
    %c72 = arith.constant 72 : index
    %125 = vector.load %arg2[%c0_106, %c72] : memref<32x75xf32, #tpu.memory_space<vmem>>, vector<32x3xf32>
    %cst_107 = arith.constant dense<0.000000e+00> : vector<32x384xf32>
    %126 = tpu.matmul %125, %124, %cst_107 {dimension_numbers = #tpu.dot_dimension_numbers<[1], [0], [0], [1], [0, 0, 1, 1], [], []>} : vector<32x3xf32>, vector<3x384xf32>, vector<32x384xf32> -> vector<32x384xf32>
    %127 = arith.addf %122, %126 : vector<32x384xf32>
    %c0_108 = arith.constant 0 : index
    %c0_109 = arith.constant 0 : index
    %c0_110 = arith.constant 0 : index
    %128 = vector.load %arg4[%c0_108, %c0_109, %c0_110] : memref<1x32x384xf32, #tpu.memory_space<vmem>>, vector<1x32x384xf32>
    %129 = vector.shape_cast %128 : vector<1x32x384xf32> to vector<32x384xf32>
    %130 = vector.shape_cast %127 : vector<32x384xf32> to vector<1x32x384xf32>
    tpu.vector_store %arg4[%c0_108, %c0_109, %c0_110], %130 {strides = array<i32>} : memref<1x32x384xf32, #tpu.memory_space<vmem>>, vector<1x32x384xf32>,
    return
  }
  func.func @transform_0(%arg0: i32) -> (i32, i32, i32) {
    %c0_i32 = arith.constant 0 : i32
    %c0_i32_0 = arith.constant 0 : i32
    %c0_i32_1 = arith.constant 0 : i32
    return %arg0, %c0_i32, %c0_i32_0 : i32, i32, i32
  }
  func.func @transform_1(%arg0: i32) -> (i32, i32) {
    %c0_i32 = arith.constant 0 : i32
    %c0_i32_0 = arith.constant 0 : i32
    %c0_i32_1 = arith.constant 0 : i32
    return %c0_i32, %c0_i32_0 : i32, i32
  }
  func.func @transform_2(%arg0: i32) -> (i32, i32) {
    %c0_i32 = arith.constant 0 : i32
    %c0_i32_0 = arith.constant 0 : i32
    %c0_i32_1 = arith.constant 0 : i32
    return %c0_i32, %c0_i32_0 : i32, i32
  }
  func.func @transform_3(%arg0: i32) -> (i32, i32, i32) {
    %c0_i32 = arith.constant 0 : i32
    %c0_i32_0 = arith.constant 0 : i32
    %c0_i32_1 = arith.constant 0 : i32
    return %arg0, %c0_i32, %c0_i32_0 : i32, i32, i32
  }
}

</mosaic_0001>

<bundles_post_ra>
// kernel: tpu_custom_call.1
= control target key start
LH: loop header
LB: loop body
LE: loop exit
PB: predicated region body
PF: predicated region fallthrough
CT: control target
= control target key end

     0   :  { %8 = vsyncpa [#allocation3], 0  ;;  %s8602_s0 = inlined_call_operand.vmem [shape: f32[2,3,512], index: 0, kind: input, shape index: {}]   ;;  %s8603_s1 = inlined_call_operand.vmem [shape: f32[32,75], index: 1, kind: input, shape index: {}]   ;;  %s8604_s2 = inlined_call_operand.vmem [shape: f32[32,1], index: 2, kind: input, shape index: {}]   ;;  %s8605_s3 = inlined_call_operand.hbm [shape: f32[2,32,384], index: 3, kind: output, shape index: {}]  }
   0x1   :  { %10 = vsyncpa [#allocation3 + $0x1], 0  ;;  %s6991_s12 = smov 0   ;;  %s6993_s13 = smov 0  }
   0x2   :  { %s6995_s14 = smov 0   ;;  %s6997_s15 = smov 0  }
   0x3 LB: > { %s7012_s16 = sadd.s32 4294967295, %s6922_s15   ;;  %s6112_s17 = sadd.s32 4294967294, %s6922_s15   ;;  %s6922_s15 = sphi %s6997_s15, %s8864_s15   ;;  %s6918_s14 = sphi %s6995_s14, %s8863_s14   ;;  %s6914_s13 = sphi %s6993_s13, %s8862_s13   ;;  %s6910_s12 = sphi %s6991_s12, %s8861_s12  }
   0x4   : > { %s7016_s18 = sadd.s32 1, %s6922_s15   ;;  %s91_s19 = sadd.s32 1, %s6918_s14 }
   0x5   : > { %s88_s20 = ssub.s32 %s6922_s15, %s7016_s18  ;;  %p101_p0 = scmp.ne.s32.totalorder %s6918_s14, %s6914_s13 }
   0x6   : > { %p89_p1 = scmp.eq.s32.totalorder %s88_s20, 0  ;;  %p102_p2 = scmp.eq.s32.totalorder %s7012_s16, 1 }
   0x7   : > { %p107_p3 = scmp.ne.s32.totalorder %s6914_s13, %s6910_s12  ;;  %p108_p4 = scmp.eq.s32.totalorder %s6112_s17, 1 }
   0x8   : > { %s7027_s21 = scalar_select %p89_p1, %s6918_s14, %s91_s19  }
   0x9   : > { %p7029_p5 = por %p102_p2, %p101_p0  ;;  %p7033_p6 = por %p108_p4, %p107_p3 }
   0xa   : > { %p6115_p7 = scmp.ge.s32.totalorder %s6922_s15, 1  ;;  %p140_p8 = scmp.lt.s32.totalorder %s6922_s15, 3 }
   0xc   : > { %p141_p9 = pnand %p6115_p7, %p140_p8 }
   0xe   : > { %144 = sbr.rel (%p141_p9) target bundleno = 739 (0x2e3), region = 32 }
  0x13   : > { %p164_p10 = scmp.lt.s32.totalorder %s7012_s16, 1  ;;  %v8606_v0 = vmov 0.0   ;;  %s6925_s29 = smov 127   ;;  %v7053_v3 = vld [vmem:[%s8603_s1] sm:$0xff]  ;;  %v7058_v4 = vld [vmem:[%s8603_s1 + $0x8] sm:$0xff]  ;;  %vm215_vm0 = vcmask 1042432  }
  0x14   : > { %286 = vmatprep.mubr.f32.mxu0 %v8606_v0  ;;  %304 = vmatprep.mubr.f32.mxu1 %v8606_v0  ;;  %s6926_s7 = smov 125   ;;  %vm202_vm1 = vcmask 23552   ;;  %v7068_v9 = vld [vmem:[%s8603_s1 + $0x18] sm:$0xff]  ;;  %v7073_v10 = vld [vmem:[%s8603_s1 + $0x10] sm:$0xff]  ;;  %s6927_s17 = smov 126   ;;  %vm438_vm2 = vcmask 1039360  }
  0x15   : > { %s165_s24 = scalar_select %p164_p10, %s7012_s16, 1  ;;  %vm672_vm3 = vcmask 1031168   ;;  %vm906_vm4 = vcmask 1022976   ;;  %vm1140_vm5 = vcmask 1014784   ;;  %vm1374_vm6 = vcmask 883712  }
  0x16   : > { %s6928_s19 = smov 122   ;;  %s6929_s20 = smov 119   ;;  %vm1608_vm7 = vcmask 875520   ;;  %vm1842_vm8 = vcmask 867328   ;;  %vm2076_vm9 = vcmask 859136   ;;  %vm2310_vm10 = vcmask 850944  }
  0x17   : > { %s6396_s25 = sshll.u32 %s165_s24, 4  ;;  %s6930_s24 = smov 124   ;;  %vm2544_vm11 = vcmask 719872   ;;  %vm2778_vm12 = vcmask 711680   ;;  %vm3012_vm13 = vcmask 703488   ;;  %vm3246_vm14 = vcmask 695296  }
  0x18   : > { %s7046_s28 = scalar_lea.vmem %s8602_s0, %s6396_s25  ;;  %s6931_s25 = smov 116   ;;  %vm3480_vm15 = vcmask 687104  }
  0x19   : > { %v409_v1 = vld [vmem:[%s7046_s28 + $0x8] sm:$0x77]  ;;  %v408_v2 = vld [vmem:[%s7046_s28] sm:$0x77]  ;;  %s6932_s26 = smov 108   ;;  %s6933_s27 = smov 113  }
  0x1a   : > { %434 = vrot.lane.b32.xlu0 %v409_v1, %s6925_s29  ;;  %430 = vrot.lane.b32.xlu1 %v408_v2, %s6925_s29  ;;  %v429_v5 = vcombine.high %v409_v1, %v409_v1  ;;  %v428_v6 = vcombine.high %v408_v2, %v408_v2  ;;  %v193_v7 = vld [vmem:[%s7046_s28] sm:$0x77]  ;;  %v194_v12 = vld [vmem:[%s7046_s28 + $0x8] sm:$0x7]  ;;  %s6935_s30 = smov 110   ;;  %s6936_s4 = smov 106  }
  0x1b   : > { %v201_v8 = vcombine.high %v193_v7, %v193_v7  ;;  %v642_v11 = vld [vmem:[%s7046_s28] sm:$0x77]  ;;  %v643_v14 = vld [vmem:[%s7046_s28 + $0x8] sm:$0x77]  ;;  %s6937_s5 = smov 105   ;;  %s6938_s6 = smov 104  }
  0x1c   : > { %v662_v13 = vcombine.high %v642_v11, %v642_v11  ;;  %v663_v15 = vcombine.high %v643_v14, %v643_v14  ;;  %v876_v16 = vld [vmem:[%s7046_s28] sm:$0x77]  ;;  %v877_v18 = vld [vmem:[%s7046_s28 + $0x8] sm:$0x77]  ;;  %s6940_s8 = smov 88   ;;  %s6941_s9 = smov 98  }
  0x1d   : > { %6118 = vmatprep.subr.msk.mxu0 %vm215_vm0, %v201_v8  ;;  %6722 = vmatprep.subr.msk.mxu1 %vm215_vm0, %v201_v8  ;;  %v896_v17 = vcombine.high %v876_v16, %v876_v16  ;;  %v897_v19 = vcombine.high %v877_v18, %v877_v18  ;;  %v1110_v20 = vld [vmem:[%s7046_s28] sm:$0x77]  ;;  %v1111_v22 = vld [vmem:[%s7046_s28 + $0x8] sm:$0x77]  ;;  %s6942_s10 = smov 87   ;;  %s6943_s11 = smov 95  }
  0x1e   : > { %418 = vrot.lane.b32.xlu0 %v7053_v3, %s6926_s7  ;;  %420 = vrot.lane.b32.xlu1 %v7058_v4, %s6926_s7  ;;  %v1130_v21 = vcombine.high %v1110_v20, %v1110_v20  ;;  %v1131_v23 = vcombine.high %v1111_v22, %v1111_v22  ;;  %v1344_v24 = vld [vmem:[%s7046_s28] sm:$0x77]  ;;  %v1345_v26 = vld [vmem:[%s7046_s28 + $0x8] sm:$0x77] }
  0x1f   : > { %6119 = vmatpush1.msk.msra.mxu0 %vm215_vm0, %v193_v7  ;;  %6723 = vmatpush1.msk.msra.mxu1 %vm215_vm0, %v193_v7  ;;  %v1364_v25 = vcombine.high %v1344_v24, %v1344_v24  ;;  %v1365_v27 = vcombine.high %v1345_v26, %v1345_v26  ;;  %v1578_v28 = vld [vmem:[%s7046_s28] sm:$0x77]  ;;  %v1579_v30 = vld [vmem:[%s7046_s28 + $0x8] sm:$0x77] }
  0x20   : > { %6120 = vmatmul.mubr.msk.f32.vlgmr.msra.gmra.mxu0 %vm202_vm1, %v7053_v3  ;;  %6123 = vmatmul.mubr.msk.f32.vlgmr.msra.gmra.mxu1 %vm202_vm1, %v7068_v9  ;;  %v1598_v29 = vcombine.high %v1578_v28, %v1578_v28  ;;  %v1599_v31 = vcombine.high %v1579_v30, %v1579_v30  ;;  %v1812_v32 = vld [vmem:[%s7046_s28] sm:$0x77]  ;;  %v1813_v34 = vld [vmem:[%s7046_s28 + $0x8] sm:$0x77] }
  0x21   : > { %6522 = vmatprep.subr.msk.mxu1 %vm215_vm0, %v194_v12  ;;  %292 = vmatprep.mubr.f32.mxu0 %v8606_v0  ;;  %v1832_v33 = vcombine.high %v1812_v32, %v1812_v32  ;;  %v1833_v35 = vcombine.high %v1813_v34, %v1813_v34  ;;  %v2046_v36 = vld [vmem:[%s7046_s28] sm:$0x77]  ;;  %v2047_v38 = vld [vmem:[%s7046_s28 + $0x8] sm:$0x77] }
  0x22   : > { %436 = vrot.lane.b32.xlu1 %v429_v5, %s6925_s29  ;;  %432 = vrot.lane.b32.xlu0 %v428_v6, %s6925_s29  ;;  %s6934_s29 = smov 107   ;;  %v2066_v37 = vcombine.high %v2046_v36, %v2046_v36  ;;  %v2067_v41 = vcombine.high %v2047_v38, %v2047_v38  ;;  %v2280_v44 = vld [vmem:[%s7046_s28] sm:$0x77]  ;;  %v2281_v51 = vld [vmem:[%s7046_s28 + $0x8] sm:$0x77] }
  0x23   : > { %6523 = vmatpush3.msk.msra.mxu1 %vm215_vm0, %v194_v12  ;;  %6524 = vmatprep.mubr.msk.f32.mxu1 %vm202_vm1, %v7053_v3  ;;  %v2300_v50 = vcombine.high %v2280_v44, %v2280_v44  ;;  %v2301_v54 = vcombine.high %v2281_v51, %v2281_v51  ;;  %v2514_v63 = vld [vmem:[%s7046_s28] sm:$0x77]  ;;  %v2515_v2 = vld [vmem:[%s7046_s28 + $0x8] sm:$0x77] }
  0x24   : > { %6121 = vmatmul.mubr.msk.f32.gmra.mxu0 %vm202_vm1, %v7058_v4  ;;  %6525 = vmatmul.mubr.msk.f32.vlgmr.msra.gmra.mxu1 %vm202_vm1, %v7058_v4  ;;  %v2534_v5 = vcombine.high %v2514_v63, %v2514_v63 }
  0x25   : > { %298 = vmatprep.mubr.f32.mxu0 %v8606_v0  ;;  %6527 = vmatprep.mubr.msk.f32.mxu1 %vm202_vm1, %v7073_v10 }
  0x26   : > { %424 = vrot.lane.b32.xlu1 %v7068_v9, %s6926_s7  ;;  %422 = vrot.lane.b32.xlu0 %v7073_v10, %s6926_s7 }
  0x28   : > { %6122 = vmatmul.mubr.msk.f32.gmra.mxu0 %vm202_vm1, %v7073_v10  ;;  %6528 = vmatmul.mubr.msk.f32.gmra.mxu1 %vm202_vm1, %v7068_v9 }
  0x29   : > { %520 = vmatprep.mubr.f32.mxu1 %v8606_v0 }
  0x2a   : > { %668 = vrot.lane.b32.xlu1 %v643_v14, %s6927_s17  ;;  %666 = vrot.lane.b32.xlu0 %v662_v13, %s6927_s17  ;;  %v2535_v13 = vcombine.high %v2515_v2, %v2515_v2 }
  0x2e   : > { %652 = vrot.lane.b32.xlu1 %v7053_v3, %s6928_s19  ;;  %664 = vrot.lane.b32.xlu0 %v642_v11, %s6927_s17 }
  0x32   : > { %670 = vrot.lane.b32.xlu1 %v663_v15, %s6927_s17  ;;  %654 = vrot.lane.b32.xlu0 %v7058_v4, %s6928_s19  ;;  %s6944_s17 = smov 86  }
  0x36   : > { %658 = vrot.lane.b32.xlu1 %v7068_v9, %s6928_s19  ;;  %656 = vrot.lane.b32.xlu0 %v7073_v10, %s6928_s19  ;;  %s6945_s19 = smov 92  }
  0x3a   : > { %902 = vrot.lane.b32.xlu1 %v877_v18, %s6926_s7  ;;  %900 = vrot.lane.b32.xlu0 %v896_v17, %s6926_s7 }
  0x3e   : > { %898 = vrot.lane.b32.xlu1 %v876_v16, %s6926_s7  ;;  %904 = vrot.lane.b32.xlu0 %v897_v19, %s6926_s7  ;;  %s6939_s7 = smov 101  }
  0x42   : > { %888 = vrot.lane.b32.xlu1 %v7058_v4, %s6929_s20  ;;  %886 = vrot.lane.b32.xlu0 %v7053_v3, %s6929_s20 }
  0x46   : > { %892 = vrot.lane.b32.xlu1 %v7068_v9, %s6929_s20  ;;  %890 = vrot.lane.b32.xlu0 %v7073_v10, %s6929_s20  ;;  %s6946_s20 = smov 85  }
  0x4a   : > { %1136 = vrot.lane.b32.xlu1 %v1111_v22, %s6930_s24  ;;  %1134 = vrot.lane.b32.xlu0 %v1130_v21, %s6930_s24  ;;  %v2749_v21 = vld [vmem:[%s7046_s28 + $0x8] sm:$0x77] }
  0x4e   : > { %1120 = vrot.lane.b32.xlu1 %v7053_v3, %s6931_s25  ;;  %1132 = vrot.lane.b32.xlu0 %v1110_v20, %s6930_s24  ;;  %v2748_v20 = vld [vmem:[%s7046_s28] sm:$0x77] }
  0x4f   : > { %v2768_v22 = vcombine.high %v2748_v20, %v2748_v20 }
  0x52   : > { %1138 = vrot.lane.b32.xlu1 %v1131_v23, %s6930_s24  ;;  %1122 = vrot.lane.b32.xlu0 %v7058_v4, %s6931_s25  ;;  %s6947_s24 = smov 89  }
  0x56   : > { %1126 = vrot.lane.b32.xlu1 %v7068_v9, %s6931_s25  ;;  %1124 = vrot.lane.b32.xlu0 %v7073_v10, %s6931_s25  ;;  %s6948_s25 = smov 84  }
  0x5a   : > { %1370 = vrot.lane.b32.xlu1 %v1345_v26, %s6932_s26  ;;  %1368 = vrot.lane.b32.xlu0 %v1364_v25, %s6932_s26  ;;  %v2769_v25 = vcombine.high %v2749_v21, %v2749_v21 }
  0x5e   : > { %1366 = vrot.lane.b32.xlu1 %v1344_v24, %s6932_s26  ;;  %1372 = vrot.lane.b32.xlu0 %v1365_v27, %s6932_s26  ;;  %s6949_s26 = smov 68  }
  0x62   : > { %1356 = vrot.lane.b32.xlu1 %v7058_v4, %s6933_s27  ;;  %1354 = vrot.lane.b32.xlu0 %v7053_v3, %s6933_s27 }
  0x66   : > { %1360 = vrot.lane.b32.xlu1 %v7068_v9, %s6933_s27  ;;  %1358 = vrot.lane.b32.xlu0 %v7073_v10, %s6933_s27  ;;  %s6950_s27 = smov 83  }
  0x6a   : > { %1604 = vrot.lane.b32.xlu1 %v1579_v30, %s6934_s29  ;;  %1602 = vrot.lane.b32.xlu0 %v1598_v29, %s6934_s29 }
  0x6e   : > { %1588 = vrot.lane.b32.xlu1 %v7053_v3, %s6935_s30  ;;  %1600 = vrot.lane.b32.xlu0 %v1578_v28, %s6934_s29 }
  0x72   : > { %1606 = vrot.lane.b32.xlu1 %v1599_v31, %s6934_s29  ;;  %1590 = vrot.lane.b32.xlu0 %v7058_v4, %s6935_s30 }
  0x76   : > { %1594 = vrot.lane.b32.xlu1 %v7068_v9, %s6935_s30  ;;  %1592 = vrot.lane.b32.xlu0 %v7073_v10, %s6935_s30  ;;  %s6961_s30 = smov 47  }
  0x7a   : > { %1838 = vrot.lane.b32.xlu1 %v1813_v34, %s6936_s4  ;;  %1836 = vrot.lane.b32.xlu0 %v1832_v33, %s6936_s4  ;;  %v2982_v34 = vld [vmem:[%s7046_s28] sm:$0x77] }
  0x7e   : > { %1834 = vrot.lane.b32.xlu1 %v1812_v32, %s6936_s4  ;;  %1840 = vrot.lane.b32.xlu0 %v1833_v35, %s6936_s4  ;;  %s6963_s4 = smov 62  }
  0x82   : > { %1824 = vrot.lane.b32.xlu1 %v7058_v4, %s6934_s29  ;;  %1822 = vrot.lane.b32.xlu0 %v7053_v3, %s6934_s29 }
  0x86   : > { %1828 = vrot.lane.b32.xlu1 %v7068_v9, %s6934_s29  ;;  %1826 = vrot.lane.b32.xlu0 %v7073_v10, %s6934_s29  ;;  %s6951_s29 = smov 67  }
  0x8a   : > { %2072 = vrot.lane.b32.xlu1 %v2047_v38, %s6937_s5  ;;  %2070 = vrot.lane.b32.xlu0 %v2066_v37, %s6937_s5  ;;  %v3002_v37 = vcombine.high %v2982_v34, %v2982_v34 }
  0x8c   : > { %v435_v39 = vpop.permute.xlu0 %434  ;;  %v431_v40 = vpop.permute.xlu1 %430 }
  0x8e   : > { %2056 = vrot.lane.b32.xlu1 %v7053_v3, %s6938_s6  ;;  %2068 = vrot.lane.b32.xlu0 %v2046_v36, %s6937_s5  ;;  %v2983_v36 = vld [vmem:[%s7046_s28 + $0x8] sm:$0x77] }
  0x90   : > { %v419_v42 = vpop.permute.xlu0 %418  ;;  %v421_v43 = vpop.permute.xlu1 %420 }
  0x91   : > { %6532 = vmatprep.mubr.msk.f32.mxu0 %vm202_vm1, %v419_v42 }
  0x92   : > { %2074 = vrot.lane.b32.xlu1 %v2067_v41, %s6937_s5  ;;  %2058 = vrot.lane.b32.xlu0 %v7058_v4, %s6938_s6  ;;  %s6952_s5 = smov 80  }
  0x94   : > { %v437_v45 = vpop.permute.xlu1 %436  ;;  %v433_v46 = vpop.permute.xlu0 %432 }
  0x95   : > { %v441_v47 = vsel %vm438_vm2, %v435_v39, %v437_v45  ;;  %v439_v48 = vsel %vm438_vm2, %v431_v40, %v433_v46  ;;  %v440_v49 = vsel %vm438_vm2, %v433_v46, %v435_v39  ;;  %vm3714_vm2 = vcmask 556032  }
  0x96   : > { %2062 = vrot.lane.b32.xlu1 %v7068_v9, %s6938_s6  ;;  %2060 = vrot.lane.b32.xlu0 %v7073_v10, %s6938_s6 }
  0x97   : > { %6129 = vmatprep.subr.msk.mxu1 %vm215_vm0, %v440_v49  ;;  %6530 = vmatprep.subr.msk.mxu0 %vm215_vm0, %v441_v47 }
  0x98   : > { %6130 = vmatpush1.msk.msra.mxu1 %vm215_vm0, %v439_v48  ;;  %6531 = vmatpush3.msk.msra.mxu0 %vm215_vm0, %v441_v47  ;;  %v425_v52 = vpop.permute.xlu1 %424  ;;  %v423_v53 = vpop.permute.xlu0 %422 }
  0x99   : > { %6131 = vmatmul.mubr.msk.f32.vlgmr.msra.gmra.mxu1 %vm202_vm1, %v419_v42  ;;  %6533 = vmatmul.mubr.msk.f32.vlgmr.msra.gmra.mxu0 %vm202_vm1, %v421_v43 }
  0x9a   : > { %2306 = vrot.lane.b32.xlu1 %v2281_v51, %s6938_s6  ;;  %2304 = vrot.lane.b32.xlu0 %v2300_v50, %s6938_s6  ;;  %v3216_v50 = vld [vmem:[%s7046_s28] sm:$0x77]  ;;  %v3217_v51 = vld [vmem:[%s7046_s28 + $0x8] sm:$0x77] }
  0x9b   : > { %526 = vmatprep.mubr.f32.mxu1 %v8606_v0  ;;  %6535 = vmatprep.mubr.msk.f32.mxu0 %vm202_vm1, %v423_v53 }
  0x9c   : > { %v669_v55 = vpop.permute.xlu1 %668  ;;  %v667_v56 = vpop.permute.xlu0 %666 }
  0x9d   : > { %6132 = vmatmul.mubr.msk.f32.gmra.mxu1 %vm202_vm1, %v421_v43  ;;  %6536 = vmatmul.mubr.msk.f32.gmra.mxu0 %vm202_vm1, %v425_v52  ;;  %v674_v57 = vsel %vm672_vm3, %v667_v56, %v669_v55  ;;  %v3003_v43 = vcombine.high %v2983_v36, %v2983_v36 }
  0x9e   : > { %2302 = vrot.lane.b32.xlu1 %v2280_v44, %s6938_s6  ;;  %2308 = vrot.lane.b32.xlu0 %v2301_v54, %s6938_s6  ;;  %s6965_s6 = smov 59  }
  0x9f   : > { %6140 = vmatprep.subr.msk.mxu0 %vm215_vm0, %v674_v57  ;;  %532 = vmatprep.mubr.f32.mxu1 %v8606_v0 }
  0xa0   : > { %v653_v58 = vpop.permute.xlu1 %652  ;;  %v665_v59 = vpop.permute.xlu0 %664  ;;  %754 = vmatprep.mubr.f32.mxu0 %v8606_v0 }
  0xa1   : > { %v673_v60 = vsel %vm672_vm3, %v665_v59, %v667_v56  ;;  %6133 = vmatmul.mubr.msk.f32.gmra.mxu1 %vm202_vm1, %v423_v53 }
  0xa2   : > { %2292 = vrot.lane.b32.xlu1 %v7058_v4, %s6939_s7  ;;  %2290 = vrot.lane.b32.xlu0 %v7053_v3, %s6939_s7 }
  0xa3   : > { %6141 = vmatpush1.msk.msra.mxu0 %vm215_vm0, %v673_v60  ;;  %538 = vmatprep.mubr.f32.mxu1 %v8606_v0 }
  0xa4   : > { %6142 = vmatmul.mubr.msk.f32.vlgmr.msra.gmra.mxu0 %vm202_vm1, %v653_v58  ;;  %v671_v61 = vpop.permute.xlu1 %670  ;;  %v655_v62 = vpop.permute.xlu0 %654 }
  0xa5   : > { %v675_v1 = vsel %vm672_vm3, %v669_v55, %v671_v61  ;;  %6134 = vmatmul.mubr.msk.f32.gmra.mxu1 %vm202_vm1, %v425_v52  ;;  %760 = vmatprep.mubr.f32.mxu0 %v8606_v0  ;;  %v3236_v52 = vcombine.high %v3216_v50, %v3216_v50  ;;  %v3237_v55 = vcombine.high %v3217_v51, %v3217_v51  ;;  %vm3948_vm3 = vcmask 547840  }
  0xa6   : > { %6540 = vmatprep.mubr.msk.f32.mxu1 %vm202_vm1, %v653_v58  ;;  %2296 = vrot.lane.b32.xlu1 %v7068_v9, %s6939_s7 }
  0xa7   : > { %2294 = vrot.lane.b32.xlu0 %v7073_v10, %s6939_s7  ;;  %6538 = vmatprep.subr.msk.mxu1 %vm215_vm0, %v675_v1  ;;  %s6966_s7 = smov 44  }
  0xa8   : > { %6143 = vmatmul.mubr.msk.f32.gmra.mxu0 %vm202_vm1, %v655_v62  ;;  %6539 = vmatpush3.msk.msra.mxu1 %vm215_vm0, %v675_v1  ;;  %v659_v6 = vpop.permute.xlu1 %658  ;;  %v657_v7 = vpop.permute.xlu0 %656  ;;  %v3450_v1 = vld [vmem:[%s7046_s28] sm:$0x77] }
  0xa9   : > { %6541 = vmatmul.mubr.msk.f32.vlgmr.msra.gmra.mxu1 %vm202_vm1, %v655_v62  ;;  %766 = vmatprep.mubr.f32.mxu0 %v8606_v0 }
  0xaa   : > { %2540 = vrot.lane.b32.xlu1 %v2515_v2, %s6940_s8  ;;  %6543 = vmatprep.mubr.msk.f32.mxu1 %vm202_vm1, %v657_v7 }
  0xab   : > { %2538 = vrot.lane.b32.xlu0 %v2534_v5, %s6940_s8  ;;  %v3451_v5 = vld [vmem:[%s7046_s28 + $0x8] sm:$0x77] }
  0xac   : > { %6144 = vmatmul.mubr.msk.f32.gmra.mxu0 %vm202_vm1, %v657_v7  ;;  %v903_v8 = vpop.permute.xlu1 %902  ;;  %v901_v11 = vpop.permute.xlu0 %900 }
  0xad   : > { %6544 = vmatmul.mubr.msk.f32.gmra.mxu1 %vm202_vm1, %v659_v6  ;;  %772 = vmatprep.mubr.f32.mxu0 %v8606_v0  ;;  %v908_v12 = vsel %vm906_vm4, %v901_v11, %v903_v8 }
  0xae   : > { %2524 = vrot.lane.b32.xlu1 %v7053_v3, %s6941_s9  ;;  %6151 = vmatprep.subr.msk.mxu1 %vm215_vm0, %v908_v12 }
  0xaf   : > { %2536 = vrot.lane.b32.xlu0 %v2514_v63, %s6940_s8  ;;  %988 = vmatprep.mubr.f32.mxu1 %v8606_v0 }
  0xb0   : > { %6145 = vmatmul.mubr.msk.f32.gmra.mxu0 %vm202_vm1, %v659_v6  ;;  %v899_v14 = vpop.permute.xlu1 %898  ;;  %v905_v15 = vpop.permute.xlu0 %904  ;;  %v3470_v6 = vcombine.high %v3450_v1, %v3450_v1 }
  0xb1   : > { %v907_v16 = vsel %vm906_vm4, %v899_v14, %v901_v11  ;;  %v909_v17 = vsel %vm906_vm4, %v903_v8, %v905_v15  ;;  %v3471_v14 = vcombine.high %v3451_v5, %v3451_v5  ;;  %vm4182_vm4 = vcmask 539648  }
  0xb2   : > { %2542 = vrot.lane.b32.xlu1 %v2535_v13, %s6940_s8  ;;  %6152 = vmatpush1.msk.msra.mxu1 %vm215_vm0, %v907_v16 }
  0xb3   : > { %2526 = vrot.lane.b32.xlu0 %v7058_v4, %s6941_s9  ;;  %6546 = vmatprep.subr.msk.mxu0 %vm215_vm0, %v909_v17 }
  0xb4   : > { %6547 = vmatpush3.msk.msra.mxu0 %vm215_vm0, %v909_v17  ;;  %v889_v18 = vpop.permute.xlu1 %888  ;;  %v887_v19 = vpop.permute.xlu0 %886 }
  0xb5   : > { %6153 = vmatmul.mubr.msk.f32.vlgmr.msra.gmra.mxu1 %vm202_vm1, %v887_v19  ;;  %6548 = vmatprep.mubr.msk.f32.mxu0 %vm202_vm1, %v887_v19 }
  0xb6   : > { %2530 = vrot.lane.b32.xlu1 %v7068_v9, %s6941_s9  ;;  %6549 = vmatmul.mubr.msk.f32.vlgmr.msra.gmra.mxu0 %vm202_vm1, %v889_v18 }
  0xb7   : > { %2528 = vrot.lane.b32.xlu0 %v7073_v10, %s6941_s9  ;;  %994 = vmatprep.mubr.f32.mxu1 %v8606_v0 }
  0xb8   : > { %v893_v23 = vpop.permute.xlu1 %892  ;;  %v891_v24 = vpop.permute.xlu0 %890 }
  0xb9   : > { %6154 = vmatmul.mubr.msk.f32.gmra.mxu1 %vm202_vm1, %v889_v18  ;;  %6551 = vmatprep.mubr.msk.f32.mxu0 %vm202_vm1, %v891_v24 }
  0xba   : > { %2774 = vrot.lane.b32.xlu1 %v2749_v21, %s6942_s10  ;;  %6552 = vmatmul.mubr.msk.f32.gmra.mxu0 %vm202_vm1, %v893_v23  ;;  %v3684_v21 = vld [vmem:[%s7046_s28] sm:$0x77] }
  0xbb   : > { %2772 = vrot.lane.b32.xlu0 %v2768_v22, %s6942_s10  ;;  %1000 = vmatprep.mubr.f32.mxu1 %v8606_v0  ;;  %v3685_v22 = vld [vmem:[%s7046_s28 + $0x8] sm:$0x77] }
  0xbc   : > { %v1137_v26 = vpop.permute.xlu1 %1136  ;;  %v1135_v27 = vpop.permute.xlu0 %1134  ;;  %1222 = vmatprep.mubr.f32.mxu0 %v8606_v0 }
  0xbd   : > { %6155 = vmatmul.mubr.msk.f32.gmra.mxu1 %vm202_vm1, %v891_v24  ;;  %v1142_v28 = vsel %vm1140_vm5, %v1135_v27, %v1137_v26 }
  0xbe   : > { %2770 = vrot.lane.b32.xlu1 %v2748_v20, %s6942_s10  ;;  %6162 = vmatprep.subr.msk.mxu0 %vm215_vm0, %v1142_v28 }
  0xbf   : > { %2776 = vrot.lane.b32.xlu0 %v2769_v25, %s6942_s10  ;;  %1006 = vmatprep.mubr.f32.mxu1 %v8606_v0 }
  0xc0   : > { %v1121_v29 = vpop.permute.xlu1 %1120  ;;  %v1133_v30 = vpop.permute.xlu0 %1132 }
  0xc1   : > { %v1141_v31 = vsel %vm1140_vm5, %v1133_v30, %v1135_v27  ;;  %6156 = vmatmul.mubr.msk.f32.gmra.mxu1 %vm202_vm1, %v893_v23  ;;  %v3704_v23 = vcombine.high %v3684_v21, %v3684_v21 }
  0xc2   : > { %2760 = vrot.lane.b32.xlu1 %v7058_v4, %s6943_s11  ;;  %6163 = vmatpush1.msk.msra.mxu0 %vm215_vm0, %v1141_v31 }
  0xc3   : > { %2758 = vrot.lane.b32.xlu0 %v7053_v3, %s6943_s11  ;;  %6556 = vmatprep.mubr.msk.f32.mxu1 %vm202_vm1, %v1121_v29 }
  0xc4   : > { %6164 = vmatmul.mubr.msk.f32.vlgmr.msra.gmra.mxu0 %vm202_vm1, %v1121_v29  ;;  %v1139_v32 = vpop.permute.xlu1 %1138  ;;  %v1123_v33 = vpop.permute.xlu0 %1122 }
  0xc5   : > { %v1143_v35 = vsel %vm1140_vm5, %v1137_v26, %v1139_v32  ;;  %1228 = vmatprep.mubr.f32.mxu0 %v8606_v0  ;;  %v3705_v26 = vcombine.high %v3685_v22, %v3685_v22  ;;  %vm4416_vm5 = vcmask 531456  }
  0xc6   : > { %2764 = vrot.lane.b32.xlu1 %v7068_v9, %s6943_s11  ;;  %6554 = vmatprep.subr.msk.mxu1 %vm215_vm0, %v1143_v35 }
  0xc7   : > { %2762 = vrot.lane.b32.xlu0 %v7073_v10, %s6943_s11  ;;  %6555 = vmatpush3.msk.msra.mxu1 %vm215_vm0, %v1143_v35  ;;  %v3918_v35 = vld [vmem:[%s7046_s28] sm:$0x77] }
  0xc8   : > { %6165 = vmatmul.mubr.msk.f32.gmra.mxu0 %vm202_vm1, %v1123_v33  ;;  %v1127_v38 = vpop.permute.xlu1 %1126  ;;  %v1125_v39 = vpop.permute.xlu0 %1124  ;;  %6557 = vmatmul.mubr.msk.f32.vlgmr.msra.gmra.mxu1 %vm202_vm1, %v1123_v33 }
  0xc9   : > { %1234 = vmatprep.mubr.f32.mxu0 %v8606_v0  ;;  %6559 = vmatprep.mubr.msk.f32.mxu1 %vm202_vm1, %v1125_v39 }
  0xca   : > { %3008 = vrot.lane.b32.xlu1 %v2983_v36, %s6944_s17 }
  0xcb   : > { %3006 = vrot.lane.b32.xlu0 %v3002_v37, %s6944_s17 }
  0xcc   : > { %6166 = vmatmul.mubr.msk.f32.gmra.mxu0 %vm202_vm1, %v1125_v39  ;;  %v1371_v40 = vpop.permute.xlu1 %1370  ;;  %v1369_v41 = vpop.permute.xlu0 %1368  ;;  %6560 = vmatmul.mubr.msk.f32.gmra.mxu1 %vm202_vm1, %v1127_v38 }
  0xcd   : > { %1240 = vmatprep.mubr.f32.mxu0 %v8606_v0  ;;  %v1376_v42 = vsel %vm1374_vm6, %v1369_v41, %v1371_v40  ;;  %1456 = vmatprep.mubr.f32.mxu1 %v8606_v0 }
  0xce   : > { %2992 = vrot.lane.b32.xlu1 %v7053_v3, %s6945_s19  ;;  %6173 = vmatprep.subr.msk.mxu1 %vm215_vm0, %v1376_v42 }
  0xcf   : > { %3004 = vrot.lane.b32.xlu0 %v2982_v34, %s6944_s17 }
  0xd0   : > { %6167 = vmatmul.mubr.msk.f32.gmra.mxu0 %vm202_vm1, %v1127_v38  ;;  %v1367_v44 = vpop.permute.xlu1 %1366  ;;  %v1373_v45 = vpop.permute.xlu0 %1372 }
  0xd1   : > { %v1375_v46 = vsel %vm1374_vm6, %v1367_v44, %v1369_v41  ;;  %v1377_v47 = vsel %vm1374_vm6, %v1371_v40, %v1373_v45  ;;  %v7375_v44 = vld [vmem:[%s8603_s1 + $0x8] sm:$0xff]  ;;  %vm4650_vm6 = vcmask 523264  }
  0xd2   : > { %3010 = vrot.lane.b32.xlu1 %v3003_v43, %s6944_s17  ;;  %6174 = vmatpush1.msk.msra.mxu1 %vm215_vm0, %v1375_v46 }
  0xd3   : > { %2994 = vrot.lane.b32.xlu0 %v7058_v4, %s6945_s19  ;;  %6562 = vmatprep.subr.msk.mxu0 %vm215_vm0, %v1377_v47 }
  0xd4   : > { %6563 = vmatpush3.msk.msra.mxu0 %vm215_vm0, %v1377_v47  ;;  %v1357_v48 = vpop.permute.xlu1 %1356  ;;  %v1355_v49 = vpop.permute.xlu0 %1354  ;;  %v7385_v47 = vld [vmem:[%s8603_s1 + $0x18] sm:$0xff] }
  0xd5   : > { %6175 = vmatmul.mubr.msk.f32.vlgmr.msra.gmra.mxu1 %vm202_vm1, %v1355_v49  ;;  %6564 = vmatprep.mubr.msk.f32.mxu0 %vm202_vm1, %v1355_v49 }
  0xd6   : > { %2998 = vrot.lane.b32.xlu1 %v7068_v9, %s6945_s19  ;;  %6565 = vmatmul.mubr.msk.f32.vlgmr.msra.gmra.mxu0 %vm202_vm1, %v1357_v48 }
  0xd7   : > { %2996 = vrot.lane.b32.xlu0 %v7073_v10, %s6945_s19  ;;  %1462 = vmatprep.mubr.f32.mxu1 %v8606_v0  ;;  %s6955_s19 = smov 77  }
  0xd8   : > { %v1361_v53 = vpop.permute.xlu1 %1360  ;;  %v1359_v54 = vpop.permute.xlu0 %1358 }
  0xd9   : > { %6176 = vmatmul.mubr.msk.f32.gmra.mxu1 %vm202_vm1, %v1357_v48  ;;  %6567 = vmatprep.mubr.msk.f32.mxu0 %vm202_vm1, %v1359_v54 }
  0xda   : > { %3242 = vrot.lane.b32.xlu1 %v3217_v51, %s6946_s20  ;;  %6568 = vmatmul.mubr.msk.f32.gmra.mxu0 %vm202_vm1, %v1361_v53  ;;  %v4152_v51 = vld [vmem:[%s7046_s28] sm:$0x77] }
  0xdb   : > { %3240 = vrot.lane.b32.xlu0 %v3236_v52, %s6946_s20  ;;  %1468 = vmatprep.mubr.f32.mxu1 %v8606_v0  ;;  %v4153_v52 = vld [vmem:[%s7046_s28 + $0x8] sm:$0x77] }
  0xdc   : > { %v1605_v56 = vpop.permute.xlu1 %1604  ;;  %v1603_v57 = vpop.permute.xlu0 %1602  ;;  %1690 = vmatprep.mubr.f32.mxu0 %v8606_v0 }
  0xdd   : > { %6177 = vmatmul.mubr.msk.f32.gmra.mxu1 %vm202_vm1, %v1359_v54  ;;  %v1610_v58 = vsel %vm1608_vm7, %v1603_v57, %v1605_v56 }
  0xde   : > { %3238 = vrot.lane.b32.xlu1 %v3216_v50, %s6946_s20  ;;  %6184 = vmatprep.subr.msk.mxu0 %vm215_vm0, %v1610_v58  ;;  %v7391_v50 = vld [vmem:[%s8603_s1 + $0x10] sm:$0xff] }
  0xdf   : > { %3244 = vrot.lane.b32.xlu0 %v3237_v55, %s6946_s20  ;;  %1474 = vmatprep.mubr.f32.mxu1 %v8606_v0  ;;  %s6956_s20 = smov 65  }
  0xe0   : > { %v1589_v59 = vpop.permute.xlu1 %1588  ;;  %v1601_v60 = vpop.permute.xlu0 %1600 }
  0xe1   : > { %v1609_v61 = vsel %vm1608_vm7, %v1601_v60, %v1603_v57  ;;  %6178 = vmatmul.mubr.msk.f32.gmra.mxu1 %vm202_vm1, %v1361_v53  ;;  %v4172_v53 = vcombine.high %v4152_v51, %v4152_v51 }
  0xe2   : > { %3228 = vrot.lane.b32.xlu1 %v7058_v4, %s6947_s24  ;;  %6185 = vmatpush1.msk.msra.mxu0 %vm215_vm0, %v1609_v61 }
  0xe3   : > { %3226 = vrot.lane.b32.xlu0 %v7053_v3, %s6947_s24  ;;  %6572 = vmatprep.mubr.msk.f32.mxu1 %vm202_vm1, %v1589_v59 }
  0xe4   : > { %6186 = vmatmul.mubr.msk.f32.vlgmr.msra.gmra.mxu0 %vm202_vm1, %v1589_v59  ;;  %v1607_v62 = vpop.permute.xlu1 %1606  ;;  %v1591_v63 = vpop.permute.xlu0 %1590  ;;  %v6954_v59 = vmov 0  }
  0xe5   : > { %v1611_v2 = vsel %vm1608_vm7, %v1605_v56, %v1607_v62  ;;  %1696 = vmatprep.mubr.f32.mxu0 %v8606_v0  ;;  %v4173_v56 = vcombine.high %v4153_v52, %v4153_v52  ;;  %6812 = vset.pattern.permute.xlu1 %v6954_v59  ;;  %vm4884_vm7 = vcmask 392192  }
  0xe6   : > { %3232 = vrot.lane.b32.xlu1 %v7068_v9, %s6947_s24  ;;  %6570 = vmatprep.subr.msk.mxu1 %vm215_vm0, %v1611_v2 }
  0xe7   : > { %3230 = vrot.lane.b32.xlu0 %v7073_v10, %s6947_s24  ;;  %6571 = vmatpush3.msk.msra.mxu1 %vm215_vm0, %v1611_v2  ;;  %v4386_v2 = vld [vmem:[%s7046_s28] sm:$0x77]  ;;  %s6957_s24 = smov 74  }
  0xe8   : > { %6187 = vmatmul.mubr.msk.f32.gmra.mxu0 %vm202_vm1, %v1591_v63  ;;  %v1595_v7 = vpop.permute.xlu1 %1594  ;;  %v1593_v8 = vpop.permute.xlu0 %1592  ;;  %6573 = vmatmul.mubr.msk.f32.vlgmr.msra.gmra.mxu1 %vm202_vm1, %v1591_v63 }
  0xe9   : > { %1702 = vmatprep.mubr.f32.mxu0 %v8606_v0  ;;  %6575 = vmatprep.mubr.msk.f32.mxu1 %vm202_vm1, %v1593_v8 }
  0xea   : > { %3476 = vrot.lane.b32.xlu1 %v3451_v5, %s6948_s25  ;;  %6811 = vset.pattern.permute.xlu0 %v6954_v59 }
  0xeb   : > { %3474 = vrot.lane.b32.xlu0 %v3470_v6, %s6948_s25 }
  0xec   : > { %6188 = vmatmul.mubr.msk.f32.gmra.mxu0 %vm202_vm1, %v1593_v8  ;;  %v1839_v11 = vpop.permute.xlu1 %1838  ;;  %v1837_v12 = vpop.permute.xlu0 %1836  ;;  %6576 = vmatmul.mubr.msk.f32.gmra.mxu1 %vm202_vm1, %v1595_v7  ;;  %v4406_v8 = vcombine.high %v4386_v2, %v4386_v2 }
  0xed   : > { %1708 = vmatprep.mubr.f32.mxu0 %v8606_v0  ;;  %v1844_v13 = vsel %vm1842_vm8, %v1837_v12, %v1839_v11  ;;  %1924 = vmatprep.mubr.f32.mxu1 %v8606_v0 }
  0xee   : > { %3460 = vrot.lane.b32.xlu1 %v7053_v3, %s6944_s17  ;;  %6195 = vmatprep.subr.msk.mxu1 %vm215_vm0, %v1844_v13 }
  0xef   : > { %3472 = vrot.lane.b32.xlu0 %v3450_v1, %s6948_s25 }
  0xf0   : > { %6189 = vmatmul.mubr.msk.f32.gmra.mxu0 %vm202_vm1, %v1595_v7  ;;  %v1835_v15 = vpop.permute.xlu1 %1834  ;;  %v1841_v16 = vpop.permute.xlu0 %1840  ;;  %v4387_v7 = vld [vmem:[%s7046_s28 + $0x8] sm:$0x77] }
  0xf1   : > { %v1843_v17 = vsel %vm1842_vm8, %v1835_v15, %v1837_v12  ;;  %v1845_v18 = vsel %vm1842_vm8, %v1839_v11, %v1841_v16  ;;  %v4407_v15 = vcombine.high %v4387_v7, %v4387_v7  ;;  %vm5118_vm8 = vcmask 384000  }
  0xf2   : > { %3478 = vrot.lane.b32.xlu1 %v3471_v14, %s6948_s25  ;;  %6196 = vmatpush1.msk.msra.mxu1 %vm215_vm0, %v1843_v17  ;;  %s6958_s25 = smov 64  }
  0xf3   : > { %3462 = vrot.lane.b32.xlu0 %v7058_v4, %s6944_s17  ;;  %6578 = vmatprep.subr.msk.mxu0 %vm215_vm0, %v1845_v18 }
  0xf4   : > { %6579 = vmatpush3.msk.msra.mxu0 %vm215_vm0, %v1845_v18  ;;  %v1825_v19 = vpop.permute.xlu1 %1824  ;;  %v1823_v20 = vpop.permute.xlu0 %1822 }
  0xf5   : > { %6197 = vmatmul.mubr.msk.f32.vlgmr.msra.gmra.mxu1 %vm202_vm1, %v1823_v20  ;;  %6580 = vmatprep.mubr.msk.f32.mxu0 %vm202_vm1, %v1823_v20 }
  0xf6   : > { %3466 = vrot.lane.b32.xlu1 %v7068_v9, %s6944_s17  ;;  %6581 = vmatmul.mubr.msk.f32.vlgmr.msra.gmra.mxu0 %vm202_vm1, %v1825_v19 }
  0xf7   : > { %3464 = vrot.lane.b32.xlu0 %v7073_v10, %s6944_s17  ;;  %1930 = vmatprep.mubr.f32.mxu1 %v8606_v0  ;;  %s6953_s17 = smov 66  }
  0xf8   : > { %v1829_v24 = vpop.permute.xlu1 %1828  ;;  %v1827_v25 = vpop.permute.xlu0 %1826 }
  0xf9   : > { %6198 = vmatmul.mubr.msk.f32.gmra.mxu1 %vm202_vm1, %v1825_v19  ;;  %6583 = vmatprep.mubr.msk.f32.mxu0 %vm202_vm1, %v1827_v25 }
  0xfa   : > { %3710 = vrot.lane.b32.xlu1 %v3685_v22, %s6949_s26  ;;  %6584 = vmatmul.mubr.msk.f32.gmra.mxu0 %vm202_vm1, %v1829_v24  ;;  %v4620_v22 = vld [vmem:[%s7046_s28] sm:$0x77] }
  0xfb   : > { %3708 = vrot.lane.b32.xlu0 %v3704_v23, %s6949_s26  ;;  %1936 = vmatprep.mubr.f32.mxu1 %v8606_v0 }
  0xfc   : > { %v2073_v27 = vpop.permute.xlu1 %2072  ;;  %v2071_v28 = vpop.permute.xlu0 %2070  ;;  %2158 = vmatprep.mubr.f32.mxu0 %v8606_v0 }
  0xfd   : > { %6199 = vmatmul.mubr.msk.f32.gmra.mxu1 %vm202_vm1, %v1827_v25  ;;  %v2078_v29 = vsel %vm2076_vm9, %v2071_v28, %v2073_v27 }
  0xfe   : > { %3706 = vrot.lane.b32.xlu1 %v3684_v21, %s6949_s26  ;;  %6206 = vmatprep.subr.msk.mxu0 %vm215_vm0, %v2078_v29 }
  0xff   : > { %3712 = vrot.lane.b32.xlu0 %v3705_v26, %s6949_s26  ;;  %1942 = vmatprep.mubr.f32.mxu1 %v8606_v0  ;;  %v4621_v26 = vld [vmem:[%s7046_s28 + $0x8] sm:$0x77] }
 0x100   : > { %v2057_v30 = vpop.permute.xlu1 %2056  ;;  %v2069_v31 = vpop.permute.xlu0 %2068 }
 0x101   : > { %v2077_v32 = vsel %vm2076_vm9, %v2069_v31, %v2071_v28  ;;  %6200 = vmatmul.mubr.msk.f32.gmra.mxu1 %vm202_vm1, %v1829_v24  ;;  %v4640_v24 = vcombine.high %v4620_v22, %v4620_v22  ;;  %v4641_v28 = vcombine.high %v4621_v26, %v4621_v26 }
 0x102   : > { %3696 = vrot.lane.b32.xlu1 %v7058_v4, %s6950_s27  ;;  %6207 = vmatpush1.msk.msra.mxu0 %vm215_vm0, %v2077_v32  ;;  %v3938_v4 = vcombine.high %v3918_v35, %v3918_v35 }
 0x103   : > { %3694 = vrot.lane.b32.xlu0 %v7053_v3, %s6950_s27  ;;  %6588 = vmatprep.mubr.msk.f32.mxu1 %vm202_vm1, %v2057_v30  ;;  %v3919_v3 = vld [vmem:[%s7046_s28 + $0x8] sm:$0x77] }
 0x104   : > { %6208 = vmatmul.mubr.msk.f32.vlgmr.msra.gmra.mxu0 %vm202_vm1, %v2057_v30  ;;  %v2075_v33 = vpop.permute.xlu1 %2074  ;;  %v2059_v34 = vpop.permute.xlu0 %2058  ;;  %v3939_v41 = vcombine.high %v3919_v3, %v3919_v3 }
 0x105   : > { %v2079_v36 = vsel %vm2076_vm9, %v2073_v27, %v2075_v33  ;;  %2164 = vmatprep.mubr.f32.mxu0 %v8606_v0  ;;  %vm5352_vm9 = vcmask 375808  }
 0x106   : > { %3700 = vrot.lane.b32.xlu1 %v7068_v9, %s6950_s27  ;;  %6586 = vmatprep.subr.msk.mxu1 %vm215_vm0, %v2079_v36  ;;  %v7362_v9 = vld [vmem:[%s8603_s1] sm:$0xff] }
 0x107   : > { %3698 = vrot.lane.b32.xlu0 %v7073_v10, %s6950_s27  ;;  %6587 = vmatpush3.msk.msra.mxu1 %vm215_vm0, %v2079_v36  ;;  %v7468_v36 = vpop.f32.mrf.mxu0  ;;  %s6959_s27 = smov 71  }
 0x108   : > { %6209 = vmatmul.mubr.msk.f32.gmra.mxu0 %vm202_vm1, %v2059_v34  ;;  %v2063_v37 = vpop.permute.xlu1 %2062  ;;  %v2061_v38 = vpop.permute.xlu0 %2060  ;;  %6589 = vmatmul.mubr.msk.f32.vlgmr.msra.gmra.mxu1 %vm202_vm1, %v2059_v34 }
 0x109   : > { %2170 = vmatprep.mubr.f32.mxu0 %v8606_v0  ;;  %6591 = vmatprep.mubr.msk.f32.mxu1 %vm202_vm1, %v2061_v38  ;;  %v7464_v34 = vpop.f32.mrf.mxu1 }
 0x10a   : > { %3944 = vrot.lane.b32.xlu1 %v3919_v3, %s6951_s29 }
 0x10b   : > { %3942 = vrot.lane.b32.xlu0 %v3938_v4, %s6951_s29  ;;  %v4854_v4 = vld [vmem:[%s7046_s28] sm:$0x77] }
 0x10c   : > { %6210 = vmatmul.mubr.msk.f32.gmra.mxu0 %vm202_vm1, %v2061_v38  ;;  %v2307_v10 = vpop.permute.xlu1 %2306  ;;  %v2305_v39 = vpop.permute.xlu0 %2304  ;;  %6592 = vmatmul.mubr.msk.f32.gmra.mxu1 %vm202_vm1, %v2063_v37 }
 0x10d   : > { %2176 = vmatprep.mubr.f32.mxu0 %v8606_v0  ;;  %v2312_v40 = vsel %vm2310_vm10, %v2305_v39, %v2307_v10  ;;  %2392 = vmatprep.mubr.f32.mxu1 %v8606_v0 }
 0x10e   : > { %3928 = vrot.lane.b32.xlu1 %v7362_v9, %s6952_s5  ;;  %6217 = vmatprep.subr.msk.mxu1 %vm215_vm0, %v2312_v40  ;;  %v4874_v40 = vcombine.high %v4854_v4, %v4854_v4 }
 0x10f   : > { %3940 = vrot.lane.b32.xlu0 %v3918_v35, %s6951_s29 }
 0x110   : > { %6211 = vmatmul.mubr.msk.f32.gmra.mxu0 %vm202_vm1, %v2063_v37  ;;  %v2303_v42 = vpop.permute.xlu1 %2302  ;;  %v2309_v43 = vpop.permute.xlu0 %2308 }
 0x111   : > { %v2311_v45 = vsel %vm2310_vm10, %v2303_v42, %v2305_v39  ;;  %v2313_v46 = vsel %vm2310_vm10, %v2307_v10, %v2309_v43  ;;  %v7477_v10 = vpop.f32.mrf.mxu1  ;;  %v7481_v39 = vpop.f32.mrf.mxu0  ;;  %v4855_v42 = vld [vmem:[%s7046_s28 + $0x8] sm:$0x77]  ;;  %vm5586_vm10 = vcmask 367616  }
 0x112   : > { %3946 = vrot.lane.b32.xlu1 %v3939_v41, %s6951_s29  ;;  %6218 = vmatpush1.msk.msra.mxu1 %vm215_vm0, %v2311_v45  ;;  %8610 = vst [vmem:[#allocation5_spill] sm:$0xff] %v7477_v10  ;;  %s6960_s29 = smov 48  }
 0x113   : > { %3930 = vrot.lane.b32.xlu0 %v7375_v44, %s6952_s5  ;;  %6594 = vmatprep.subr.msk.mxu0 %vm215_vm0, %v2313_v46  ;;  %v7489_v45 = vpop.f32.mrf.mxu1 }
 0x114   : > { %6595 = vmatpush3.msk.msra.mxu0 %vm215_vm0, %v2313_v46  ;;  %v2293_v48 = vpop.permute.xlu1 %2292  ;;  %v2291_v49 = vpop.permute.xlu0 %2290 }
 0x115   : > { %6219 = vmatmul.mubr.msk.f32.vlgmr.msra.gmra.mxu1 %vm202_vm1, %v2291_v49  ;;  %6596 = vmatprep.mubr.msk.f32.mxu0 %vm202_vm1, %v2291_v49  ;;  %v7493_v46 = vpop.f32.mrf.mxu0 }
 0x116   : > { %3934 = vrot.lane.b32.xlu1 %v7385_v47, %s6952_s5  ;;  %6597 = vmatmul.mubr.msk.f32.vlgmr.msra.gmra.mxu0 %vm202_vm1, %v2293_v48 }
 0x117   : > { %3932 = vrot.lane.b32.xlu0 %v7391_v50, %s6952_s5  ;;  %2398 = vmatprep.mubr.f32.mxu1 %v8606_v0  ;;  %s6964_s5 = smov 45  }
 0x118   : > { %v2297_v54 = vpop.permute.xlu1 %2296 }
 0x119   : > { %v2295_v55 = vpop.permute.xlu0 %2294  ;;  %6220 = vmatmul.mubr.msk.f32.gmra.mxu1 %vm202_vm1, %v2293_v48 }
 0x11a   : > { %6599 = vmatprep.mubr.msk.f32.mxu0 %vm202_vm1, %v2295_v55  ;;  %4178 = vrot.lane.b32.xlu1 %v4153_v52, %s6953_s17 }
 0x11b   : > { %4176 = vrot.lane.b32.xlu0 %v4172_v53, %s6953_s17  ;;  %6600 = vmatmul.mubr.msk.f32.gmra.mxu0 %vm202_vm1, %v2297_v54  ;;  %v7501_v53 = vpop.f32.mrf.mxu0 }
 0x11c   : > { %v2541_v57 = vpop.permute.xlu1 %2540  ;;  %2404 = vmatprep.mubr.f32.mxu1 %v8606_v0  ;;  %2626 = vmatprep.mubr.f32.mxu0 %v8606_v0 }
 0x11d   : > { %v2539_v58 = vpop.permute.xlu0 %2538  ;;  %6221 = vmatmul.mubr.msk.f32.gmra.mxu1 %vm202_vm1, %v2295_v55 }
 0x11e   : > { %4174 = vrot.lane.b32.xlu1 %v4152_v51, %s6953_s17  ;;  %v2546_v60 = vsel %vm2544_vm11, %v2539_v58, %v2541_v57  ;;  %2410 = vmatprep.mubr.f32.mxu1 %v8606_v0  ;;  %v7497_v51 = vpop.f32.mrf.mxu1 }
 0x11f   : > { %4180 = vrot.lane.b32.xlu0 %v4173_v56, %s6953_s17  ;;  %6228 = vmatprep.subr.msk.mxu0 %vm215_vm0, %v2546_v60  ;;  %v7513_v60 = vpop.f32.mrf.mxu0 }
 0x120   : > { %v2525_v61 = vpop.permute.xlu1 %2524 }
 0x121   : > { %v2537_v62 = vpop.permute.xlu0 %2536  ;;  %6222 = vmatmul.mubr.msk.f32.gmra.mxu1 %vm202_vm1, %v2297_v54  ;;  %v4875_v54 = vcombine.high %v4855_v42, %v4855_v42 }
 0x122   : > { %v2545_v63 = vsel %vm2544_vm11, %v2537_v62, %v2539_v58  ;;  %4164 = vrot.lane.b32.xlu1 %v7375_v44, %s6955_s19  ;;  %6604 = vmatprep.mubr.msk.f32.mxu1 %vm202_vm1, %v2525_v61  ;;  %v7509_v58 = vpop.f32.mrf.mxu1  ;;  %v5088_v62 = vld [vmem:[%s7046_s28] sm:$0x77] }
 0x123   : > { %4162 = vrot.lane.b32.xlu0 %v7362_v9, %s6955_s19  ;;  %6229 = vmatpush1.msk.msra.mxu0 %vm215_vm0, %v2545_v63  ;;  %8611 = vst [vmem:[#allocation6_spill] sm:$0xff] %v7509_v58 }
 0x124   : > { %6230 = vmatmul.mubr.msk.f32.vlgmr.msra.gmra.mxu0 %vm202_vm1, %v2525_v61  ;;  %v2543_v1 = vpop.permute.xlu1 %2542 }
 0x125   : > { %v2547_v5 = vsel %vm2544_vm11, %v2541_v57, %v2543_v1  ;;  %v2527_v6 = vpop.permute.xlu0 %2526  ;;  %2632 = vmatprep.mubr.f32.mxu0 %v8606_v0  ;;  %v7520_v1 = vpop.f32.mrf.mxu1  ;;  %vm5820_vm11 = vcmask 359424  }
 0x126   : > { %4168 = vrot.lane.b32.xlu1 %v7385_v47, %s6955_s19  ;;  %6602 = vmatprep.subr.msk.mxu1 %vm215_vm0, %v2547_v5 }
 0x127   : > { %4166 = vrot.lane.b32.xlu0 %v7391_v50, %s6955_s19  ;;  %6603 = vmatpush3.msk.msra.mxu1 %vm215_vm0, %v2547_v5  ;;  %v5108_v5 = vcombine.high %v5088_v62, %v5088_v62 }
 0x128   : > { %6231 = vmatmul.mubr.msk.f32.gmra.mxu0 %vm202_vm1, %v2527_v6  ;;  %v2531_v11 = vpop.permute.xlu1 %2530  ;;  %6605 = vmatmul.mubr.msk.f32.vlgmr.msra.gmra.mxu1 %vm202_vm1, %v2527_v6 }
 0x129   : > { %v2529_v12 = vpop.permute.xlu0 %2528  ;;  %2638 = vmatprep.mubr.f32.mxu0 %v8606_v0 }
 0x12a   : > { %4412 = vrot.lane.b32.xlu1 %v4387_v7, %s6956_s20  ;;  %6607 = vmatprep.mubr.msk.f32.mxu1 %vm202_vm1, %v2529_v12  ;;  %v5089_v7 = vld [vmem:[%s7046_s28 + $0x8] sm:$0x77] }
 0x12b   : > { %4410 = vrot.lane.b32.xlu0 %v4406_v8, %s6956_s20 }
 0x12c   : > { %6232 = vmatmul.mubr.msk.f32.gmra.mxu0 %vm202_vm1, %v2529_v12  ;;  %v2775_v13 = vpop.permute.xlu1 %2774  ;;  %6608 = vmatmul.mubr.msk.f32.gmra.mxu1 %vm202_vm1, %v2531_v11 }
 0x12d   : > { %v2773_v14 = vpop.permute.xlu0 %2772  ;;  %2644 = vmatprep.mubr.f32.mxu0 %v8606_v0  ;;  %2860 = vmatprep.mubr.f32.mxu1 %v8606_v0 }
 0x12e   : > { %4396 = vrot.lane.b32.xlu1 %v7362_v9, %s6957_s24  ;;  %v2780_v16 = vsel %vm2778_vm12, %v2773_v14, %v2775_v13 }
 0x12f   : > { %4408 = vrot.lane.b32.xlu0 %v4386_v2, %s6956_s20  ;;  %6239 = vmatprep.subr.msk.mxu1 %vm215_vm0, %v2780_v16  ;;  %v7524_v2 = vpop.f32.mrf.mxu0 }
 0x130   : > { %6233 = vmatmul.mubr.msk.f32.gmra.mxu0 %vm202_vm1, %v2531_v11  ;;  %v2771_v17 = vpop.permute.xlu1 %2770 }
 0x131   : > { %v2779_v18 = vsel %vm2778_vm12, %v2771_v17, %v2773_v14  ;;  %v2777_v19 = vpop.permute.xlu0 %2776 }
 0x132   : > { %v2781_v20 = vsel %vm2778_vm12, %v2775_v13, %v2777_v19  ;;  %4414 = vrot.lane.b32.xlu1 %v4407_v15, %s6956_s20  ;;  %6240 = vmatpush1.msk.msra.mxu1 %vm215_vm0, %v2779_v18  ;;  %v5109_v13 = vcombine.high %v5089_v7, %v5089_v7 }
 0x133   : > { %4398 = vrot.lane.b32.xlu0 %v7375_v44, %s6957_s24  ;;  %6610 = vmatprep.subr.msk.mxu0 %vm215_vm0, %v2781_v20 }
 0x134   : > { %6611 = vmatpush3.msk.msra.mxu0 %vm215_vm0, %v2781_v20  ;;  %v2761_v21 = vpop.permute.xlu1 %2760 }
 0x135   : > { %v2759_v23 = vpop.permute.xlu0 %2758 }
 0x136   : > { %6241 = vmatmul.mubr.msk.f32.vlgmr.msra.gmra.mxu1 %vm202_vm1, %v2759_v23  ;;  %6612 = vmatprep.mubr.msk.f32.mxu0 %vm202_vm1, %v2759_v23 }
 0x137   : > { %4402 = vrot.lane.b32.xlu1 %v7385_v47, %s6957_s24  ;;  %4400 = vrot.lane.b32.xlu0 %v7391_v50, %s6957_s24 }
 0x138   : > { %6613 = vmatmul.mubr.msk.f32.vlgmr.msra.gmra.mxu0 %vm202_vm1, %v2761_v21  ;;  %v2765_v25 = vpop.permute.xlu1 %2764  ;;  %2866 = vmatprep.mubr.f32.mxu1 %v8606_v0 }
 0x139   : > { %v2763_v27 = vpop.permute.xlu0 %2762 }
 0x13a   : > { %6242 = vmatmul.mubr.msk.f32.gmra.mxu1 %vm202_vm1, %v2761_v21  ;;  %6615 = vmatprep.mubr.msk.f32.mxu0 %vm202_vm1, %v2763_v27 }
 0x13b   : > { %4646 = vrot.lane.b32.xlu1 %v4621_v26, %s6958_s25  ;;  %4644 = vrot.lane.b32.xlu0 %v4640_v24, %s6958_s25 }
 0x13c   : > { %6616 = vmatmul.mubr.msk.f32.gmra.mxu0 %vm202_vm1, %v2765_v25  ;;  %v3009_v29 = vpop.permute.xlu1 %3008  ;;  %2872 = vmatprep.mubr.f32.mxu1 %v8606_v0 }
 0x13d   : > { %v3007_v30 = vpop.permute.xlu0 %3006  ;;  %3094 = vmatprep.mubr.f32.mxu0 %v8606_v0 }
 0x13e   : > { %6243 = vmatmul.mubr.msk.f32.gmra.mxu1 %vm202_vm1, %v2763_v27  ;;  %v3014_v31 = vsel %vm3012_vm13, %v3007_v30, %v3009_v29 }
 0x13f   : > { %4642 = vrot.lane.b32.xlu1 %v4620_v22, %s6958_s25  ;;  %4648 = vrot.lane.b32.xlu0 %v4641_v28, %s6958_s25  ;;  %s161_s25 = sand.u32 1, %s6914_s13  }
 0x140   : > { %6250 = vmatprep.subr.msk.mxu0 %vm215_vm0, %v3014_v31  ;;  %v2993_v32 = vpop.permute.xlu1 %2992  ;;  %2878 = vmatprep.mubr.f32.mxu1 %v8606_v0 }
 0x141   : > { %v3005_v33 = vpop.permute.xlu0 %3004 }
 0x142   : > { %v3013_v35 = vsel %vm3012_vm13, %v3005_v33, %v3007_v30  ;;  %6244 = vmatmul.mubr.msk.f32.gmra.mxu1 %vm202_vm1, %v2765_v25  ;;  %v5322_v30 = vld [vmem:[%s7046_s28] sm:$0x77] }
 0x143   : > { %4632 = vrot.lane.b32.xlu1 %v7375_v44, %s6959_s27  ;;  %4630 = vrot.lane.b32.xlu0 %v7362_v9, %s6959_s27 }
 0x144   : > { %6251 = vmatpush1.msk.msra.mxu0 %vm215_vm0, %v3013_v35  ;;  %6620 = vmatprep.mubr.msk.f32.mxu1 %vm202_vm1, %v2993_v32  ;;  %v3011_v3 = vpop.permute.xlu1 %3010 }
 0x145   : > { %6252 = vmatmul.mubr.msk.f32.vlgmr.msra.gmra.mxu0 %vm202_vm1, %v2993_v32  ;;  %v3015_v37 = vsel %vm3012_vm13, %v3009_v29, %v3011_v3  ;;  %v2995_v38 = vpop.permute.xlu0 %2994 }
 0x146   : > { %3100 = vmatprep.mubr.f32.mxu0 %v8606_v0  ;;  %6618 = vmatprep.subr.msk.mxu1 %vm215_vm0, %v3015_v37 }
 0x147   : > { %4636 = vrot.lane.b32.xlu1 %v7385_v47, %s6959_s27  ;;  %4634 = vrot.lane.b32.xlu0 %v7391_v50, %s6959_s27  ;;  %s8495_s27 = smul.u32 96, %s161_s25 }
 0x148   : > { %6619 = vmatpush3.msk.msra.mxu1 %vm215_vm0, %v3015_v37  ;;  %v2999_v41 = vpop.permute.xlu1 %2998 }
 0x149   : > { %6253 = vmatmul.mubr.msk.f32.gmra.mxu0 %vm202_vm1, %v2995_v38  ;;  %v2997_v43 = vpop.permute.xlu0 %2996  ;;  %6621 = vmatmul.mubr.msk.f32.vlgmr.msra.gmra.mxu1 %vm202_vm1, %v2995_v38 }
 0x14a   : > { %3106 = vmatprep.mubr.f32.mxu0 %v8606_v0  ;;  %6623 = vmatprep.mubr.msk.f32.mxu1 %vm202_vm1, %v2997_v43 }
 0x14b   : > { %4880 = vrot.lane.b32.xlu1 %v4855_v42, %s6960_s29  ;;  %4878 = vrot.lane.b32.xlu0 %v4874_v40, %s6960_s29  ;;  %v5323_v40 = vld [vmem:[%s7046_s28 + $0x8] sm:$0x77] }
 0x14c   : > { %v3243_v48 = vpop.permute.xlu1 %3242 }
 0x14d   : > { %6254 = vmatmul.mubr.msk.f32.gmra.mxu0 %vm202_vm1, %v2997_v43  ;;  %v3241_v49 = vpop.permute.xlu0 %3240  ;;  %6624 = vmatmul.mubr.msk.f32.gmra.mxu1 %vm202_vm1, %v2999_v41 }
 0x14e   : > { %3112 = vmatprep.mubr.f32.mxu0 %v8606_v0  ;;  %v3248_v52 = vsel %vm3246_vm14, %v3241_v49, %v3243_v48  ;;  %3328 = vmatprep.mubr.f32.mxu1 %v8606_v0 }
 0x14f   : > { %4864 = vrot.lane.b32.xlu1 %v7362_v9, %s6949_s26  ;;  %4876 = vrot.lane.b32.xlu0 %v4854_v4, %s6960_s29  ;;  %v5342_v4 = vcombine.high %v5322_v30, %v5322_v30 }
 0x150   : > { %6261 = vmatprep.subr.msk.mxu1 %vm215_vm0, %v3248_v52  ;;  %v3239_v55 = vpop.permute.xlu1 %3238 }
 0x151   : > { %6255 = vmatmul.mubr.msk.f32.gmra.mxu0 %vm202_vm1, %v2999_v41  ;;  %v3247_v56 = vsel %vm3246_vm14, %v3239_v55, %v3241_v49  ;;  %v3245_v57 = vpop.permute.xlu0 %3244 }
 0x152   : > { %v3249_v59 = vsel %vm3246_vm14, %v3243_v48, %v3245_v57  ;;  %6262 = vmatpush1.msk.msra.mxu1 %vm215_vm0, %v3247_v56  ;;  %v5343_v57 = vcombine.high %v5323_v40, %v5323_v40 }
 0x153   : > { %4882 = vrot.lane.b32.xlu1 %v4875_v54, %s6960_s29  ;;  %4866 = vrot.lane.b32.xlu0 %v7375_v44, %s6949_s26  ;;  %s8518_s29 = scalar_lea.vmem [#allocation2], %s8495_s27 }
 0x154   : > { %6626 = vmatprep.subr.msk.mxu0 %vm215_vm0, %v3249_v59  ;;  %v3229_v61 = vpop.permute.xlu1 %3228 }
 0x155   : > { %6627 = vmatpush3.msk.msra.mxu0 %vm215_vm0, %v3249_v59  ;;  %v3227_v63 = vpop.permute.xlu0 %3226 }
 0x156   : > { %6263 = vmatmul.mubr.msk.f32.vlgmr.msra.gmra.mxu1 %vm202_vm1, %v3227_v63  ;;  %6628 = vmatprep.mubr.msk.f32.mxu0 %vm202_vm1, %v3227_v63 }
 0x157   : > { %4870 = vrot.lane.b32.xlu1 %v7385_v47, %s6949_s26  ;;  %4868 = vrot.lane.b32.xlu0 %v7391_v50, %s6949_s26  ;;  %s6962_s26 = smov 46  }
 0x158   : > { %6629 = vmatmul.mubr.msk.f32.vlgmr.msra.gmra.mxu0 %vm202_vm1, %v3229_v61  ;;  %v3233_v6 = vpop.permute.xlu1 %3232  ;;  %3334 = vmatprep.mubr.f32.mxu1 %v8606_v0 }
 0x159   : > { %v3231_v8 = vpop.permute.xlu0 %3230  ;;  %v7533_v11 = vpop.f32.mrf.mxu1 }
 0x15a   : > { %v7535_v12 = vpop.f32.mrf.mxu0  ;;  %6264 = vmatmul.mubr.msk.f32.gmra.mxu1 %vm202_vm1, %v3229_v61  ;;  %6631 = vmatprep.mubr.msk.f32.mxu0 %vm202_vm1, %v3231_v8 }
 0x15b   : > { %5114 = vrot.lane.b32.xlu1 %v5089_v7, %s6961_s30  ;;  %5112 = vrot.lane.b32.xlu0 %v5108_v5, %s6961_s30  ;;  %v7539_v14 = vpop.f32.mrf.mxu1 }
 0x15c   : > { %v7541_v15 = vpop.f32.mrf.mxu0  ;;  %6632 = vmatmul.mubr.msk.f32.gmra.mxu0 %vm202_vm1, %v3233_v6  ;;  %v3477_v16 = vpop.permute.xlu1 %3476  ;;  %3340 = vmatprep.mubr.f32.mxu1 %v8606_v0 }
 0x15d   : > { %v3475_v17 = vpop.permute.xlu0 %3474  ;;  %v7545_v18 = vpop.f32.mrf.mxu1  ;;  %3562 = vmatprep.mubr.f32.mxu0 %v8606_v0 }
 0x15e   : > { %v3482_v19 = vsel %vm3480_vm15, %v3475_v17, %v3477_v16  ;;  %v7549_v20 = vpop.f32.mrf.mxu0  ;;  %6265 = vmatmul.mubr.msk.f32.gmra.mxu1 %vm202_vm1, %v3231_v8 }
 0x15f   : > { %8612 = vst [vmem:[#allocation7_spill] sm:$0xff] %v7549_v20  ;;  %5110 = vrot.lane.b32.xlu1 %v5088_v62, %s6961_s30  ;;  %5116 = vrot.lane.b32.xlu0 %v5109_v13, %s6961_s30  ;;  %v7552_v21 = vpop.f32.mrf.mxu1  ;;  %s6725_s30 = smul.u32 1536, %s7012_s16 }
 0x160   : > { %6272 = vmatprep.subr.msk.mxu0 %vm215_vm0, %v3482_v19  ;;  %v3461_v22 = vpop.permute.xlu1 %3460  ;;  %3346 = vmatprep.mubr.f32.mxu1 %v8606_v0  ;;  %v7558_v25 = vpop.f32.mrf.mxu0 }
 0x161   : > { %v3473_v23 = vpop.permute.xlu0 %3472  ;;  %v7556_v24 = vpop.f32.mrf.mxu1  ;;  %s8557_s16 = scalar_lea.hbm %s8605_s3, %s6725_s30 }
 0x162   : > { %v3481_v26 = vsel %vm3480_vm15, %v3473_v23, %v3475_v17  ;;  %6266 = vmatmul.mubr.msk.f32.gmra.mxu1 %vm202_vm1, %v3233_v6 }
 0x163   : > { %5100 = vrot.lane.b32.xlu1 %v7375_v44, %s6956_s20  ;;  %5098 = vrot.lane.b32.xlu0 %v7362_v9, %s6956_s20  ;;  %v7566_v27 = vpop.f32.mrf.mxu1 }
 0x164   : > { %6273 = vmatpush1.msk.msra.mxu0 %vm215_vm0, %v3481_v26  ;;  %6636 = vmatprep.mubr.msk.f32.mxu1 %vm202_vm1, %v3461_v22  ;;  %v7570_v28 = vpop.f32.mrf.mxu0  ;;  %v3479_v29 = vpop.permute.xlu1 %3478 }
 0x165   : > { %6274 = vmatmul.mubr.msk.f32.vlgmr.msra.gmra.mxu0 %vm202_vm1, %v3461_v22  ;;  %v3483_v31 = vsel %vm3480_vm15, %v3477_v16, %v3479_v29  ;;  %v3463_v32 = vpop.permute.xlu0 %3462  ;;  %v7575_v33 = vpop.f32.mrf.mxu1  ;;  %v5556_v16 = vld [vmem:[%s7046_s28] sm:$0x77] }
 0x166   : > { %8613 = vst [vmem:[#allocation8_spill] sm:$0xff] %v7575_v33  ;;  %v7577_v35 = vpop.f32.mrf.mxu0  ;;  %3568 = vmatprep.mubr.f32.mxu0 %v8606_v0  ;;  %6634 = vmatprep.subr.msk.mxu1 %vm215_vm0, %v3483_v31  ;;  %v5576_v26 = vcombine.high %v5556_v16, %v5556_v16 }
 0x167   : > { %5104 = vrot.lane.b32.xlu1 %v7385_v47, %s6956_s20  ;;  %5102 = vrot.lane.b32.xlu0 %v7391_v50, %s6956_s20  ;;  %v7585_v3 = vpop.f32.mrf.mxu1 }
 0x168   : > { %8614 = vst [vmem:[#allocation9_spill] sm:$0xff] %v7585_v3  ;;  %v7587_v37 = vpop.f32.mrf.mxu0  ;;  %6635 = vmatpush3.msk.msra.mxu1 %vm215_vm0, %v3483_v31  ;;  %v3467_v38 = vpop.permute.xlu1 %3466 }
 0x169   : > { %6275 = vmatmul.mubr.msk.f32.gmra.mxu0 %vm202_vm1, %v3463_v32  ;;  %v3465_v41 = vpop.permute.xlu0 %3464  ;;  %v7592_v42 = vpop.f32.mrf.mxu1  ;;  %6637 = vmatmul.mubr.msk.f32.vlgmr.msra.gmra.mxu1 %vm202_vm1, %v3463_v32 }
 0x16a   : > { %v7595_v43 = vpop.f32.mrf.mxu0  ;;  %3574 = vmatprep.mubr.f32.mxu0 %v8606_v0  ;;  %6639 = vmatprep.mubr.msk.f32.mxu1 %vm202_vm1, %v3465_v41 }
 0x16b   : > { %5348 = vrot.lane.b32.xlu1 %v5323_v40, %s6962_s26  ;;  %5346 = vrot.lane.b32.xlu0 %v5342_v4, %s6962_s26  ;;  %v7599_v48 = vpop.f32.mrf.mxu1 }
 0x16c   : > { %v7601_v49 = vpop.f32.mrf.mxu0  ;;  %v3711_v52 = vpop.permute.xlu1 %3710 }
 0x16d   : > { %6276 = vmatmul.mubr.msk.f32.gmra.mxu0 %vm202_vm1, %v3465_v41  ;;  %v3709_v54 = vpop.permute.xlu0 %3708  ;;  %6640 = vmatmul.mubr.msk.f32.gmra.mxu1 %vm202_vm1, %v3467_v38  ;;  %v7610_v59 = vpop.f32.mrf.mxu1 }
 0x16e   : > { %v3716_v55 = vsel %vm3714_vm2, %v3709_v54, %v3711_v52  ;;  %v7606_v56 = vpop.f32.mrf.mxu0  ;;  %3580 = vmatprep.mubr.f32.mxu0 %v8606_v0  ;;  %3796 = vmatprep.mubr.f32.mxu1 %v8606_v0  ;;  %8615 = vst [vmem:[#allocation10_spill] sm:$0xff] %v7610_v59 }
 0x16f   : > { %5332 = vrot.lane.b32.xlu1 %v7362_v9, %s6963_s4  ;;  %5344 = vrot.lane.b32.xlu0 %v5322_v30, %s6962_s26  ;;  %v7620_v7 = vpop.f32.mrf.mxu1  ;;  %v5557_v30 = vld [vmem:[%s7046_s28 + $0x8] sm:$0x77] }
 0x170   : > { %6283 = vmatprep.subr.msk.mxu1 %vm215_vm0, %v3716_v55  ;;  %v7614_v61 = vpop.f32.mrf.mxu0  ;;  %v3707_v62 = vpop.permute.xlu1 %3706 }
 0x171   : > { %8616 = vst [vmem:[#allocation11_spill] sm:$0xff] %v7614_v61  ;;  %6277 = vmatmul.mubr.msk.f32.gmra.mxu0 %vm202_vm1, %v3467_v38  ;;  %v3715_v63 = vsel %vm3714_vm2, %v3707_v62, %v3709_v54  ;;  %v3713_v5 = vpop.permute.xlu0 %3712  ;;  %v5577_v38 = vcombine.high %v5557_v30, %v5557_v30 }
 0x172   : > { %v3717_v6 = vsel %vm3714_vm2, %v3711_v52, %v3713_v5  ;;  %6284 = vmatpush1.msk.msra.mxu1 %vm215_vm0, %v3715_v63  ;;  %v7623_v8 = vpop.f32.mrf.mxu0 }
 0x173   : > { %5350 = vrot.lane.b32.xlu1 %v5343_v57, %s6962_s26  ;;  %5334 = vrot.lane.b32.xlu0 %v7375_v44, %s6963_s4  ;;  %8617 = vst [vmem:[#allocation12_spill] sm:$0xff] %v7623_v8  ;;  %s6050_s26 = sshll.u32 %s8518_s29, 4  ;;  %s8551_s26 = int_to_ptr.vmem [resolvable:$true] %s6050_s26 }
 0x174   : > { %6642 = vmatprep.subr.msk.mxu0 %vm215_vm0, %v3717_v6  ;;  %v3697_v13 = vpop.permute.xlu1 %3696 }
 0x175   : > { %6643 = vmatpush3.msk.msra.mxu0 %vm215_vm0, %v3717_v6  ;;  %v3695_v17 = vpop.permute.xlu0 %3694  ;;  %v7628_v19 = vpop.f32.mrf.mxu1 }
 0x176   : > { %6285 = vmatmul.mubr.msk.f32.vlgmr.msra.gmra.mxu1 %vm202_vm1, %v3695_v17  ;;  %6644 = vmatprep.mubr.msk.f32.mxu0 %vm202_vm1, %v3695_v17  ;;  %v7632_v22 = vpop.f32.mrf.mxu0 }
 0x177   : > { %5338 = vrot.lane.b32.xlu1 %v7385_v47, %s6963_s4  ;;  %5336 = vrot.lane.b32.xlu0 %v7391_v50, %s6963_s4  ;;  %v7636_v23 = vpop.f32.mrf.mxu1 }
 0x178   : > { %6645 = vmatmul.mubr.msk.f32.vlgmr.msra.gmra.mxu0 %vm202_vm1, %v3697_v13  ;;  %v3701_v29 = vpop.permute.xlu1 %3700  ;;  %3802 = vmatprep.mubr.f32.mxu1 %v8606_v0  ;;  %v7643_v4 = vpop.f32.mrf.mxu0 }
 0x179   : > { %v3699_v31 = vpop.permute.xlu0 %3698  ;;  %v7641_v32 = vpop.f32.mrf.mxu1 }
 0x17a   : > { %6286 = vmatmul.mubr.msk.f32.gmra.mxu1 %vm202_vm1, %v3697_v13  ;;  %6647 = vmatprep.mubr.msk.f32.mxu0 %vm202_vm1, %v3699_v31  ;;  %v7654_v55 = vpop.f32.mrf.mxu0 }
 0x17b   : > { %5582 = vrot.lane.b32.xlu1 %v5557_v30, %s6964_s5  ;;  %5580 = vrot.lane.b32.xlu0 %v5576_v26, %s6964_s5  ;;  %v7647_v40 = vpop.f32.mrf.mxu1  ;;  %8619 = vst [vmem:[#allocation14_spill] sm:$0xff] %v7654_v55  ;;  %v5790_v30 = vld [vmem:[%s7046_s28] sm:$0x77]  ;;  %v8624_v55 = vmov 0.0  }
 0x17c   : > { %6648 = vmatmul.mubr.msk.f32.gmra.mxu0 %vm202_vm1, %v3701_v29  ;;  %v3945_v41 = vpop.permute.xlu1 %3944  ;;  %3808 = vmatprep.mubr.f32.mxu1 %v8606_v0  ;;  %v7662_v6 = vpop.f32.mrf.mxu0 }
 0x17d   : > { %v3943_v52 = vpop.permute.xlu0 %3942  ;;  %v7651_v54 = vpop.f32.mrf.mxu1  ;;  %4030 = vmatprep.mubr.f32.mxu0 %v8606_v0  ;;  %8621 = vst [vmem:[#allocation16_spill] sm:$0xff] %v7662_v6 }
 0x17e   : > { %8618 = vst [vmem:[#allocation13_spill] sm:$0xff] %v7651_v54  ;;  %v3950_v57 = vsel %vm3948_vm3, %v3943_v52, %v3945_v41  ;;  %6287 = vmatmul.mubr.msk.f32.gmra.mxu1 %vm202_vm1, %v3699_v31 }
 0x17f   : > { %5578 = vrot.lane.b32.xlu1 %v5556_v16, %s6964_s5  ;;  %5584 = vrot.lane.b32.xlu0 %v5577_v38, %s6964_s5  ;;  %v7658_v62 = vpop.f32.mrf.mxu1 }
 0x180   : > { %8620 = vst [vmem:[#allocation15_spill] sm:$0xff] %v7658_v62  ;;  %6294 = vmatprep.subr.msk.mxu0 %vm215_vm0, %v3950_v57  ;;  %v3929_v63 = vpop.permute.xlu1 %3928  ;;  %3814 = vmatprep.mubr.f32.mxu1 %v8606_v0  ;;  %v5810_v57 = vcombine.high %v5790_v30, %v5790_v30 }
 0x181   : > { %v3941_v5 = vpop.permute.xlu0 %3940  ;;  %v7666_v17 = vpop.f32.mrf.mxu1 }
 0x182   : > { %v3949_v13 = vsel %vm3948_vm3, %v3941_v5, %v3943_v52  ;;  %6288 = vmatmul.mubr.msk.f32.gmra.mxu1 %vm202_vm1, %v3701_v29  ;;  %8622 = vst [vmem:[#allocation17_spill] sm:$0xff] %v7666_v17 }
 0x183   : > { %5568 = vrot.lane.b32.xlu1 %v7375_v44, %s6965_s6  ;;  %5566 = vrot.lane.b32.xlu0 %v7362_v9, %s6965_s6  ;;  %v7681_v52 = vpop.f32.mrf.mxu1 }
 0x184   : > { %6295 = vmatpush1.msk.msra.mxu0 %vm215_vm0, %v3949_v13  ;;  %6652 = vmatprep.mubr.msk.f32.mxu1 %vm202_vm1, %v3929_v63  ;;  %v7672_v16 = vpop.f32.mrf.mxu0  ;;  %v3947_v26 = vpop.permute.xlu1 %3946  ;;  %8623 = vst [vmem:[#allocation18_spill] sm:$0xff] %v7681_v52 }
 0x185   : > { %6296 = vmatmul.mubr.msk.f32.vlgmr.msra.gmra.mxu0 %vm202_vm1, %v3929_v63  ;;  %v3951_v29 = vsel %vm3948_vm3, %v3945_v41, %v3947_v26  ;;  %v3931_v31 = vpop.permute.xlu0 %3930  ;;  %v5791_v41 = vld [vmem:[%s7046_s28 + $0x8] sm:$0x77]  ;;  %s6967_s28 = smov 56  }
 0x186   : > { %v7677_v38 = vpop.f32.mrf.mxu0  ;;  %4036 = vmatprep.mubr.f32.mxu0 %v8606_v0  ;;  %6650 = vmatprep.subr.msk.mxu1 %vm215_vm0, %v3951_v29 }
 0x187   : > { %5572 = vrot.lane.b32.xlu1 %v7385_v47, %s6965_s6  ;;  %5570 = vrot.lane.b32.xlu0 %v7391_v50, %s6965_s6  ;;  %s8562_s6 = scalar_lea.sflag [#allocation3], %s161_s25 }
 0x188   : > { %v7685_v5 = vpop.f32.mrf.mxu0  ;;  %6651 = vmatpush3.msk.msra.mxu1 %vm215_vm0, %v3951_v29  ;;  %v3935_v63 = vpop.permute.xlu1 %3934 }
 0x189   : > { %6297 = vmatmul.mubr.msk.f32.gmra.mxu0 %vm202_vm1, %v3931_v31  ;;  %v3933_v13 = vpop.permute.xlu0 %3932  ;;  %v7690_v26 = vpop.f32.mrf.mxu1  ;;  %6653 = vmatmul.mubr.msk.f32.vlgmr.msra.gmra.mxu1 %vm202_vm1, %v3931_v31 }
 0x18a   : > { %v7693_v0 = vpop.f32.mrf.mxu0  ;;  %4042 = vmatprep.mubr.f32.mxu0 %v8624_v55  ;;  %6655 = vmatprep.mubr.msk.f32.mxu1 %vm202_vm1, %v3933_v13 }
 0x18b   : > { %5816 = vrot.lane.b32.xlu1 %v5791_v41, %s6966_s7  ;;  %5814 = vrot.lane.b32.xlu0 %v5810_v57, %s6966_s7  ;;  %v7697_v52 = vpop.f32.mrf.mxu1  ;;  %v5811_v57 = vcombine.high %v5791_v41, %v5791_v41 }
 0x18c   : > { %v7699_v29 = vpop.f32.mrf.mxu0  ;;  %v4179_v17 = vpop.permute.xlu1 %4178 }
 0x18d   : > { %8625 = vst [vmem:[#allocation19_spill] sm:$0xff] %v7699_v29  ;;  %6298 = vmatmul.mubr.msk.f32.gmra.mxu0 %vm202_vm1, %v3933_v13  ;;  %v4177_v59 = vpop.permute.xlu0 %4176  ;;  %6656 = vmatmul.mubr.msk.f32.gmra.mxu1 %vm202_vm1, %v3935_v63  ;;  %v7708_v61 = vpop.f32.mrf.mxu1 }
 0x18e   : > { %v4184_v31 = vsel %vm4182_vm4, %v4177_v59, %v4179_v17  ;;  %v7704_v8 = vpop.f32.mrf.mxu0  ;;  %4048 = vmatprep.mubr.f32.mxu0 %v8624_v55  ;;  %4264 = vmatprep.mubr.f32.mxu1 %v8624_v55  ;;  %8627 = vst [vmem:[#allocation21_spill] sm:$0xff] %v7708_v61 }
 0x18f   : > { %8626 = vst [vmem:[#allocation20_spill] sm:$0xff] %v7704_v8  ;;  %5800 = vrot.lane.b32.xlu1 %v7362_v9, %s6967_s28  ;;  %5812 = vrot.lane.b32.xlu0 %v5790_v30, %s6966_s7  ;;  %v7718_v41 = vpop.f32.mrf.mxu1 }
 0x190   : > { %6305 = vmatprep.subr.msk.mxu1 %vm215_vm0, %v4184_v31  ;;  %v7712_v13 = vpop.f32.mrf.mxu0  ;;  %v4175_v20 = vpop.permute.xlu1 %4174  ;;  %8629 = vst [vmem:[#allocation23_spill] sm:$0xff] %v7718_v41 }
 0x191   : > { %8628 = vst [vmem:[#allocation22_spill] sm:$0xff] %v7712_v13  ;;  %6299 = vmatmul.mubr.msk.f32.gmra.mxu0 %vm202_vm1, %v3935_v63  ;;  %v4183_v3 = vsel %vm4182_vm4, %v4175_v20, %v4177_v59  ;;  %v4181_v33 = vpop.permute.xlu0 %4180 }
 0x192   : > { %v4185_v58 = vsel %vm4182_vm4, %v4179_v17, %v4181_v33  ;;  %6306 = vmatpush1.msk.msra.mxu1 %vm215_vm0, %v4183_v3  ;;  %v7721_v9 = vpop.f32.mrf.mxu0  ;;  %v169_v3 = vld [vmem:[%s8604_s2] sm:$0xff] }
 0x193   : > { %5818 = vrot.lane.b32.xlu1 %v5811_v57, %s6966_s7  ;;  %5802 = vrot.lane.b32.xlu0 %v7375_v44, %s6967_s28  ;;  %8630 = vst [vmem:[#allocation24_spill] sm:$0xff] %v7721_v9  ;;  %s6862_s7 = scalar_lea.vmem %s8551_s26, 1536 }
 0x194   : > { %6658 = vmatprep.subr.msk.mxu0 %vm215_vm0, %v4185_v58  ;;  %v4165_v30 = vpop.permute.xlu1 %4164  ;;  %p6863_p11 = scmp.ne.s32.totalorder %s8551_s26, %s6862_s7 }
 0x195   : > { %6659 = vmatpush3.msk.msra.mxu0 %vm215_vm0, %v4185_v58  ;;  %v4163_v63 = vpop.permute.xlu0 %4162  ;;  %v7725_v31 = vpop.f32.mrf.mxu1  ;;  %v170_v58 = vld [vmem:[%s8604_s2 + $0x8] sm:$0xff] }
 0x196   : > { %6307 = vmatmul.mubr.msk.f32.vlgmr.msra.gmra.mxu1 %vm202_vm1, %v4163_v63  ;;  %6660 = vmatprep.mubr.msk.f32.mxu0 %vm202_vm1, %v4163_v63  ;;  %v7729_v20 = vpop.f32.mrf.mxu0  ;;  %v171_v63 = vld [vmem:[%s8604_s2 + $0x10] sm:$0xff]  ;;  %p6864_p12 = pnand %p6863_p11, %p7029_p5 }
 0x197   : > { %5806 = vrot.lane.b32.xlu1 %v7385_v47, %s6967_s28  ;;  %5804 = vrot.lane.b32.xlu0 %v7391_v50, %s6967_s28  ;;  %v7733_v44 = vpop.f32.mrf.mxu1  ;;  %s6968_s28 = smov [#allocation2]  }
 0x198   : > { %6661 = vmatmul.mubr.msk.f32.vlgmr.msra.gmra.mxu0 %vm202_vm1, %v4165_v30  ;;  %v4169_v33 = vpop.permute.xlu1 %4168  ;;  %4270 = vmatprep.mubr.f32.mxu1 %v8624_v55  ;;  %v7745_v47 = vpop.f32.mrf.mxu0  ;;  %p6865_p13 = pneg %p6864_p12  ;;  %s6866_s8 = sshll.u32 %s6968_s28, 4  ;;  %s6867_s8 = int_to_ptr.vmem [resolvable:$false] %s6866_s8 }
 0x199   : > { %v4167_v59 = vpop.permute.xlu0 %4166  ;;  %v7743_v17 = vpop.f32.mrf.mxu1  ;;  %s6868_s9 = scalar_lea.vmem %s6867_s8, 3072  ;;  %p6869_p0 = scmp.lt.s32.totalorder %s8551_s26, %s6867_s8 }
 0x19a   : > { %6308 = vmatmul.mubr.msk.f32.gmra.mxu1 %vm202_vm1, %v4165_v30  ;;  %6663 = vmatprep.mubr.msk.f32.mxu0 %vm202_vm1, %v4167_v59  ;;  %v172_v30 = vld [vmem:[%s8604_s2 + $0x18] sm:$0xff]  ;;  %p6870_p1 = scmp.lt.s32.totalorder %s6868_s9, %s6862_s7 }
 0x19b   : > { %180 = vperm.xlu1 %6812, %v170_v58   ;;  %175 = vperm.xlu0 %6811, %v169_v3   ;;  %v7749_v50 = vpop.f32.mrf.mxu1  ;;  %v7762_v58 = vpop.f32.mrf.mxu0 }
 0x19c   : > { %6664 = vmatmul.mubr.msk.f32.gmra.mxu0 %vm202_vm1, %v4169_v33  ;;  %v4413_v57 = vpop.permute.xlu1 %4412  ;;  %4276 = vmatprep.mubr.f32.mxu1 %v8624_v55  ;;  %8632 = vst [vmem:[#allocation26_spill] sm:$0xff] %v7762_v58  ;;  %p6871_p2 = por %p6870_p1, %p6869_p0 }
 0x19d   : > { %v4411_v61 = vpop.permute.xlu0 %4410  ;;  %v7759_v9 = vpop.f32.mrf.mxu1  ;;  %4498 = vmatprep.mubr.f32.mxu0 %v8624_v55 }
 0x19e   : > { %8631 = vst [vmem:[#allocation25_spill] sm:$0xff] %v7759_v9  ;;  %v4418_v3 = vsel %vm4416_vm5, %v4411_v61, %v4413_v57  ;;  %6309 = vmatmul.mubr.msk.f32.gmra.mxu1 %vm202_vm1, %v4167_v59  ;;  %v7770_v29 = vpop.f32.mrf.mxu0  ;;  %p6872_p3 = pnand %p6871_p2, %p6865_p13 }
 0x19f   : > { %185 = vperm.xlu1 %6812, %v171_v63   ;;  %190 = vperm.xlu0 %6811, %v172_v30   ;;  %v7766_v13 = vpop.f32.mrf.mxu1  ;;  %8634 = vst [vmem:[#allocation28_spill] sm:$0xff] %v7770_v29 }
 0x1a0   : > { %8633 = vst [vmem:[#allocation27_spill] sm:$0xff] %v7766_v13  ;;  %6316 = vmatprep.subr.msk.mxu0 %vm215_vm0, %v4418_v3  ;;  %v4397_v41 = vpop.permute.xlu1 %4396  ;;  %4282 = vmatprep.mubr.f32.mxu1 %v8624_v55 }
 0x1a1   : > { %v4409_v8 = vpop.permute.xlu0 %4408  ;;  %v7773_v10 = vpop.f32.mrf.mxu1 }
 0x1a2   : > { %v4417_v9 = vsel %vm4416_vm5, %v4409_v8, %v4411_v61  ;;  %8635 = vst [vmem:[#allocation29_spill] sm:$0xff] %v7773_v10  ;;  %6310 = vmatmul.mubr.msk.f32.gmra.mxu1 %vm202_vm1, %v4169_v33 }
 0x1a3   : > { %6317 = vmatpush1.msk.msra.mxu0 %vm215_vm0, %v4417_v9  ;;  %6668 = vmatprep.mubr.msk.f32.mxu1 %vm202_vm1, %v4397_v41  ;;  %v7783_v58 = vpop.f32.mrf.mxu1 }
 0x1a4   : > { %v7778_v59 = vpop.f32.mrf.mxu0  ;;  %6318 = vmatmul.mubr.msk.f32.vlgmr.msra.gmra.mxu0 %vm202_vm1, %v4397_v41  ;;  %v4415_v63 = vpop.permute.xlu1 %4414  ;;  %8636 = vst [vmem:[#allocation30_spill] sm:$0xff] %v7783_v58 }
 0x1a5   : > { %v4419_v30 = vsel %vm4416_vm5, %v4413_v57, %v4415_v63  ;;  %v4399_v3 = vpop.permute.xlu0 %4398  ;;  %4504 = vmatprep.mubr.f32.mxu0 %v8624_v55 }
 0x1a6   : > { %v7785_v61 = vpop.f32.mrf.mxu0  ;;  %6666 = vmatprep.subr.msk.mxu1 %vm215_vm0, %v4419_v30 }
 0x1a7   : > { %6667 = vmatpush3.msk.msra.mxu1 %vm215_vm0, %v4419_v30 }
 0x1a8   : > { %v7789_v8 = vpop.f32.mrf.mxu0  ;;  %6319 = vmatmul.mubr.msk.f32.gmra.mxu0 %vm202_vm1, %v4399_v3  ;;  %v7792_v9 = vpop.f32.mrf.mxu1  ;;  %6669 = vmatmul.mubr.msk.f32.vlgmr.msra.gmra.mxu1 %vm202_vm1, %v4399_v3 }
 0x1a9   : > { %8637 = vst [vmem:[#allocation31_spill] sm:$0xff] %v7789_v8  ;;  %v4403_v41 = vpop.permute.xlu1 %4402  ;;  %v4401_v33 = vpop.permute.xlu0 %4400  ;;  %4510 = vmatprep.mubr.f32.mxu0 %v8624_v55 }
 0x1aa   : > { %v7796_v57 = vpop.f32.mrf.mxu0  ;;  %6671 = vmatprep.mubr.msk.f32.mxu1 %vm202_vm1, %v4401_v33  ;;  %v7799_v63 = vpop.f32.mrf.mxu1 }
 0x1ab   : > { %8638 = vst [vmem:[#allocation32_spill] sm:$0xff] %v7796_v57 }
 0x1ac   : > { %v7801_v30 = vpop.f32.mrf.mxu0  ;;  %6320 = vmatmul.mubr.msk.f32.gmra.mxu0 %vm202_vm1, %v4401_v33  ;;  %6672 = vmatmul.mubr.msk.f32.gmra.mxu1 %vm202_vm1, %v4403_v41  ;;  %v7811_v8 = vpop.f32.mrf.mxu1 }
 0x1ad   : > { %8639 = vst [vmem:[#allocation33_spill] sm:$0xff] %v7801_v30  ;;  %v4647_v58 = vpop.permute.xlu1 %4646  ;;  %v4645_v10 = vpop.permute.xlu0 %4644  ;;  %4516 = vmatprep.mubr.f32.mxu0 %v8624_v55  ;;  %4732 = vmatprep.mubr.f32.mxu1 %v8624_v55  ;;  %8641 = vst [vmem:[#allocation35_spill] sm:$0xff] %v7811_v8 }
 0x1ae   : > { %v4652_v3 = vsel %vm4650_vm6, %v4645_v10, %v4647_v58  ;;  %v7808_v57 = vpop.f32.mrf.mxu0  ;;  %v7820_v62 = vpop.f32.mrf.mxu1 }
 0x1af   : > { %8640 = vst [vmem:[#allocation34_spill] sm:$0xff] %v7808_v57  ;;  %6327 = vmatprep.subr.msk.mxu1 %vm215_vm0, %v4652_v3  ;;  %8643 = vst [vmem:[#allocation37_spill] sm:$0xff] %v7820_v62 }
 0x1b0   : > { %v7813_v29 = vpop.f32.mrf.mxu0  ;;  %6321 = vmatmul.mubr.msk.f32.gmra.mxu0 %vm202_vm1, %v4403_v41 }
 0x1b1   : > { %8642 = vst [vmem:[#allocation36_spill] sm:$0xff] %v7813_v29  ;;  %v4643_v33 = vpop.permute.xlu1 %4642  ;;  %v4649_v30 = vpop.permute.xlu0 %4648 }
 0x1b2   : > { %v4651_v13 = vsel %vm4650_vm6, %v4643_v33, %v4645_v10  ;;  %v4653_v6 = vsel %vm4650_vm6, %v4647_v58, %v4649_v30  ;;  %v7822_v57 = vpop.f32.mrf.mxu0 }
 0x1b3   : > { %6328 = vmatpush1.msk.msra.mxu1 %vm215_vm0, %v4651_v13  ;;  %6674 = vmatprep.subr.msk.mxu0 %vm215_vm0, %v4653_v6  ;;  %8644 = vst [vmem:[#allocation38_spill] sm:$0xff] %v7822_v57 }
 0x1b4   : > { %6675 = vmatpush3.msk.msra.mxu0 %vm215_vm0, %v4653_v6 }
 0x1b5   : > { %v4633_v3 = vpop.permute.xlu1 %4632  ;;  %v4631_v8 = vpop.permute.xlu0 %4630 }
 0x1b6   : > { %v7825_v29 = vpop.f32.mrf.mxu1  ;;  %6329 = vmatmul.mubr.msk.f32.vlgmr.msra.gmra.mxu1 %vm202_vm1, %v4631_v8  ;;  %6676 = vmatprep.mubr.msk.f32.mxu0 %vm202_vm1, %v4631_v8  ;;  %v7829_v10 = vpop.f32.mrf.mxu0 }
 0x1b7   : > { %8645 = vst [vmem:[#allocation39_spill] sm:$0xff] %v7825_v29  ;;  %8646 = vst [vmem:[#allocation40_spill] sm:$0xff] %v7829_v10  ;;  %6677 = vmatmul.mubr.msk.f32.vlgmr.msra.gmra.mxu0 %vm202_vm1, %v4633_v3  ;;  %4738 = vmatprep.mubr.f32.mxu1 %v8624_v55 }
 0x1b8   : > { %v7833_v13 = vpop.f32.mrf.mxu1  ;;  %v7835_v30 = vpop.f32.mrf.mxu0 }
 0x1b9   : > { %8647 = vst [vmem:[#allocation41_spill] sm:$0xff] %v7833_v13  ;;  %v4637_v58 = vpop.permute.xlu1 %4636  ;;  %v4635_v41 = vpop.permute.xlu0 %4634  ;;  %8648 = vst [vmem:[#allocation42_spill] sm:$0xff] %v7835_v30 }
 0x1ba   : > { %v7837_v6 = vpop.f32.mrf.mxu1  ;;  %6330 = vmatmul.mubr.msk.f32.gmra.mxu1 %vm202_vm1, %v4633_v3  ;;  %6679 = vmatprep.mubr.msk.f32.mxu0 %vm202_vm1, %v4635_v41  ;;  %v7846_v62 = vpop.f32.mrf.mxu0 }
 0x1bb   : > { %8649 = vst [vmem:[#allocation43_spill] sm:$0xff] %v7837_v6  ;;  %6680 = vmatmul.mubr.msk.f32.gmra.mxu0 %vm202_vm1, %v4637_v58  ;;  %4744 = vmatprep.mubr.f32.mxu1 %v8624_v55  ;;  %8651 = vst [vmem:[#allocation45_spill] sm:$0xff] %v7846_v62 }
 0x1bc   : > { %v7843_v8 = vpop.f32.mrf.mxu1  ;;  %4966 = vmatprep.mubr.f32.mxu0 %v8624_v55  ;;  %v7856_v10 = vpop.f32.mrf.mxu0 }
 0x1bd   : > { %8650 = vst [vmem:[#allocation44_spill] sm:$0xff] %v7843_v8  ;;  %v4881_v33 = vpop.permute.xlu1 %4880  ;;  %v4879_v57 = vpop.permute.xlu0 %4878  ;;  %8654 = vst [vmem:[#allocation48_spill] sm:$0xff] %v7856_v10 }
 0x1be   : > { %v4886_v30 = vsel %vm4884_vm7, %v4879_v57, %v4881_v33  ;;  %v7849_v6 = vpop.f32.mrf.mxu1  ;;  %6331 = vmatmul.mubr.msk.f32.gmra.mxu1 %vm202_vm1, %v4635_v41 }
 0x1bf   : > { %8652 = vst [vmem:[#allocation46_spill] sm:$0xff] %v7849_v6  ;;  %6338 = vmatprep.subr.msk.mxu0 %vm215_vm0, %v4886_v30  ;;  %4750 = vmatprep.mubr.f32.mxu1 %v8624_v55 }
 0x1c0   : > { %v7854_v3 = vpop.f32.mrf.mxu1 }
 0x1c1   : > { %8653 = vst [vmem:[#allocation47_spill] sm:$0xff] %v7854_v3  ;;  %v4865_v13 = vpop.permute.xlu1 %4864  ;;  %v4877_v8 = vpop.permute.xlu0 %4876 }
 0x1c2   : > { %v4885_v29 = vsel %vm4884_vm7, %v4877_v8, %v4879_v57  ;;  %v7859_v54 = vpop.f32.mrf.mxu1  ;;  %6332 = vmatmul.mubr.msk.f32.gmra.mxu1 %vm202_vm1, %v4637_v58 }
 0x1c3   : > { %8655 = vst [vmem:[#allocation49_spill] sm:$0xff] %v7859_v54  ;;  %6339 = vmatpush1.msk.msra.mxu0 %vm215_vm0, %v4885_v29  ;;  %6684 = vmatprep.mubr.msk.f32.mxu1 %vm202_vm1, %v4865_v13 }
 0x1c4   : > { %v7864_v41 = vpop.f32.mrf.mxu0  ;;  %6340 = vmatmul.mubr.msk.f32.vlgmr.msra.gmra.mxu0 %vm202_vm1, %v4865_v13  ;;  %v7868_v3 = vpop.f32.mrf.mxu1 }
 0x1c5   : > { %8656 = vst [vmem:[#allocation50_spill] sm:$0xff] %v7864_v41  ;;  %v4883_v30 = vpop.permute.xlu1 %4882  ;;  %v4867_v62 = vpop.permute.xlu0 %4866  ;;  %4972 = vmatprep.mubr.f32.mxu0 %v8624_v55  ;;  %8657 = vst [vmem:[#allocation51_spill] sm:$0xff] %v7868_v3 }
 0x1c6   : > { %v4887_v57 = vsel %vm4884_vm7, %v4881_v33, %v4883_v30  ;;  %v7871_v8 = vpop.f32.mrf.mxu0 }
 0x1c7   : > { %8658 = vst [vmem:[#allocation52_spill] sm:$0xff] %v7871_v8  ;;  %6682 = vmatprep.subr.msk.mxu1 %vm215_vm0, %v4887_v57 }
 0x1c8   : > { %v7874_v58 = vpop.f32.mrf.mxu0  ;;  %6341 = vmatmul.mubr.msk.f32.gmra.mxu0 %vm202_vm1, %v4867_v62  ;;  %6683 = vmatpush3.msk.msra.mxu1 %vm215_vm0, %v4887_v57  ;;  %v7878_v29 = vpop.f32.mrf.mxu1 }
 0x1c9   : > { %8659 = vst [vmem:[#allocation53_spill] sm:$0xff] %v7874_v58  ;;  %8660 = vst [vmem:[#allocation54_spill] sm:$0xff] %v7878_v29  ;;  %v4871_v13 = vpop.permute.xlu1 %4870  ;;  %v4869_v54 = vpop.permute.xlu0 %4868  ;;  %6685 = vmatmul.mubr.msk.f32.vlgmr.msra.gmra.mxu1 %vm202_vm1, %v4867_v62  ;;  %4978 = vmatprep.mubr.f32.mxu0 %v8624_v55 }
 0x1ca   : > { %v7882_v3 = vpop.f32.mrf.mxu0  ;;  %6687 = vmatprep.mubr.msk.f32.mxu1 %vm202_vm1, %v4869_v54  ;;  %v7885_v33 = vpop.f32.mrf.mxu1 }
 0x1cb   : > { %8661 = vst [vmem:[#allocation55_spill] sm:$0xff] %v7882_v3  ;;  %8662 = vst [vmem:[#allocation56_spill] sm:$0xff] %v7885_v33 }
 0x1cc   : > { %v7887_v30 = vpop.f32.mrf.mxu0  ;;  %6342 = vmatmul.mubr.msk.f32.gmra.mxu0 %vm202_vm1, %v4869_v54  ;;  %v7897_v3 = vpop.f32.mrf.mxu1 }
 0x1cd   : > { %8663 = vst [vmem:[#allocation57_spill] sm:$0xff] %v7887_v30  ;;  %v5115_v57 = vpop.permute.xlu1 %5114  ;;  %v5113_v6 = vpop.permute.xlu0 %5112  ;;  %6688 = vmatmul.mubr.msk.f32.gmra.mxu1 %vm202_vm1, %v4871_v13  ;;  %4984 = vmatprep.mubr.f32.mxu0 %v8624_v55  ;;  %8665 = vst [vmem:[#allocation59_spill] sm:$0xff] %v7897_v3 }
 0x1ce   : > { %v5120_v62 = vsel %vm5118_vm8, %v5113_v6, %v5115_v57  ;;  %v7893_v10 = vpop.f32.mrf.mxu0  ;;  %5200 = vmatprep.mubr.f32.mxu1 %v8624_v55 }
 0x1cf   : > { %8664 = vst [vmem:[#allocation58_spill] sm:$0xff] %v7893_v10  ;;  %6349 = vmatprep.subr.msk.mxu1 %vm215_vm0, %v5120_v62  ;;  %v7906_v10 = vpop.f32.mrf.mxu1 }
 0x1d0   : > { %v7899_v58 = vpop.f32.mrf.mxu0  ;;  %6343 = vmatmul.mubr.msk.f32.gmra.mxu0 %vm202_vm1, %v4871_v13  ;;  %8667 = vst [vmem:[#allocation61_spill] sm:$0xff] %v7906_v10 }
 0x1d1   : > { %8666 = vst [vmem:[#allocation60_spill] sm:$0xff] %v7899_v58  ;;  %v5111_v54 = vpop.permute.xlu1 %5110  ;;  %v5117_v30 = vpop.permute.xlu0 %5116 }
 0x1d2   : > { %v5119_v33 = vsel %vm5118_vm8, %v5111_v54, %v5113_v6  ;;  %v5121_v8 = vsel %vm5118_vm8, %v5115_v57, %v5117_v30  ;;  %v7908_v29 = vpop.f32.mrf.mxu0 }
 0x1d3   : > { %6350 = vmatpush1.msk.msra.mxu1 %vm215_vm0, %v5119_v33  ;;  %6690 = vmatprep.subr.msk.mxu0 %vm215_vm0, %v5121_v8  ;;  %8668 = vst [vmem:[#allocation62_spill] sm:$0xff] %v7908_v29 }
 0x1d4   : > { %6691 = vmatpush3.msk.msra.mxu0 %vm215_vm0, %v5121_v8 }
 0x1d5   : > { %v5101_v62 = vpop.permute.xlu1 %5100  ;;  %v5099_v3 = vpop.permute.xlu0 %5098 }
 0x1d6   : > { %v7911_v58 = vpop.f32.mrf.mxu1  ;;  %6351 = vmatmul.mubr.msk.f32.vlgmr.msra.gmra.mxu1 %vm202_vm1, %v5099_v3  ;;  %6692 = vmatprep.mubr.msk.f32.mxu0 %vm202_vm1, %v5099_v3  ;;  %v7915_v6 = vpop.f32.mrf.mxu0 }
 0x1d7   : > { %8669 = vst [vmem:[#allocation63_spill] sm:$0xff] %v7911_v58  ;;  %8670 = vst [vmem:[#allocation64_spill] sm:$0xff] %v7915_v6  ;;  %6693 = vmatmul.mubr.msk.f32.vlgmr.msra.gmra.mxu0 %vm202_vm1, %v5101_v62  ;;  %5206 = vmatprep.mubr.f32.mxu1 %v8624_v55 }
 0x1d8   : > { %v7919_v13 = vpop.f32.mrf.mxu1  ;;  %v7921_v57 = vpop.f32.mrf.mxu0 }
 0x1d9   : > { %8671 = vst [vmem:[#allocation65_spill] sm:$0xff] %v7919_v13  ;;  %v5105_v33 = vpop.permute.xlu1 %5104  ;;  %v5103_v30 = vpop.permute.xlu0 %5102  ;;  %8672 = vst [vmem:[#allocation66_spill] sm:$0xff] %v7921_v57 }
 0x1da   : > { %v7923_v8 = vpop.f32.mrf.mxu1  ;;  %6352 = vmatmul.mubr.msk.f32.gmra.mxu1 %vm202_vm1, %v5101_v62  ;;  %6695 = vmatprep.mubr.msk.f32.mxu0 %vm202_vm1, %v5103_v30 }
 0x1db   : > { %8673 = vst [vmem:[#allocation67_spill] sm:$0xff] %v7923_v8  ;;  %6696 = vmatmul.mubr.msk.f32.gmra.mxu0 %vm202_vm1, %v5105_v33  ;;  %5212 = vmatprep.mubr.f32.mxu1 %v8624_v55  ;;  %v7932_v10 = vpop.f32.mrf.mxu0 }
 0x1dc   : > { %v7929_v3 = vpop.f32.mrf.mxu1  ;;  %5434 = vmatprep.mubr.f32.mxu0 %v8624_v55  ;;  %8675 = vst [vmem:[#allocation69_spill] sm:$0xff] %v7932_v10 }
 0x1dd   : > { %8674 = vst [vmem:[#allocation68_spill] sm:$0xff] %v7929_v3  ;;  %v5349_v54 = vpop.permute.xlu1 %5348  ;;  %v5347_v29 = vpop.permute.xlu0 %5346 }
 0x1de   : > { %v5354_v57 = vsel %vm5352_vm9, %v5347_v29, %v5349_v54  ;;  %v7935_v8 = vpop.f32.mrf.mxu1  ;;  %6353 = vmatmul.mubr.msk.f32.gmra.mxu1 %vm202_vm1, %v5103_v30  ;;  %v7942_v6 = vpop.f32.mrf.mxu0 }
 0x1df   : > { %8676 = vst [vmem:[#allocation70_spill] sm:$0xff] %v7935_v8  ;;  %6360 = vmatprep.subr.msk.mxu0 %vm215_vm0, %v5354_v57  ;;  %5218 = vmatprep.mubr.f32.mxu1 %v8624_v55  ;;  %8678 = vst [vmem:[#allocation72_spill] sm:$0xff] %v7942_v6 }
 0x1e0   : > { %v7940_v62 = vpop.f32.mrf.mxu1 }
 0x1e1   : > { %8677 = vst [vmem:[#allocation71_spill] sm:$0xff] %v7940_v62  ;;  %v5333_v13 = vpop.permute.xlu1 %5332  ;;  %v5345_v3 = vpop.permute.xlu0 %5344 }
 0x1e2   : > { %v5353_v58 = vsel %vm5352_vm9, %v5345_v3, %v5347_v29  ;;  %v7945_v41 = vpop.f32.mrf.mxu1  ;;  %6354 = vmatmul.mubr.msk.f32.gmra.mxu1 %vm202_vm1, %v5105_v33 }
 0x1e3   : > { %8679 = vst [vmem:[#allocation73_spill] sm:$0xff] %v7945_v41  ;;  %6361 = vmatpush1.msk.msra.mxu0 %vm215_vm0, %v5353_v58  ;;  %6700 = vmatprep.mubr.msk.f32.mxu1 %vm202_vm1, %v5333_v13 }
 0x1e4   : > { %v7950_v30 = vpop.f32.mrf.mxu0  ;;  %6362 = vmatmul.mubr.msk.f32.vlgmr.msra.gmra.mxu0 %vm202_vm1, %v5333_v13  ;;  %v7954_v62 = vpop.f32.mrf.mxu1 }
 0x1e5   : > { %8680 = vst [vmem:[#allocation74_spill] sm:$0xff] %v7950_v30  ;;  %v5351_v57 = vpop.permute.xlu1 %5350  ;;  %v5335_v10 = vpop.permute.xlu0 %5334  ;;  %5440 = vmatprep.mubr.f32.mxu0 %v8624_v55  ;;  %8681 = vst [vmem:[#allocation75_spill] sm:$0xff] %v7954_v62 }
 0x1e6   : > { %v5355_v29 = vsel %vm5352_vm9, %v5349_v54, %v5351_v57  ;;  %v7957_v3 = vpop.f32.mrf.mxu0 }
 0x1e7   : > { %8682 = vst [vmem:[#allocation76_spill] sm:$0xff] %v7957_v3  ;;  %6698 = vmatprep.subr.msk.mxu1 %vm215_vm0, %v5355_v29 }
 0x1e8   : > { %v7960_v33 = vpop.f32.mrf.mxu0  ;;  %6363 = vmatmul.mubr.msk.f32.gmra.mxu0 %vm202_vm1, %v5335_v10  ;;  %6699 = vmatpush3.msk.msra.mxu1 %vm215_vm0, %v5355_v29  ;;  %v7964_v58 = vpop.f32.mrf.mxu1 }
 0x1e9   : > { %8683 = vst [vmem:[#allocation77_spill] sm:$0xff] %v7960_v33  ;;  %8684 = vst [vmem:[#allocation78_spill] sm:$0xff] %v7964_v58  ;;  %v5339_v13 = vpop.permute.xlu1 %5338  ;;  %v5337_v41 = vpop.permute.xlu0 %5336  ;;  %6701 = vmatmul.mubr.msk.f32.vlgmr.msra.gmra.mxu1 %vm202_vm1, %v5335_v10  ;;  %5446 = vmatprep.mubr.f32.mxu0 %v8624_v55 }
 0x1ea   : > { %v7968_v62 = vpop.f32.mrf.mxu0  ;;  %6703 = vmatprep.mubr.msk.f32.mxu1 %vm202_vm1, %v5337_v41  ;;  %v7971_v54 = vpop.f32.mrf.mxu1 }
 0x1eb   : > { %8685 = vst [vmem:[#allocation79_spill] sm:$0xff] %v7968_v62  ;;  %8686 = vst [vmem:[#allocation80_spill] sm:$0xff] %v7971_v54 }
 0x1ec   : > { %v7973_v57 = vpop.f32.mrf.mxu0  ;;  %6364 = vmatmul.mubr.msk.f32.gmra.mxu0 %vm202_vm1, %v5337_v41  ;;  %v7983_v62 = vpop.f32.mrf.mxu1 }
 0x1ed   : > { %8687 = vst [vmem:[#allocation81_spill] sm:$0xff] %v7973_v57  ;;  %v5583_v29 = vpop.permute.xlu1 %5582  ;;  %v5581_v8 = vpop.permute.xlu0 %5580  ;;  %6704 = vmatmul.mubr.msk.f32.gmra.mxu1 %vm202_vm1, %v5339_v13  ;;  %5452 = vmatprep.mubr.f32.mxu0 %v8624_v55  ;;  %8689 = vst [vmem:[#allocation83_spill] sm:$0xff] %v7983_v62 }
 0x1ee   : > { %v5588_v10 = vsel %vm5586_vm10, %v5581_v8, %v5583_v29  ;;  %v7979_v6 = vpop.f32.mrf.mxu0  ;;  %5668 = vmatprep.mubr.f32.mxu1 %v8624_v55 }
 0x1ef   : > { %8688 = vst [vmem:[#allocation82_spill] sm:$0xff] %v7979_v6  ;;  %6371 = vmatprep.subr.msk.mxu1 %vm215_vm0, %v5588_v10  ;;  %v7992_v6 = vpop.f32.mrf.mxu1 }
 0x1f0   : > { %6365 = vmatmul.mubr.msk.f32.gmra.mxu0 %vm202_vm1, %v5339_v13  ;;  %v7986_v33 = vpop.f32.mrf.mxu0  ;;  %8691 = vst [vmem:[#allocation85_spill] sm:$0xff] %v7992_v6 }
 0x1f1   : > { %v5579_v57 = vpop.permute.xlu1 %5578  ;;  %v5585_v41 = vpop.permute.xlu0 %5584  ;;  %8690 = vst [vmem:[#allocation84_spill] sm:$0xff] %v7986_v33 }
 0x1f2   : > { %v5587_v54 = vsel %vm5586_vm10, %v5579_v57, %v5581_v8  ;;  %v5589_v3 = vsel %vm5586_vm10, %v5583_v29, %v5585_v41  ;;  %v7995_v58 = vpop.f32.mrf.mxu0 }
 0x1f3   : > { %6372 = vmatpush1.msk.msra.mxu1 %vm215_vm0, %v5587_v54  ;;  %6706 = vmatprep.subr.msk.mxu0 %vm215_vm0, %v5589_v3  ;;  %8692 = vst [vmem:[#allocation86_spill] sm:$0xff] %v7995_v58 }
 0x1f4   : > { %6707 = vmatpush3.msk.msra.mxu0 %vm215_vm0, %v5589_v3 }
 0x1f5   : > { %v5569_v10 = vpop.permute.xlu1 %5568  ;;  %v5567_v62 = vpop.permute.xlu0 %5566 }
 0x1f6   : > { %v7997_v13 = vpop.f32.mrf.mxu1  ;;  %6373 = vmatmul.mubr.msk.f32.vlgmr.msra.gmra.mxu1 %vm202_vm1, %v5567_v62  ;;  %6708 = vmatprep.mubr.msk.f32.mxu0 %vm202_vm1, %v5567_v62 }
 0x1f7   : > { %8693 = vst [vmem:[#allocation87_spill] sm:$0xff] %v7997_v13  ;;  %6709 = vmatmul.mubr.msk.f32.vlgmr.msra.gmra.mxu0 %vm202_vm1, %v5569_v10  ;;  %5674 = vmatprep.mubr.f32.mxu1 %v8624_v55 }
 0x1f8   : > { %v8003_v8 = vpop.f32.mrf.mxu0  ;;  %v8005_v54 = vpop.f32.mrf.mxu1 }
 0x1f9   : > { %8694 = vst [vmem:[#allocation88_spill] sm:$0xff] %v8003_v8  ;;  %8695 = vst [vmem:[#allocation89_spill] sm:$0xff] %v8005_v54  ;;  %v5573_v57 = vpop.permute.xlu1 %5572  ;;  %v5571_v3 = vpop.permute.xlu0 %5570 }
 0x1fa   : > { %v8007_v29 = vpop.f32.mrf.mxu1  ;;  %6374 = vmatmul.mubr.msk.f32.gmra.mxu1 %vm202_vm1, %v5569_v10  ;;  %6711 = vmatprep.mubr.msk.f32.mxu0 %vm202_vm1, %v5571_v3  ;;  %v8011_v41 = vpop.f32.mrf.mxu0 }
 0x1fb   : > { %8696 = vst [vmem:[#allocation90_spill] sm:$0xff] %v8007_v29  ;;  %8697 = vst [vmem:[#allocation91_spill] sm:$0xff] %v8011_v41  ;;  %6712 = vmatmul.mubr.msk.f32.gmra.mxu0 %vm202_vm1, %v5573_v57  ;;  %5680 = vmatprep.mubr.f32.mxu1 %v8624_v55 }
 0x1fc   : > { %v8015_v62 = vpop.f32.mrf.mxu1  ;;  %5902 = vmatprep.mubr.f32.mxu0 %v8624_v55  ;;  %v8022_v10 = vpop.f32.mrf.mxu0 }
 0x1fd   : > { %8698 = vst [vmem:[#allocation92_spill] sm:$0xff] %v8015_v62  ;;  %v5817_v58 = vpop.permute.xlu1 %5816  ;;  %v5815_v33 = vpop.permute.xlu0 %5814  ;;  %8700 = vst [vmem:[#allocation94_spill] sm:$0xff] %v8022_v10 }
 0x1fe   : > { %v5822_v6 = vsel %vm5820_vm11, %v5815_v33, %v5817_v58  ;;  %v8019_v29 = vpop.f32.mrf.mxu1  ;;  %6375 = vmatmul.mubr.msk.f32.gmra.mxu1 %vm202_vm1, %v5571_v3  ;;  %v8030_v13 = vpop.f32.mrf.mxu0 }
 0x1ff   : > { %8699 = vst [vmem:[#allocation93_spill] sm:$0xff] %v8019_v29  ;;  %6382 = vmatprep.subr.msk.mxu0 %vm215_vm0, %v5822_v6  ;;  %5686 = vmatprep.mubr.f32.mxu1 %v8624_v55  ;;  %8702 = vst [vmem:[#allocation96_spill] sm:$0xff] %v8030_v13 }
 0x200   : > { %v8026_v41 = vpop.f32.mrf.mxu1 }
 0x201   : > { %8701 = vst [vmem:[#allocation95_spill] sm:$0xff] %v8026_v41  ;;  %v5801_v54 = vpop.permute.xlu1 %5800  ;;  %v5813_v62 = vpop.permute.xlu0 %5812 }
 0x202   : > { %v5821_v8 = vsel %vm5820_vm11, %v5813_v62, %v5815_v33  ;;  %6376 = vmatmul.mubr.msk.f32.gmra.mxu1 %vm202_vm1, %v5573_v57  ;;  %v8032_v30 = vpop.f32.mrf.mxu1 }
 0x203   : > { %8703 = vst [vmem:[#allocation97_spill] sm:$0xff] %v8032_v30  ;;  %6383 = vmatpush1.msk.msra.mxu0 %vm215_vm0, %v5821_v8  ;;  %6716 = vmatprep.mubr.msk.f32.mxu1 %vm202_vm1, %v5801_v54 }
 0x204   : > { %6384 = vmatmul.mubr.msk.f32.vlgmr.msra.gmra.mxu0 %vm202_vm1, %v5801_v54  ;;  %v8041_v62 = vpop.f32.mrf.mxu1 }
 0x205   : > { %v8037_v6 = vpop.f32.mrf.mxu0  ;;  %v5819_v3 = vpop.permute.xlu1 %5818  ;;  %5908 = vmatprep.mubr.f32.mxu0 %v8624_v55  ;;  %8704 = vst [vmem:[#allocation98_spill] sm:$0xff] %v8041_v62 }
 0x206   : > { %v5823_v10 = vsel %vm5820_vm11, %v5817_v58, %v5819_v3  ;;  %v5803_v33 = vpop.permute.xlu0 %5802 }
 0x207   : > { %v8043_v57 = vpop.f32.mrf.mxu0  ;;  %6714 = vmatprep.subr.msk.mxu1 %vm215_vm0, %v5823_v10 }
 0x208   : > { %8705 = vst [vmem:[#allocation99_spill] sm:$0xff] %v8043_v57  ;;  %6385 = vmatmul.mubr.msk.f32.gmra.mxu0 %vm202_vm1, %v5803_v33  ;;  %6715 = vmatpush3.msk.msra.mxu1 %vm215_vm0, %v5823_v10 }
 0x209   : > { %v8048_v8 = vpop.f32.mrf.mxu0  ;;  %v8050_v54 = vpop.f32.mrf.mxu1  ;;  %6717 = vmatmul.mubr.msk.f32.vlgmr.msra.gmra.mxu1 %vm202_vm1, %v5803_v33  ;;  %5914 = vmatprep.mubr.f32.mxu0 %v8624_v55 }
 0x20a   : > { %8706 = vst [vmem:[#allocation100_spill] sm:$0xff] %v8048_v8  ;;  %8707 = vst [vmem:[#allocation101_spill] sm:$0xff] %v8050_v54  ;;  %v5805_v58 = vpop.permute.xlu0 %5804  ;;  %v5807_v3 = vpop.permute.xlu1 %5806 }
 0x20b   : > { %v8054_v30 = vpop.f32.mrf.mxu0  ;;  %6719 = vmatprep.mubr.msk.f32.mxu1 %vm202_vm1, %v5805_v58  ;;  %v8058_v62 = vpop.f32.mrf.mxu1 }
 0x20c   : > { %8708 = vst [vmem:[#allocation102_spill] sm:$0xff] %v8054_v30  ;;  %6386 = vmatmul.mubr.msk.f32.gmra.mxu0 %vm202_vm1, %v5805_v58  ;;  %8709 = vst [vmem:[#allocation103_spill] sm:$0xff] %v8058_v62 }
 0x20d   : > { %v8060_v41 = vpop.f32.mrf.mxu0  ;;  %6720 = vmatmul.mubr.msk.f32.gmra.mxu1 %vm202_vm1, %v5807_v3  ;;  %5920 = vmatprep.mubr.f32.mxu0 %v8624_v55  ;;  %v8067_v33 = vpop.f32.mrf.mxu1 }
 0x20e   : > { %8710 = vst [vmem:[#allocation104_spill] sm:$0xff] %v8060_v41  ;;  %8712 = vst [vmem:[#allocation106_spill] sm:$0xff] %v8067_v33 }
 0x20f   : > { %v8064_v10 = vpop.f32.mrf.mxu0  ;;  %v8071_v30 = vpop.f32.mrf.mxu1 }
 0x210   : > { %8711 = vst [vmem:[#allocation105_spill] sm:$0xff] %v8064_v10  ;;  %6387 = vmatmul.mubr.msk.f32.gmra.mxu0 %vm202_vm1, %v5807_v3  ;;  %8714 = vst [vmem:[#allocation108_spill] sm:$0xff] %v8071_v30 }
 0x211   : > { %v8069_v29 = vpop.f32.mrf.mxu0 }
 0x212   : > { %8713 = vst [vmem:[#allocation107_spill] sm:$0xff] %v8069_v29 }
 0x213   : > { %v8073_v13 = vpop.f32.mrf.mxu0 }
 0x214   : > { %8715 = vst [vmem:[#allocation109_spill] sm:$0xff] %v8073_v13 }
 0x216   : > { %v181_v58 = vpop.permute.xlu1 %180  ;;  %v176_v8 = vpop.permute.xlu0 %175 }
 0x217   : > { %v399_v41 = vadd.f32 %v7493_v46, %v181_v58  ;;  %v400_v62 = vadd.f32 %v7501_v53, %v181_v58  ;;  %v401_v55 = vadd.f32 %v7489_v45, %v181_v58  ;;  %v396_v10 = vadd.f32 %v7468_v36, %v176_v8  ;;  %v8079_v57 = vpop.f32.mrf.mxu1 }
 0x218   : > { %v397_v3 = vadd.f32 %v7481_v39, %v176_v8  ;;  %v398_v33 = vadd.f32 %v7497_v51, %v176_v8  ;;  %v8083_v29 = vpop.f32.mrf.mxu0 }
 0x219   : > { %v633_v13 = vadd.f32 %v7545_v18, %v399_v41  ;;  %v634_v30 = vadd.f32 %v7552_v21, %v400_v62  ;;  %v635_v46 = vadd.f32 %v7535_v12, %v401_v55  ;;  %v630_v53 = vadd.f32 %v7533_v11, %v396_v10  ;;  %v8089_v54 = vpop.f32.mrf.mxu1 }
 0x21a   : > { %v631_v36 = vadd.f32 %v7539_v14, %v397_v3  ;;  %v632_v45 = vadd.f32 %v7541_v15, %v398_v33  ;;  %v186_v58 = vpop.permute.xlu1 %185  ;;  %v8097_v21 = vpop.f32.mrf.mxu0 }
 0x21b   : > { %v867_v39 = vadd.f32 %v7587_v37, %v633_v13  ;;  %v868_v51 = vadd.f32 %v7595_v43, %v634_v30  ;;  %v869_v8 = vadd.f32 %v7592_v42, %v635_v46  ;;  %v864_v18 = vadd.f32 %v7570_v28, %v630_v53  ;;  %v8099_v12 = vpop.f32.mrf.mxu1  ;;  %v191_v10 = vpop.permute.xlu0 %190  ;;  %v8716_v46 = vld [vmem:[#allocation13_spill] sm:$0xff]  ;;  %v8717_v53 = vld [vmem:[#allocation15_spill] sm:$0xff] }
 0x21c   : > { %v865_v11 = vadd.f32 %v7577_v35, %v631_v36  ;;  %v866_v41 = vadd.f32 %v7599_v48, %v632_v45  ;;  %v402_v14 = vadd.f32 %v7513_v60, %v186_v58  ;;  %v403_v15 = vadd.f32 %v7524_v2, %v186_v58  ;;  %v8119_v62 = vpop.f32.mrf.mxu0  ;;  %v8718_v36 = vld [vmem:[#allocation39_spill] sm:$0xff]  ;;  %v8719_v45 = vld [vmem:[#allocation40_spill] sm:$0xff] }
 0x21d   : > { %v1101_v37 = vadd.f32 %v7641_v32, %v867_v39  ;;  %v1102_v43 = vadd.f32 %v7647_v40, %v868_v51  ;;  %v1103_v42 = vadd.f32 %v7632_v22, %v869_v8  ;;  %v1098_v28 = vadd.f32 %v7628_v19, %v864_v18  ;;  %v8109_v30 = vpop.f32.mrf.mxu1  ;;  %v8721_v39 = vld [vmem:[#allocation5_spill] sm:$0xff] }
 0x21e   : > { %v1099_v13 = vadd.f32 %v7636_v23, %v865_v11  ;;  %v1100_v35 = vadd.f32 %v7643_v4, %v866_v41  ;;  %v404_v48 = vadd.f32 %v7520_v1, %v186_v58  ;;  %v636_v60 = vadd.f32 %v7556_v24, %v402_v14  ;;  %v8143_v3 = vpop.f32.mrf.mxu0  ;;  %v8720_v58 = vld [vmem:[#allocation16_spill] sm:$0xff]  ;;  %v8722_v8 = vld [vmem:[#allocation41_spill] sm:$0xff]  ;;  %v8723_v11 = vld [vmem:[#allocation42_spill] sm:$0xff] }
 0x21f   : > { %v1335_v2 = vadd.f32 %v7685_v5, %v1101_v37  ;;  %v1336_v32 = vadd.f32 %v7693_v0, %v1102_v43  ;;  %v1337_v40 = vadd.f32 %v7690_v26, %v1103_v42  ;;  %v1332_v22 = vadd.f32 %v7672_v16, %v1098_v28  ;;  %v8121_v19 = vpop.f32.mrf.mxu1  ;;  %v8724_v41 = vld [vmem:[#allocation19_spill] sm:$0xff]  ;;  %v8725_v14 = vld [vmem:[#allocation20_spill] sm:$0xff]  ;;  %v8726_v37 = vld [vmem:[#allocation50_spill] sm:$0xff] }
 0x220   : > { %v1333_v23 = vadd.f32 %v7677_v38, %v1099_v13  ;;  %v1334_v4 = vadd.f32 %v7697_v52, %v1100_v35  ;;  %v637_v1 = vadd.f32 %v7566_v27, %v403_v15  ;;  %v638_v24 = vadd.f32 %v7558_v25, %v404_v48  ;;  %v8727_v42 = vld [vmem:[#allocation54_spill] sm:$0xff]  ;;  %v8728_v13 = vld [vmem:[#allocation23_spill] sm:$0xff] }
 0x221   : > { %v1569_v5 = vadd.f32 %v7743_v17, %v1335_v2  ;;  %v8129_v0 = vadd.f32 %v7749_v50, %v1336_v32  ;;  %v1571_v16 = vadd.f32 %v7729_v20, %v1337_v40  ;;  %v1566_v26 = vadd.f32 %v7725_v31, %v1332_v22  ;;  %v8133_v33 = vpop.f32.mrf.mxu1  ;;  %v8729_v48 = vld [vmem:[#allocation6_spill] sm:$0xff]  ;;  %v8730_v40 = vld [vmem:[#allocation52_spill] sm:$0xff] }
 0x222   : > { %v1567_v38 = vadd.f32 %v7733_v44, %v1333_v23  ;;  %v1568_v52 = vadd.f32 %v7745_v47, %v1334_v4  ;;  %v870_v27 = vadd.f32 %v7601_v49, %v636_v60  ;;  %v871_v25 = vadd.f32 %v7606_v56, %v637_v1  ;;  %v8731_v23 = vld [vmem:[#allocation56_spill] sm:$0xff]  ;;  %v8732_v1 = vld [vmem:[#allocation25_spill] sm:$0xff] }
 0x223   : > { %v1800_v55 = vadd.f32 %v7778_v59, %v1566_v26  ;;  %v1805_v17 = vadd.f32 %v7792_v9, %v1571_v16  ;;  %v872_v50 = vadd.f32 %v7620_v7, %v638_v24  ;;  %v405_v20 = vadd.f32 %v7464_v34, %v191_v10  ;;  %v8145_v31 = vpop.f32.mrf.mxu1  ;;  %v8733_v16 = vld [vmem:[#allocation27_spill] sm:$0xff] }
 0x224   : > { %v1801_v44 = vadd.f32 %v7785_v61, %v1567_v38  ;;  %v1802_v47 = vadd.f32 %v7799_v63, %v1568_v52  ;;  %v1104_v49 = vadd.f32 %v8716_v46, %v870_v27  ;;  %v1105_v56 = vadd.f32 %v8717_v53, %v871_v25  ;;  %v8734_v38 = vld [vmem:[#allocation63_spill] sm:$0xff]  ;;  %v8735_v27 = vld [vmem:[#allocation64_spill] sm:$0xff]  ;;  %v8738_v46 = vld [vmem:[#allocation65_spill] sm:$0xff] }
 0x225   : > { %v2034_v59 = vadd.f32 %v8718_v36, %v1800_v55  ;;  %v2039_v9 = vadd.f32 %v8719_v45, %v1805_v17  ;;  %v1106_v7 = vadd.f32 %v8720_v58, %v872_v50  ;;  %v406_v34 = vadd.f32 %v8721_v39, %v191_v10  ;;  %v8155_v51 = vpop.f32.mrf.mxu0  ;;  %v8165_v2 = vpop.f32.mrf.mxu1  ;;  %v8736_v55 = vld [vmem:[#allocation28_spill] sm:$0xff]  ;;  %v8739_v53 = vld [vmem:[#allocation66_spill] sm:$0xff]  ;;  %v8740_v36 = vld [vmem:[#allocation33_spill] sm:$0xff] }
 0x226   : > { %v2035_v18 = vadd.f32 %v8722_v8, %v1801_v44  ;;  %v2036_v61 = vadd.f32 %v8723_v11, %v1802_v47  ;;  %v1338_v63 = vadd.f32 %v8724_v41, %v1104_v49  ;;  %v1339_v15 = vadd.f32 %v8725_v14, %v1105_v56  ;;  %v8737_v50 = vld [vmem:[#allocation8_spill] sm:$0xff]  ;;  %v8741_v45 = vld [vmem:[#allocation34_spill] sm:$0xff] }
 0x227   : > { %v2268_v43 = vadd.f32 %v8726_v37, %v2034_v59  ;;  %v2273_v28 = vadd.f32 %v8727_v42, %v2039_v9  ;;  %v1340_v35 = vadd.f32 %v8728_v13, %v1106_v7  ;;  %v407_v60 = vadd.f32 %v8729_v48, %v191_v10  ;;  %v8167_v32 = vpop.f32.mrf.mxu0  ;;  %v8742_v58 = vld [vmem:[#allocation74_spill] sm:$0xff]  ;;  %v8750_v48 = vld [vmem:[#allocation87_spill] sm:$0xff] }
 0x228   : > { %v2269_v22 = vadd.f32 %v8730_v40, %v2035_v18  ;;  %v2270_v4 = vadd.f32 %v8731_v23, %v2036_v61  ;;  %v1572_v24 = vadd.f32 %v8732_v1, %v1338_v63  ;;  %v1573_v26 = vadd.f32 %v8733_v16, %v1339_v15  ;;  %v8743_v39 = vld [vmem:[#allocation78_spill] sm:$0xff]  ;;  %v8744_v18 = vld [vmem:[#allocation37_spill] sm:$0xff]  ;;  %v8746_v63 = vld [vmem:[#allocation76_spill] sm:$0xff] }
 0x229   : > { %v2502_v52 = vadd.f32 %v8734_v38, %v2268_v43  ;;  %v2507_v25 = vadd.f32 %v8735_v27, %v2273_v28  ;;  %v1574_v17 = vadd.f32 %v8736_v55, %v1340_v35  ;;  %v639_v10 = vadd.f32 %v8737_v50, %v405_v20  ;;  %v8177_v44 = vpop.f32.mrf.mxu0  ;;  %v8179_v47 = vpop.f32.mrf.mxu1  ;;  %v8745_v61 = vld [vmem:[#allocation9_spill] sm:$0xff]  ;;  %v8747_v15 = vld [vmem:[#allocation80_spill] sm:$0xff]  ;;  %v8748_v43 = vld [vmem:[#allocation7_spill] sm:$0xff] }
 0x22a   : > { %v2503_v49 = vadd.f32 %v8738_v46, %v2269_v22  ;;  %v2504_v56 = vadd.f32 %v8739_v53, %v2270_v4  ;;  %v1806_v59 = vadd.f32 %v8740_v36, %v1572_v24  ;;  %v1807_v9 = vadd.f32 %v8741_v45, %v1573_v26  ;;  %v8749_v28 = vld [vmem:[#allocation11_spill] sm:$0xff]  ;;  %v8751_v22 = vld [vmem:[#allocation88_spill] sm:$0xff]  ;;  %v8754_v26 = vld [vmem:[#allocation89_spill] sm:$0xff] }
 0x22b   : > { %v2736_v7 = vadd.f32 %v8742_v58, %v2502_v52  ;;  %v2741_v8 = vadd.f32 %v8743_v39, %v2507_v25  ;;  %v1808_v11 = vadd.f32 %v8744_v18, %v1574_v17  ;;  %v640_v20 = vadd.f32 %v8745_v61, %v406_v34  ;;  %v8189_v41 = vpop.f32.mrf.mxu0  ;;  %v8195_v35 = vpop.f32.mrf.mxu1  ;;  %v8752_v4 = vld [vmem:[#allocation12_spill] sm:$0xff]  ;;  %v8753_v24 = vld [vmem:[#allocation31_spill] sm:$0xff]  ;;  %v8756_v25 = vld [vmem:[#allocation10_spill] sm:$0xff] }
 0x22c   : > { %v2737_v14 = vadd.f32 %v8746_v63, %v2503_v49  ;;  %v2738_v37 = vadd.f32 %v8747_v15, %v2504_v56  ;;  %v641_v42 = vadd.f32 %v8748_v43, %v407_v60  ;;  %v873_v13 = vadd.f32 %v8749_v28, %v639_v10  ;;  %v8755_v52 = vld [vmem:[#allocation91_spill] sm:$0xff]  ;;  %v8757_v55 = vld [vmem:[#allocation17_spill] sm:$0xff]  ;;  %v8759_v49 = vld [vmem:[#allocation18_spill] sm:$0xff] }
 0x22d   : > { %v2970_v40 = vadd.f32 %v8750_v48, %v2736_v7  ;;  %v2975_v23 = vadd.f32 %v8751_v22, %v2741_v8  ;;  %v874_v1 = vadd.f32 %v8752_v4, %v640_v20  ;;  %v1803_v34 = vadd.f32 %v8753_v24, %v1569_v5  ;;  %v8201_v16 = vpop.f32.mrf.mxu0  ;;  %v8758_v10 = vld [vmem:[#allocation101_spill] sm:$0xff]  ;;  %v8760_v56 = vld [vmem:[#allocation43_spill] sm:$0xff]  ;;  %v8763_v8 = vld [vmem:[#allocation14_spill] sm:$0xff]  ;;  %v8217_v63 = vpop.f32.mrf.mxu1 }
 0x22e   : > { %v2971_v38 = vadd.f32 %v8754_v26, %v2737_v14  ;;  %v2972_v27 = vadd.f32 %v8755_v52, %v2738_v37  ;;  %v875_v60 = vadd.f32 %v8756_v25, %v641_v42  ;;  %v1107_v17 = vadd.f32 %v8757_v55, %v873_v13  ;;  %v8761_v5 = vld [vmem:[#allocation99_spill] sm:$0xff]  ;;  %v8764_v61 = vld [vmem:[#allocation22_spill] sm:$0xff]  ;;  %v8765_v15 = vld [vmem:[#allocation24_spill] sm:$0xff] }
 0x22f   : > { %v3204_v50 = vadd.f32 %v8037_v6, %v2970_v40  ;;  %v3209_v46 = vadd.f32 %v8758_v10, %v2975_v23  ;;  %v1108_v53 = vadd.f32 %v8759_v49, %v874_v1  ;;  %v2037_v36 = vadd.f32 %v8760_v56, %v1803_v34  ;;  %v8211_v45 = vpop.f32.mrf.mxu0  ;;  %v8762_v7 = vld [vmem:[#allocation103_spill] sm:$0xff]  ;;  %v8766_v43 = vld [vmem:[#allocation53_spill] sm:$0xff]  ;;  %v8771_v34 = vld [vmem:[#allocation32_spill] sm:$0xff]  ;;  %v8244_v10 = vpop.f32.mrf.mxu1 }
 0x230   : > { %v3205_v58 = vadd.f32 %v8761_v5, %v2971_v38  ;;  %v3206_v39 = vadd.f32 %v8762_v7, %v2972_v27  ;;  %v1109_v18 = vadd.f32 %v8763_v8, %v875_v60  ;;  %v1341_v20 = vadd.f32 %v8764_v61, %v1107_v17  ;;  %v8767_v48 = vld [vmem:[#allocation21_spill] sm:$0xff]  ;;  %v8772_v38 = vld [vmem:[#allocation48_spill] sm:$0xff]  ;;  %v8775_v60 = vld [vmem:[#allocation46_spill] sm:$0xff] }
 0x231   : > { %v3438_v6 = vadd.f32 %v8079_v57, %v3204_v50  ;;  %v8221_v14 = vadd.f32 %v8083_v29, %v3209_v46  ;;  %v1342_v37 = vadd.f32 %v8765_v15, %v1108_v53  ;;  %v2271_v42 = vadd.f32 %v8766_v43, %v2037_v36  ;;  %v8768_v22 = vld [vmem:[#allocation29_spill] sm:$0xff]  ;;  %v8233_v4 = vpop.f32.mrf.mxu0  ;;  %v8769_v57 = vld [vmem:[#allocation30_spill] sm:$0xff]  ;;  %v8770_v29 = vld [vmem:[#allocation67_spill] sm:$0xff] }
 0x232   : > { %v8226_v28 = vadd.f32 %v8089_v54, %v3205_v58  ;;  %v8229_v13 = vadd.f32 %v8097_v21, %v3206_v39  ;;  %v1343_v40 = vadd.f32 %v8767_v48, %v1109_v18  ;;  %v1575_v23 = vadd.f32 %v8768_v22, %v1341_v20  ;;  %v8773_v54 = vld [vmem:[#allocation26_spill] sm:$0xff]  ;;  %v8774_v25 = vld [vmem:[#allocation36_spill] sm:$0xff]  ;;  %v8776_v17 = vld [vmem:[#allocation47_spill] sm:$0xff] }
 0x233   : > { %v1576_v1 = vadd.f32 %v8769_v57, %v1342_v37  ;;  %v2505_v24 = vadd.f32 %v8770_v29, %v2271_v42  ;;  %v1804_v26 = vadd.f32 %v8771_v34, %v8129_v0  ;;  %v2042_v52 = vadd.f32 %v8772_v38, %v1808_v11  ;;  %v8777_v46 = vld [vmem:[#allocation38_spill] sm:$0xff]  ;;  %v8778_v53 = vld [vmem:[#allocation77_spill] sm:$0xff]  ;;  %v8779_v36 = vld [vmem:[#allocation44_spill] sm:$0xff]  ;;  %v8254_v15 = vpop.f32.mrf.mxu0 }
 0x234   : > { %v1577_v27 = vadd.f32 %v8773_v54, %v1343_v40  ;;  %v1809_v21 = vadd.f32 %v8774_v25, %v1575_v23  ;;  %v2040_v55 = vadd.f32 %v8775_v60, %v1806_v59  ;;  %v2041_v50 = vadd.f32 %v8776_v17, %v1807_v9  ;;  %v8780_v58 = vld [vmem:[#allocation61_spill] sm:$0xff]  ;;  %v8781_v7 = vld [vmem:[#allocation35_spill] sm:$0xff]  ;;  %v8783_v18 = vld [vmem:[#allocation58_spill] sm:$0xff] }
 0x235   : > { %v1810_v49 = vadd.f32 %v8777_v46, %v1576_v1  ;;  %v2739_v56 = vadd.f32 %v8778_v53, %v2505_v24  ;;  %v2038_v5 = vadd.f32 %v8779_v36, %v1804_v26  ;;  %v2276_v0 = vadd.f32 %v8780_v58, %v2042_v52  ;;  %v8782_v39 = vld [vmem:[#allocation57_spill] sm:$0xff]  ;;  %v8785_v37 = vld [vmem:[#allocation90_spill] sm:$0xff]  ;;  %v8786_v42 = vld [vmem:[#allocation55_spill] sm:$0xff] }
 0x236   : > { %v1811_v11 = vadd.f32 %v8781_v7, %v1577_v27  ;;  %v2274_v8 = vadd.f32 %v8782_v39, %v2040_v55  ;;  %v2275_v61 = vadd.f32 %v8783_v18, %v2041_v50  ;;  %v8784_v20 = vld [vmem:[#allocation49_spill] sm:$0xff]  ;;  %v8256_v9 = vpop.f32.mrf.mxu1  ;;  %v8787_v40 = vld [vmem:[#allocation72_spill] sm:$0xff]  ;;  %v8788_v23 = vld [vmem:[#allocation51_spill] sm:$0xff] }
 0x237   : > { %v2043_v59 = vadd.f32 %v8784_v20, %v1809_v21  ;;  %v2973_v43 = vadd.f32 %v8785_v37, %v2739_v56  ;;  %v2272_v48 = vadd.f32 %v8786_v42, %v2038_v5  ;;  %v2510_v22 = vadd.f32 %v8787_v40, %v2276_v0  ;;  %v8789_v1 = vld [vmem:[#allocation45_spill] sm:$0xff]  ;;  %v8790_v24 = vld [vmem:[#allocation70_spill] sm:$0xff]  ;;  %v8791_v26 = vld [vmem:[#allocation71_spill] sm:$0xff] }
 0x238   : > { %v2044_v57 = vadd.f32 %v8788_v23, %v1810_v49  ;;  %v2045_v29 = vadd.f32 %v8789_v1, %v1811_v11  ;;  %v2508_v34 = vadd.f32 %v8790_v24, %v2274_v8  ;;  %v2509_v38 = vadd.f32 %v8791_v26, %v2275_v61  ;;  %v8792_v52 = vld [vmem:[#allocation60_spill] sm:$0xff]  ;;  %v6646_v27 = vpop.f32.mrf.mxu0  ;;  %v3800_v25 = vpop.f32.mrf.mxu1  ;;  %v8795_v50 = vld [vmem:[#allocation85_spill] sm:$0xff]  ;;  %v8796_v53 = vld [vmem:[#allocation62_spill] sm:$0xff] }
 0x239   : > { %v2277_v54 = vadd.f32 %v8792_v52, %v2043_v59  ;;  %v8793_v21 = vld [vmem:[#allocation100_spill] sm:$0xff]  ;;  %v2744_v46 = vadd.f32 %v8795_v50, %v2510_v22  ;;  %v8797_v36 = vld [vmem:[#allocation59_spill] sm:$0xff]  ;;  %v8798_v5 = vld [vmem:[#allocation81_spill] sm:$0xff] }
 0x23a   : > { %v3207_v60 = vadd.f32 %v8793_v21, %v2973_v43  ;;  %v8794_v55 = vld [vmem:[#allocation68_spill] sm:$0xff]  ;;  %v2278_v56 = vadd.f32 %v8796_v53, %v2044_v57  ;;  %v2279_v49 = vadd.f32 %v8797_v36, %v2045_v29  ;;  %v2742_v58 = vadd.f32 %v8798_v5, %v2508_v34  ;;  %v8799_v0 = vld [vmem:[#allocation82_spill] sm:$0xff]  ;;  %v8800_v11 = vld [vmem:[#allocation73_spill] sm:$0xff]  ;;  %v3804_v8 = vpop.f32.mrf.mxu1 }
 0x23b   : > { %v2506_v17 = vadd.f32 %v8794_v55, %v2272_v48  ;;  %v2743_v7 = vadd.f32 %v8799_v0, %v2509_v38  ;;  %v2511_v39 = vadd.f32 %v8800_v11, %v2277_v54  ;;  %v8801_v61 = vld [vmem:[#allocation79_spill] sm:$0xff]  ;;  %v8802_v59 = vld [vmem:[#allocation96_spill] sm:$0xff]  ;;  %v3887_v48 = vpop.f32.mrf.mxu0  ;;  %v8804_v40 = vld [vmem:[#allocation69_spill] sm:$0xff]  ;;  %v3672_v55 = vadd.f32 %v8155_v51, %v3438_v6 }
 0x23c   : > { %v3441_v18 = vadd.f32 %v8099_v12, %v3207_v60  ;;  %v2978_v37 = vadd.f32 %v8802_v59, %v2744_v46  ;;  %v8803_v43 = vld [vmem:[#allocation75_spill] sm:$0xff]  ;;  %v2513_v22 = vadd.f32 %v8804_v40, %v2279_v49  ;;  %v8805_v23 = vld [vmem:[#allocation93_spill] sm:$0xff]  ;;  %v8807_v24 = vld [vmem:[#allocation84_spill] sm:$0xff]  ;;  %v3806_v26 = vpop.f32.mrf.mxu1 }
 0x23d   : > { %v2740_v20 = vadd.f32 %v8801_v61, %v2506_v17  ;;  %v2512_v42 = vadd.f32 %v8803_v43, %v2278_v56  ;;  %v2976_v57 = vadd.f32 %v8805_v23, %v2742_v58  ;;  %v8806_v1 = vld [vmem:[#allocation95_spill] sm:$0xff]  ;;  %v2745_v34 = vadd.f32 %v8807_v24, %v2511_v39  ;;  %v8808_v38 = vld [vmem:[#allocation92_spill] sm:$0xff]  ;;  %v8810_v21 = vld [vmem:[#allocation86_spill] sm:$0xff]  ;;  %v6649_v59 = vpop.f32.mrf.mxu0 }
 0x23e   : > { %v2977_v29 = vadd.f32 %v8806_v1, %v2743_v7  ;;  %v8809_v54 = vld [vmem:[#allocation108_spill] sm:$0xff]  ;;  %v8811_v17 = vld [vmem:[#allocation83_spill] sm:$0xff]  ;;  %v8813_v56 = vld [vmem:[#allocation105_spill] sm:$0xff]  ;;  %v3810_v58 = vpop.f32.mrf.mxu1 }
 0x23f   : > { %v2974_v52 = vadd.f32 %v8808_v38, %v2740_v20  ;;  %v3212_v12 = vadd.f32 %v8809_v54, %v2978_v37  ;;  %v2746_v60 = vadd.f32 %v8810_v21, %v2512_v42  ;;  %v2747_v50 = vadd.f32 %v8811_v17, %v2513_v22  ;;  %v8812_v46 = vld [vmem:[#allocation104_spill] sm:$0xff]  ;;  %v8814_v49 = vld [vmem:[#allocation97_spill] sm:$0xff]  ;;  %v8815_v0 = vld [vmem:[#allocation102_spill] sm:$0xff] }
 0x240   : > { %v3210_v53 = vadd.f32 %v8812_v46, %v2976_v57  ;;  %v3211_v36 = vadd.f32 %v8813_v56, %v2977_v29  ;;  %v2979_v5 = vadd.f32 %v8814_v49, %v2745_v34  ;;  %v8816_v39 = vld [vmem:[#allocation98_spill] sm:$0xff]  ;;  %v3673_v20 = vadd.f32 %v8167_v32, %v8226_v28  ;;  %v8818_v42 = vld [vmem:[#allocation107_spill] sm:$0xff]  ;;  %v3812_v22 = vpop.f32.mrf.mxu1  ;;  %v8819_v57 = vld [vmem:[#allocation109_spill] sm:$0xff] }
 0x241   : > { %v3208_v7 = vadd.f32 %v8815_v0, %v2974_v52  ;;  %v3446_v11 = vadd.f32 %v8143_v3, %v3212_v12  ;;  %v2980_v61 = vadd.f32 %v8816_v39, %v2746_v60  ;;  %v8817_v51 = vld [vmem:[#allocation94_spill] sm:$0xff]  ;;  %v3675_v3 = vadd.f32 %v8177_v44, %v3441_v18  ;;  %v3897_v18 = vpop.f32.mrf.mxu0 }
 0x242   : > { %v2981_v6 = vadd.f32 %v8817_v51, %v2747_v50  ;;  %v3444_v37 = vadd.f32 %v8121_v19, %v3210_v53  ;;  %v3445_v43 = vadd.f32 %v8133_v33, %v3211_v36  ;;  %v3213_v40 = vadd.f32 %v8818_v42, %v2979_v5  ;;  %v8820_v32 = vld [vmem:[#allocation106_spill] sm:$0xff]  ;;  %v3816_v34 = vpop.f32.mrf.mxu1 }
 0x243   : > { %v3442_v23 = vadd.f32 %v8109_v30, %v3208_v7  ;;  %v3214_v1 = vadd.f32 %v8819_v57, %v2980_v61  ;;  %v3677_v29 = vadd.f32 %v8179_v47, %v8221_v14  ;;  %v3674_v19 = vadd.f32 %v8195_v35, %v8229_v13 }
 0x244   : > { %v3215_v28 = vadd.f32 %v8820_v32, %v2981_v6  ;;  %v3447_v24 = vadd.f32 %v8145_v31, %v3213_v40  ;;  %v3678_v33 = vadd.f32 %v8201_v16, %v3444_v37  ;;  %v3679_v52 = vadd.f32 %v8211_v45, %v3445_v43  ;;  %v3818_v35 = vpop.f32.mrf.mxu1 }
 0x245   : > { %v3448_v38 = vadd.f32 %v8165_v2, %v3214_v1  ;;  %v3676_v30 = vadd.f32 %v8189_v41, %v3442_v23  ;;  %v3680_v44 = vadd.f32 %v8244_v10, %v3446_v11  ;;  %v3906_v31 = vadd.f32 %v8256_v9, %v3672_v55  ;;  %v4032_v21 = vpop.f32.mrf.mxu0 }
 0x246   : > { %v3449_v47 = vadd.f32 %v8119_v62, %v3215_v28  ;;  %v3681_v14 = vadd.f32 %v8233_v4, %v3447_v24  ;;  %v3911_v54 = vadd.f32 %v6646_v27, %v3677_v29  ;;  %v3907_v13 = vadd.f32 %v3800_v25, %v3673_v20 }
 0x247   : > { %v3682_v16 = vadd.f32 %v8254_v15, %v3448_v38  ;;  %v3908_v12 = vadd.f32 %v3887_v48, %v3674_v19  ;;  %v3909_v2 = vadd.f32 %v3804_v8, %v3675_v3  ;;  %v3910_v45 = vadd.f32 %v3806_v26, %v3676_v30  ;;  %v4034_v4 = vpop.f32.mrf.mxu0 }
 0x248   : > { %v3683_v41 = vadd.f32 %v8217_v63, %v3449_v47  ;;  %v3914_v60 = vadd.f32 %v3897_v18, %v3680_v44  ;;  %v3912_v10 = vadd.f32 %v3810_v58, %v3678_v33  ;;  %v3913_v17 = vadd.f32 %v3812_v22, %v3679_v52 }
 0x249   : > { %v3915_v50 = vadd.f32 %v3816_v34, %v3681_v14  ;;  %v3916_v62 = vadd.f32 %v3818_v35, %v3682_v16  ;;  %v4140_v46 = vadd.f32 %v4032_v21, %v3906_v31  ;;  %v4141_v9 = vadd.f32 %v4034_v4, %v3907_v13  ;;  %v4038_v27 = vpop.f32.mrf.mxu0  ;;  %v6654_v55 = vpop.f32.mrf.mxu1 }
 0x24a   : > { %v3917_v53 = vadd.f32 %v6649_v59, %v3683_v41  ;;  %v4143_v56 = vadd.f32 %v4038_v27, %v3909_v2  ;;  %v4145_v15 = vadd.f32 %v6654_v55, %v3911_v54 }
 0x24b   : > { %v4040_v25 = vpop.f32.mrf.mxu0  ;;  %v4121_v48 = vpop.f32.mrf.mxu1 }
 0x24c   : > { %v4144_v8 = vadd.f32 %v4040_v25, %v3910_v45  ;;  %v4142_v36 = vadd.f32 %v4121_v48, %v3908_v12 }
 0x24d   : > { %v4044_v49 = vpop.f32.mrf.mxu0  ;;  %v6657_v63 = vpop.f32.mrf.mxu1 }
 0x24e   : > { %v4146_v26 = vadd.f32 %v4044_v49, %v3912_v10  ;;  %v4151_v5 = vadd.f32 %v6657_v63, %v3917_v53 }
 0x24f   : > { %v4046_v58 = vpop.f32.mrf.mxu0  ;;  %v4131_v0 = vpop.f32.mrf.mxu1 }
 0x250   : > { %v4147_v7 = vadd.f32 %v4046_v58, %v3913_v17  ;;  %v4148_v11 = vadd.f32 %v4131_v0, %v3914_v60 }
 0x251   : > { %v4050_v39 = vpop.f32.mrf.mxu0 }
 0x252   : > { %v4149_v61 = vadd.f32 %v4050_v39, %v3915_v50 }
 0x253   : > { %v4052_v20 = vpop.f32.mrf.mxu0 }
 0x254   : > { %v4150_v59 = vadd.f32 %v4052_v20, %v3916_v62 }
 0x256   : > { %v4266_v51 = vpop.f32.mrf.mxu1 }
 0x257   : > { %v8318_v6 = vadd.f32 %v4266_v51, %v4140_v46 }
 0x258   : > { %v6662_v37 = vpop.f32.mrf.mxu0  ;;  %v4268_v43 = vpop.f32.mrf.mxu1 }
 0x259   : > { %v8320_v42 = vadd.f32 %v6662_v37, %v4145_v15  ;;  %v8322_v40 = vadd.f32 %v4268_v43, %v4141_v9 }
 0x25a   : > { %v4355_v22 = vpop.f32.mrf.mxu0  ;;  %v4272_v23 = vpop.f32.mrf.mxu1 }
 0x25b   : > { %v8324_v57 = vadd.f32 %v4355_v22, %v4142_v36  ;;  %v8326_v1 = vadd.f32 %v4272_v23, %v4143_v56 }
 0x25c   : > { %v6665_v3 = vpop.f32.mrf.mxu0  ;;  %v4274_v29 = vpop.f32.mrf.mxu1 }
 0x25d   : > { %v8328_v32 = vadd.f32 %v6665_v3, %v4151_v5  ;;  %v8330_v28 = vadd.f32 %v4274_v29, %v4144_v8 }
 0x25e   : > { %v4365_v24 = vpop.f32.mrf.mxu0  ;;  %v4278_v19 = vpop.f32.mrf.mxu1 }
 0x25f   : > { %v8332_v33 = vadd.f32 %v4365_v24, %v4148_v11  ;;  %v8334_v34 = vadd.f32 %v4278_v19, %v4146_v26 }
 0x260   : > { %v4280_v38 = vpop.f32.mrf.mxu1 }
 0x261   : > { %v8336_v30 = vadd.f32 %v4280_v38, %v4147_v7 }
 0x262   : > { %v4284_v52 = vpop.f32.mrf.mxu1 }
 0x263   : > { %v8338_v44 = vadd.f32 %v4284_v52, %v4149_v61 }
 0x264   : > { %v4286_v18 = vpop.f32.mrf.mxu1  ;;  %v8340_v47 = vpop.f32.mrf.mxu0 }
 0x265   : > { %v8342_v14 = vadd.f32 %v4286_v18, %v4150_v59 }
 0x266   : > { %v8344_v31 = vpop.f32.mrf.mxu0 }
 0x268   : > { %v8346_v54 = vpop.f32.mrf.mxu0  ;;  %v8348_v35 = vpop.f32.mrf.mxu1 }
 0x26a   : > { %v8350_v16 = vpop.f32.mrf.mxu0  ;;  %v8352_v13 = vpop.f32.mrf.mxu1 }
 0x26c   : > { %v8354_v12 = vpop.f32.mrf.mxu0  ;;  %v8358_v21 = vpop.f32.mrf.mxu1 }
 0x26e   : > { %v8356_v2 = vpop.f32.mrf.mxu0  ;;  %v8362_v45 = vpop.f32.mrf.mxu1 }
 0x270   : > { %v8360_v41 = vpop.f32.mrf.mxu0 }
 0x272   : > { %v8364_v60 = vpop.f32.mrf.mxu0 }
 0x276   : > { %v4734_v10 = vpop.f32.mrf.mxu1 }
 0x277   : > { %v8366_v17 = vpop.f32.mrf.mxu0 }
 0x278   : > { %v4736_v50 = vpop.f32.mrf.mxu1 }
 0x279   : > { %v8368_v62 = vpop.f32.mrf.mxu0 }
 0x27a   : > { %v8370_v46 = vpop.f32.mrf.mxu1 }
 0x27b   : > { %v8374_v53 = vpop.f32.mrf.mxu0 }
 0x27c   : > { %v8372_v4 = vpop.f32.mrf.mxu1 }
 0x27d   : > { %v8380_v55 = vpop.f32.mrf.mxu0 }
 0x27e   : > { %v8376_v9 = vpop.f32.mrf.mxu1 }
 0x280   : > { %v8378_v27 = vpop.f32.mrf.mxu1 }
 0x282   : > { %v8382_v56 = vpop.f32.mrf.mxu1 }
 0x284   : > { %v4968_v15 = vpop.f32.mrf.mxu0  ;;  %v8386_v48 = vpop.f32.mrf.mxu1 }
 0x286   : > { %v8384_v25 = vpop.f32.mrf.mxu0 }
 0x288   : > { %v8388_v8 = vpop.f32.mrf.mxu0 }
 0x289   : > { %v8390_v36 = vpop.f32.mrf.mxu1 }
 0x28a   : > { %v8392_v49 = vpop.f32.mrf.mxu0 }
 0x28b   : > { %v8394_v63 = vpop.f32.mrf.mxu1 }
 0x28c   : > { %v8396_v26 = vpop.f32.mrf.mxu0 }
 0x28d   : > { %v8400_v58 = vpop.f32.mrf.mxu1 }
 0x28e   : > { %v8398_v5 = vpop.f32.mrf.mxu0 }
 0x28f   : > { %v8404_v7 = vpop.f32.mrf.mxu1 }
 0x290   : > { %v8402_v0 = vpop.f32.mrf.mxu0  ;;  %8822 = vst [vmem:[#allocation15_spill] sm:$0xff] %v8404_v7 }
 0x291   : > { %8821 = vst [vmem:[#allocation13_spill] sm:$0xff] %v8402_v0 }
 0x292   : > { %v8406_v11 = vpop.f32.mrf.mxu0 }
 0x293   : > { %8823 = vst [vmem:[#allocation39_spill] sm:$0xff] %v8406_v11 }
 0x296   : > { %v5202_v39 = vpop.f32.mrf.mxu1 }
 0x297   : > { %v8408_v61 = vpop.f32.mrf.mxu0 }
 0x298   : > { %v5204_v20 = vpop.f32.mrf.mxu1 }
 0x299   : > { %v8410_v59 = vpop.f32.mrf.mxu0 }
 0x29a   : > { %8824 = vst [vmem:[#allocation40_spill] sm:$0xff] %v8410_v59  ;;  %v8412_v51 = vpop.f32.mrf.mxu1 }
 0x29b   : > { %v8416_v43 = vpop.f32.mrf.mxu0 }
 0x29c   : > { %v8414_v37 = vpop.f32.mrf.mxu1  ;;  %8825 = vst [vmem:[#allocation16_spill] sm:$0xff] %v8416_v43 }
 0x29d   : > { %v8422_v3 = vpop.f32.mrf.mxu0 }
 0x29e   : > { %v8418_v22 = vpop.f32.mrf.mxu1  ;;  %8828 = vst [vmem:[#allocation42_spill] sm:$0xff] %v8422_v3 }
 0x29f   : > { %8826 = vst [vmem:[#allocation5_spill] sm:$0xff] %v8418_v22 }
 0x2a0   : > { %v8420_v23 = vpop.f32.mrf.mxu1 }
 0x2a1   : > { %8827 = vst [vmem:[#allocation41_spill] sm:$0xff] %v8420_v23 }
 0x2a2   : > { %v8424_v29 = vpop.f32.mrf.mxu1 }
 0x2a3   : > { %8829 = vst [vmem:[#allocation19_spill] sm:$0xff] %v8424_v29 }
 0x2a4   : > { %v5436_v24 = vpop.f32.mrf.mxu0  ;;  %v8426_v38 = vpop.f32.mrf.mxu1 }
 0x2a5   : > { %8830 = vst [vmem:[#allocation20_spill] sm:$0xff] %v8426_v38 }
 0x2a6   : > { %v5438_v19 = vpop.f32.mrf.mxu0 }
 0x2a8   : > { %v8428_v52 = vpop.f32.mrf.mxu0 }
 0x2a9   : > { %v8430_v18 = vpop.f32.mrf.mxu1 }
 0x2aa   : > { %8831 = vst [vmem:[#allocation50_spill] sm:$0xff] %v8430_v18  ;;  %v8432_v11 = vpop.f32.mrf.mxu0 }
 0x2ab   : > { %8832 = vst [vmem:[#allocation54_spill] sm:$0xff] %v8432_v11  ;;  %v8434_v59 = vpop.f32.mrf.mxu1 }
 0x2ac   : > { %8833 = vst [vmem:[#allocation23_spill] sm:$0xff] %v8434_v59  ;;  %v8436_v43 = vpop.f32.mrf.mxu0  ;;  %v4608_v59 = vadd.f32 %v8340_v47, %v8318_v6  ;;  %v4614_v6 = vadd.f32 %v8354_v12, %v8334_v34 }
 0x2ad   : > { %8834 = vst [vmem:[#allocation6_spill] sm:$0xff] %v8436_v43  ;;  %v8440_v23 = vpop.f32.mrf.mxu1 }
 0x2ae   : > { %v8438_v22 = vpop.f32.mrf.mxu0  ;;  %8836 = vst [vmem:[#allocation56_spill] sm:$0xff] %v8440_v23  ;;  %v4612_v23 = vadd.f32 %v8350_v16, %v8330_v28  ;;  %v4618_v28 = vadd.f32 %v8364_v60, %v8342_v14  ;;  %v4848_v14 = vadd.f32 %v8376_v9, %v4614_v6  ;;  %v8848_v6 = vld [vmem:[#allocation16_spill] sm:$0xff] }
 0x2af   : > { %8835 = vst [vmem:[#allocation52_spill] sm:$0xff] %v8438_v22  ;;  %v8444_v29 = vpop.f32.mrf.mxu1  ;;  %v4609_v22 = vadd.f32 %v8344_v31, %v8322_v40  ;;  %v4619_v40 = vadd.f32 %v8358_v21, %v8328_v32 }
 0x2b0   : > { %v8442_v3 = vpop.f32.mrf.mxu0  ;;  %8838 = vst [vmem:[#allocation27_spill] sm:$0xff] %v8444_v29  ;;  %v4842_v29 = vadd.f32 %v4734_v10, %v4608_v59  ;;  %v8842_v59 = vld [vmem:[#allocation13_spill] sm:$0xff] }
 0x2b1   : > { %8837 = vst [vmem:[#allocation25_spill] sm:$0xff] %v8442_v3  ;;  %v4611_v3 = vadd.f32 %v8346_v54, %v8326_v1  ;;  %v4615_v1 = vadd.f32 %v8356_v2, %v8336_v30  ;;  %v4843_v31 = vadd.f32 %v4736_v50, %v4609_v22  ;;  %v4852_v50 = vadd.f32 %v8386_v48, %v4618_v28  ;;  %v8843_v22 = vld [vmem:[#allocation40_spill] sm:$0xff]  ;;  %v8851_v28 = vld [vmem:[#allocation41_spill] sm:$0xff] }
 0x2b2   : > { %v8446_v0 = vpop.f32.mrf.mxu0  ;;  %v5076_v54 = vadd.f32 %v4968_v15, %v4842_v29 }
 0x2b3   : > { %8839 = vst [vmem:[#allocation63_spill] sm:$0xff] %v8446_v0  ;;  %v4613_v0 = vadd.f32 %v8348_v35, %v8320_v42  ;;  %v4616_v42 = vadd.f32 %v8362_v45, %v8332_v33  ;;  %v4845_v16 = vadd.f32 %v8370_v46, %v4611_v3  ;;  %v4853_v33 = vadd.f32 %v8374_v53, %v4619_v40 }
 0x2b4   : > { %v5310_v12 = vadd.f32 %v5202_v39, %v5076_v54  ;;  %v8841_v39 = vld [vmem:[#allocation15_spill] sm:$0xff] }
 0x2b5   : > { %v4847_v34 = vadd.f32 %v8366_v17, %v4613_v0  ;;  %v4850_v2 = vadd.f32 %v8380_v55, %v4616_v42  ;;  %v5079_v45 = vadd.f32 %v8388_v8, %v4845_v16  ;;  %v5087_v8 = vadd.f32 %v8400_v58, %v4853_v33  ;;  %v8853_v33 = vld [vmem:[#allocation42_spill] sm:$0xff] }
 0x2b6   : > { %v5670_v38 = vpop.f32.mrf.mxu1  ;;  %v5544_v10 = vadd.f32 %v5436_v24, %v5310_v12  ;;  %v8846_v24 = vld [vmem:[#allocation54_spill] sm:$0xff] }
 0x2b7   : > { %v8448_v7 = vpop.f32.mrf.mxu0  ;;  %v5313_v9 = vadd.f32 %v8412_v51, %v5079_v45  ;;  %v5321_v40 = vadd.f32 %v8848_v6, %v5087_v8  ;;  %v8858_v8 = vld [vmem:[#allocation20_spill] sm:$0xff] }
 0x2b8   : > { %8840 = vst [vmem:[#allocation64_spill] sm:$0xff] %v8448_v7  ;;  %v5672_v18 = vpop.f32.mrf.mxu1  ;;  %v4610_v7 = vadd.f32 %v8352_v13, %v8324_v57  ;;  %v4617_v57 = vadd.f32 %v8360_v41, %v8338_v44  ;;  %v5077_v13 = vadd.f32 %v8384_v25, %v4843_v31  ;;  %v4846_v44 = vadd.f32 %v8372_v4, %v4612_v23  ;;  %v8844_v23 = vld [vmem:[#allocation50_spill] sm:$0xff] }
 0x2b9   : > { %v8452_v11 = vpop.f32.mrf.mxu0  ;;  %v4849_v41 = vadd.f32 %v8378_v27, %v4615_v1  ;;  %v5778_v15 = vadd.f32 %v5670_v38, %v5544_v10  ;;  %v5082_v25 = vadd.f32 %v8396_v26, %v4848_v14  ;;  %v5547_v0 = vadd.f32 %v8428_v52, %v5313_v9  ;;  %v8847_v52 = vld [vmem:[#allocation39_spill] sm:$0xff] }
 0x2ba   : > { %v5676_v43 = vpop.f32.mrf.mxu1  ;;  %v4844_v30 = vadd.f32 %v8368_v62, %v4610_v7  ;;  %v5311_v60 = vadd.f32 %v5204_v20, %v5077_v13  ;;  %v4851_v17 = vadd.f32 %v8382_v56, %v4617_v57  ;;  %v5081_v62 = vadd.f32 %v8390_v36, %v4847_v34  ;;  %v8849_v1 = vld [vmem:[#allocation23_spill] sm:$0xff] }
 0x2bb   : > { %v8480_v35 = vpop.f32.mrf.mxu0  ;;  %v5080_v46 = vadd.f32 %v8392_v49, %v4846_v44  ;;  %v5083_v56 = vadd.f32 %v8398_v5, %v4849_v41  ;;  %v5084_v20 = vadd.f32 %v8841_v39, %v4850_v2  ;;  %v8845_v5 = vld [vmem:[#allocation5_spill] sm:$0xff]  ;;  %v8854_v2 = vld [vmem:[#allocation56_spill] sm:$0xff]  ;;  %v8855_v10 = vld [vmem:[#allocation19_spill] sm:$0xff] }
 0x2bc   : > { %v8466_v47 = vpop.f32.mrf.mxu1  ;;  %v5078_v53 = vadd.f32 %v8394_v63, %v4844_v30  ;;  %v5545_v55 = vadd.f32 %v5438_v19, %v5311_v60  ;;  %v5315_v48 = vadd.f32 %v8408_v61, %v5081_v62  ;;  %v5085_v51 = vadd.f32 %v8842_v59, %v4851_v17  ;;  %v8857_v9 = vld [vmem:[#allocation27_spill] sm:$0xff] }
 0x2bd   : > { %v5769_v4 = vpop.f32.mrf.mxu0  ;;  %v5314_v49 = vadd.f32 %v8414_v37, %v5080_v46  ;;  %v5316_v29 = vadd.f32 %v8845_v5, %v5082_v25  ;;  %v5781_v19 = vadd.f32 %v5676_v43, %v5547_v0  ;;  %v5317_v34 = vadd.f32 %v8851_v28, %v5083_v56  ;;  %v8852_v43 = vld [vmem:[#allocation6_spill] sm:$0xff]  ;;  %v8860_v39 = vld [vmem:[#allocation63_spill] sm:$0xff] }
 0x2be   : > { %v8482_v32 = vpop.f32.mrf.mxu1  ;;  %v5779_v63 = vadd.f32 %v5672_v18, %v5545_v55  ;;  %v5312_v26 = vadd.f32 %v8843_v22, %v5078_v53  ;;  %v5549_v58 = vadd.f32 %v8844_v23, %v5315_v48  ;;  %v5086_v18 = vadd.f32 %v8847_v52, %v4852_v50  ;;  %v8856_v50 = vld [vmem:[#allocation52_spill] sm:$0xff]  ;;  %v8859_v48 = vld [vmem:[#allocation25_spill] sm:$0xff] }
 0x2bf   : > { %v5548_v61 = vadd.f32 %v8846_v24, %v5314_v49  ;;  %v8850_v54 = vld [vmem:[#allocation64_spill] sm:$0xff]  ;;  %v5550_v30 = vadd.f32 %v8852_v43, %v5316_v29  ;;  %v5318_v44 = vadd.f32 %v8853_v33, %v5084_v20  ;;  %v5555_v14 = vadd.f32 %v8854_v2, %v5321_v40 }
 0x2c0   : > { %v8491_v21 = vpop.f32.mrf.mxu1  ;;  %v5546_v31 = vadd.f32 %v8849_v1, %v5312_v26  ;;  %v5783_v42 = vadd.f32 %v8850_v54, %v5549_v58  ;;  %v5319_v17 = vadd.f32 %v8855_v10, %v5085_v51  ;;  %v5551_v62 = vadd.f32 %v8856_v50, %v5317_v34 }
 0x2c1   : > { %v5782_v16 = vadd.f32 %v8466_v47, %v5548_v61  ;;  %v5784_v46 = vadd.f32 %v8482_v32, %v5550_v30  ;;  %v5552_v55 = vadd.f32 %v8857_v9, %v5318_v44  ;;  %v5320_v56 = vadd.f32 %v8858_v8, %v5086_v18 }
 0x2c2   : > { %v5688_v27 = vpop.f32.mrf.mxu1  ;;  %v5780_v41 = vadd.f32 %v8452_v11, %v5546_v31  ;;  %v5785_v32 = vadd.f32 %v8491_v21, %v5551_v62 }
 0x2c3   : > { %v5554_v20 = vadd.f32 %v8860_v39, %v5320_v56 }
 0x2c4   : > { %v5904_v36 = vpop.f32.mrf.mxu0  ;;  %v5690_v38 = vpop.f32.mrf.mxu1 }
 0x2c5   : > { %v6012_v7 = vadd.f32 %v5904_v36, %v5778_v15  ;;  %v5789_v15 = vadd.f32 %v8480_v35, %v5555_v14  ;;  %v5553_v36 = vadd.f32 %v8859_v48, %v5319_v17 }
 0x2c6   : > { %v5906_v3 = vpop.f32.mrf.mxu0 }
 0x2c7   : > { %6024 = vst [vmem:[%s8518_s29] sm:$0xff] %v6012_v7  ;;  %v6013_v37 = vadd.f32 %v5906_v3, %v5779_v63  ;;  %v5786_v63 = vadd.f32 %v5769_v4, %v5552_v55  ;;  %v5787_v59 = vadd.f32 %v5688_v27, %v5553_v36  ;;  %v5788_v4 = vadd.f32 %v5690_v38, %v5554_v20 }
 0x2c8   : > { %v5910_v57 = vpop.f32.mrf.mxu0 }
 0x2c9   : > { %6025 = vst [vmem:[%s8518_s29 + $0x8] sm:$0xff] %v6013_v37  ;;  %v6015_v13 = vadd.f32 %v5910_v57, %v5781_v19  ;;  %v6718_v12 = vpop.f32.mrf.mxu1 }
 0x2ca   : > { %v6017_v45 = vadd.f32 %v6718_v12, %v5783_v42  ;;  %v5912_v60 = vpop.f32.mrf.mxu0 }
 0x2cb   : > { %6027 = vst [vmem:[%s8518_s29 + $0x18] sm:$0xff] %v6015_v13  ;;  %v6016_v47 = vadd.f32 %v5912_v60, %v5782_v16  ;;  %v5993_v53 = vpop.f32.mrf.mxu1 }
 0x2cc   : > { %6029 = vst [vmem:[%s8518_s29 + $0x28] sm:$0xff] %v6017_v45  ;;  %v6014_v11 = vadd.f32 %v5993_v53, %v5780_v41  ;;  %v5916_v25 = vpop.f32.mrf.mxu0 }
 0x2cd   : > { %6028 = vst [vmem:[%s8518_s29 + $0x20] sm:$0xff] %v6016_v47  ;;  %v6018_v49 = vadd.f32 %v5916_v25, %v5784_v46  ;;  %v6721_v0 = vpop.f32.mrf.mxu1 }
 0x2ce   : > { %6026 = vst [vmem:[%s8518_s29 + $0x10] sm:$0xff] %v6014_v11  ;;  %v6023_v35 = vadd.f32 %v6721_v0, %v5789_v15  ;;  %v5918_v7 = vpop.f32.mrf.mxu0 }
 0x2cf   : > { %6030 = vst [vmem:[%s8518_s29 + $0x30] sm:$0xff] %v6018_v49  ;;  %v6019_v51 = vadd.f32 %v5918_v7, %v5785_v32  ;;  %v6003_v22 = vpop.f32.mrf.mxu1 }
 0x2d0   : > { %6035 = vst [vmem:[%s8518_s29 + $0x58] sm:$0xff] %v6023_v35  ;;  %v6020_v21 = vadd.f32 %v6003_v22, %v5786_v63  ;;  %v5922_v26 = vpop.f32.mrf.mxu0 }
 0x2d1   : > { %6031 = vst [vmem:[%s8518_s29 + $0x38] sm:$0xff] %v6019_v51  ;;  %v6021_v23 = vadd.f32 %v5922_v26, %v5787_v59 }
 0x2d2   : > { %6032 = vst [vmem:[%s8518_s29 + $0x40] sm:$0xff] %v6020_v21  ;;  %v5924_v58 = vpop.f32.mrf.mxu0 }
 0x2d3   : > { %6033 = vst [vmem:[%s8518_s29 + $0x48] sm:$0xff] %v6021_v23  ;;  %v6022_v27 = vadd.f32 %v5924_v58, %v5788_v4 }
 0x2d5   : > { %6034 = vst [vmem:[%s8518_s29 + $0x50] sm:$0xff] %v6022_v27 }
 0x2d6   : > { %6875 = shalt.err (!%p6872_p3)
}
 0x2d7   : > { %s6876_s10 = scalar_lea.hbm %s8557_s16, 1536  ;;  %s6880_s19 = scalar_lea.hbm %s8605_s3, 3072 }
 0x2d8   : > { %p6877_p4 = scmp.ne.s32.totalorder %s8557_s16, %s6876_s10  ;;  %p6881_p9 = scmp.lt.s32.totalorder %s8557_s16, %s8605_s3 }
 0x2d9   : > { %p6882_p10 = scmp.lt.s32.totalorder %s6880_s19, %s6876_s10 }
 0x2da   : > { %p6878_p7 = pnand %p6877_p4, %p7029_p5 }
 0x2db   : > { %p6883_p11 = por %p6882_p10, %p6881_p9 }
 0x2dc   : > { %p6879_p8 = pneg %p6878_p7 }
 0x2de   : > { %p6884_p12 = pnand %p6883_p11, %p6879_p8 }
 0x2e0   : > { %6887 = shalt.err (!%p6884_p12)
}
 0x2e1   : > { %s6969_s25 = smov 384   ;;  %s6970_s27 = smov 24  }
 0x2e2   : > { %6726 = dma.vmem_to_hbm [thread:$0]  (%p7029_p5), %s8551_s26, 1536, %s8557_s16, %s8562_s6, %s6969_s25, %s6969_s25, %s6970_s27  }
 0x2e3 PF: > { %p6732_p13 = scmp.ge.s32.totalorder %s6922_s15, 2  ;;  %s6065_s29 = sand.u32 1, %s6910_s12  }
 0x2e4   : > { %s6066_s30 = scalar_lea.sflag [#allocation3], %s6065_s29 }
 0x2e5   : > { %p6729_p0 = pnand %p6732_p13, %p7033_p6 }
 0x2e7   : > { %p6730_p1 = pneg %p6729_p0 }
 0x2e9   : > { %6905 = dma.done.wait (%p6730_p1), %s6066_s30, 1536  }
 0x2ea   : > { %6907 = vsyncadd (%p6730_p1), %s6066_s30, 4294965760  ;;  %p13_p2 = scmp.ge.s32.totalorder %s7016_s18, 4   ;;  %s8861_s12 = smov %s6914_s13 }
 0x2eb   : > { %s8862_s13 = smov %s6918_s14  ;;  %s8863_s14 = smov %s7027_s21 }
 0x2ec   : > { %s8864_s15 = smov %s7016_s18  ;;  %15 = sbr.rel (!%p13_p2) target bundleno = 3 (0x3), region = 67 }
 0x2f1   :  { %6071 = vsyncpa [#allocation3], 1 }
 0x2f2   :  { %6073 = vsyncpa [#allocation3 + $0x1], 1 }

</bundles_post_ra>
